<compile_context>
chip_gen: v5e
topology: v5e:2x2
jax: 0.10.0
libtpu: 0.0.40
codegen_flags: <defaults>
</compile_context>

<pallas_src>
import math
import functools

import jax
import jax.numpy as jnp
from jax.experimental import pallas as pl
from jax.experimental.pallas import tpu as pltpu

PREC = jax.lax.Precision.HIGHEST


# ---------------------------------------------------------------------------
# Phase 1: batched input projection for both directions (non-recurrent).
#   x:(TM, E)  w:(E, 6H)  b:(1, 6H)  ->  gi_f:(TM, 3H), gi_b:(TM, 3H)
# One wide matmul (6H output lanes) per row tile keeps the MXU better utilized
# than two narrow 3H matmuls; the split into fwd/bwd halves is a cheap lane copy.
# ---------------------------------------------------------------------------
def proj_kernel(x_ref, w_ref, b_ref, gif_ref, gib_ref):
    gi = jnp.dot(x_ref[...], w_ref[...],
                 preferred_element_type=jnp.float32, precision=PREC) + b_ref[...]
    h3 = gif_ref.shape[-1]
    gif_ref[...] = gi[:, :h3].astype(gif_ref.dtype)
    gib_ref[...] = gi[:, h3:].astype(gib_ref.dtype)


# ---------------------------------------------------------------------------
# Phase 2: chunked bidirectional GRU recurrence + fused final fc.
# Per grid step c:
#   forward  processes global times  t = c*C + j,          j = 0..C-1
#   backward processes global times  t = T-1 - (c*C + j)   (its gi/out chunk is the
#                                                            block n_chunks-1-c)
# ---------------------------------------------------------------------------
def bigru_kernel(lens_ref,
                 gif_ref, gib_ref,             # (C, Bp, 3H) input-projection chunks
                 whh_f_t, bhh_f,               # (H, 3H), (1, 3H)  -- pre-transposed
                 whh_b_t, bhh_b,
                 wfc_t, bfc,                   # (2H, Dd), (1, Dd)
                 out_f_ref, out_b_ref, hid_ref,
                 hf_scr, hb_scr):              # (Bp, H) hidden-state carries
    c = pl.program_id(0)
    n_chunks = pl.num_programs(0)
    C = gif_ref.shape[0]
    H = hf_scr.shape[1]
    T = n_chunks * C

    @pl.when(c == 0)
    def _():
        hf_scr[...] = jnp.zeros_like(hf_scr)
        hb_scr[...] = jnp.zeros_like(hb_scr)

    lens = lens_ref[...]                       # (Bp, 1) int32
    # Hoist constant-tile loads out of the unrolled time loop.
    w_f = whh_f_t[...]
    b_f = bhh_f[...]
    w_b = whh_b_t[...]
    b_b = bhh_b[...]

    def gru_step(gi, h, whh_t, bhh):
        # PyTorch GRU cell; input projection (incl. b_ih) already folded into `gi`.
        # NOTE: b_hh_n must stay inside r * (h @ W_hn^T + b_hn) -- kept here.
        gh = jnp.dot(h, whh_t, preferred_element_type=jnp.float32,
                     precision=PREC) + bhh
        r = jax.nn.sigmoid(gi[:, :H] + gh[:, :H])
        z = jax.nn.sigmoid(gi[:, H:2 * H] + gh[:, H:2 * H])
        n = jnp.tanh(gi[:, 2 * H:] + r * gh[:, 2 * H:])
        return (1.0 - z) * n + z * h

    def body(j, carry):
        hf, hb = carry
        # ---- forward direction, global time t_f = c*C + j ----
        t_f = c * C + j
        cand_f = gru_step(gif_ref[j], hf, w_f, b_f)
        m_f = t_f < lens                                   # (Bp, 1) bool
        hf = jnp.where(m_f, cand_f, hf)
        out_f_ref[j] = jnp.where(m_f, cand_f, 0.0).astype(out_f_ref.dtype)
        # ---- backward direction, global time t_b = T-1-t_f ----
        jb = C - 1 - j                                     # row inside reversed chunk
        cand_b = gru_step(gib_ref[jb], hb, w_b, b_b)
        m_b = (T - 1 - t_f) < lens
        hb = jnp.where(m_b, cand_b, hb)
        out_b_ref[jb] = jnp.where(m_b, cand_b, 0.0).astype(out_b_ref.dtype)
        return hf, hb

    # Fully unrolled short inner loop -> LLO scheduler sees all C steps.
    hf, hb = jax.lax.fori_loop(0, C, body, (hf_scr[...], hb_scr[...]), unroll=True)
    hf_scr[...] = hf
    hb_scr[...] = hb

    @pl.when(c == n_chunks - 1)
    def _():
        h_cat = jnp.concatenate([hf, hb], axis=-1)         # (Bp, 2H)
        hid = jnp.tanh(jnp.dot(h_cat, wfc_t[...],
                               preferred_element_type=jnp.float32,
                               precision=PREC) + bfc[...])
        hid_ref[...] = hid.astype(hid_ref.dtype)


# ---------------------------------------------------------------------------
# Wrapper
# ---------------------------------------------------------------------------
def encoder_forward(src, src_len, params, *, chunk=None):
    """src: (T, B) int32 token ids; src_len: (B,) lengths (descending, max == T)."""
    emb_tbl = params["embedding"]
    T, B = src.shape
    E = emb_tbl.shape[1]
    H = params["whh_f"].shape[1]
    Dd = params["wfc"].shape[0]

    # Time-chunk size: amortize the ~0.35us per-grid-step pipeline overhead.
    if chunk is None:
        chunk = 1
        for d in range(1, min(T, 32) + 1):
            if T % d == 0:
                chunk = d
    assert T % chunk == 0, "chunk must divide T"
    C = chunk
    n_chunks = T // C

    # Pad batch to a multiple of 8 sublanes; padded rows get length 0 (fully masked).
    Bp = max(8, ((B + 7) // 8) * 8)
    src_p = jnp.pad(src, ((0, 0), (0, Bp - B)))
    lens_p = jnp.pad(src_len.astype(jnp.int32), (0, Bp - B)).reshape(Bp, 1)

    # Embedding lookup (XLA gather) + dropout (identity, eval mode).
    # TODO(synk): embedding gather left to XLA; a Pallas DMA-gather only pays off
    # at much larger vocab/emb sizes.
    emb = emb_tbl[src_p].astype(jnp.float32)               # (T, Bp, E)

    # Pre-transposed / fused parameters (no .T inside kernels).
    w_ih_cat_t = jnp.concatenate([params["wih_f"], params["wih_b"]], axis=0).T  # (E, 6H)
    b_ih_cat = jnp.concatenate([params["bih_f"], params["bih_b"]]).reshape(1, 6 * H)
    whh_f_t = params["whh_f"].T                            # (H, 3H)
    whh_b_t = params["whh_b"].T
    bhh_f = params["bhh_f"].reshape(1, 3 * H)
    bhh_b = params["bhh_b"].reshape(1, 3 * H)
    wfc_t = params["wfc"].T                                # (2H, Dd)
    bfc = params["bfc"].reshape(1, Dd)

    # ---- Phase 1: hoisted input projections as one big matmul ----
    M = T * Bp
    TM = C * Bp                                            # rows per grid step (mult. of 8)
    x2d = emb.reshape(M, E)
    gi_f2d, gi_b2d = pl.pallas_call(
        proj_kernel,
        out_shape=(jax.ShapeDtypeStruct((M, 3 * H), jnp.float32),
                   jax.ShapeDtypeStruct((M, 3 * H), jnp.float32)),
        grid_spec=pltpu.PrefetchScalarGridSpec(
            num_scalar_prefetch=0,
            grid=(M // TM,),
            in_specs=[
                pl.BlockSpec((TM, E), lambda i: (i, 0)),
                pl.BlockSpec((E, 6 * H), lambda i: (0, 0)),
                pl.BlockSpec((1, 6 * H), lambda i: (0, 0)),
            ],
            out_specs=[
                pl.BlockSpec((TM, 3 * H), lambda i: (i, 0)),
                pl.BlockSpec((TM, 3 * H), lambda i: (i, 0)),
            ],
        ),
        compiler_params=pltpu.CompilerParams(
            dimension_semantics=("parallel",)),            # independent row tiles
    )(x2d, w_ih_cat_t, b_ih_cat)
    gi_f = gi_f2d.reshape(T, Bp, 3 * H)
    gi_b = gi_b2d.reshape(T, Bp, 3 * H)

    # ---- Phase 2: chunked sequential recurrence ----
    const = lambda c: (0, 0)
    out_f, out_b, hidden = pl.pallas_call(
        bigru_kernel,
        out_shape=(jax.ShapeDtypeStruct((T, Bp, H), jnp.float32),
                   jax.ShapeDtypeStruct((T, Bp, H), jnp.float32),
                   jax.ShapeDtypeStruct((Bp, Dd), jnp.float32)),
        grid_spec=pltpu.PrefetchScalarGridSpec(
            num_scalar_prefetch=0,
            grid=(n_chunks,),
            in_specs=[
                pl.BlockSpec((Bp, 1), const),                                      # lens
                pl.BlockSpec((C, Bp, 3 * H), lambda c: (c, 0, 0)),                 # gi fwd chunk
                pl.BlockSpec((C, Bp, 3 * H), lambda c: (n_chunks - 1 - c, 0, 0)),  # gi bwd chunk
                pl.BlockSpec((H, 3 * H), const),                                   # whh_f^T
                pl.BlockSpec((1, 3 * H), const),                                   # bhh_f
                pl.BlockSpec((H, 3 * H), const),                                   # whh_b^T
                pl.BlockSpec((1, 3 * H), const),                                   # bhh_b
                pl.BlockSpec((2 * H, Dd), const),                                  # wfc^T
                pl.BlockSpec((1, Dd), const),                                      # bfc
            ],
            out_specs=[
                pl.BlockSpec((C, Bp, H), lambda c: (c, 0, 0)),                     # fwd outputs
                pl.BlockSpec((C, Bp, H), lambda c: (n_chunks - 1 - c, 0, 0)),      # bwd outputs
                pl.BlockSpec((Bp, Dd), const),                                     # final hidden
            ],
            scratch_shapes=[pltpu.VMEM((Bp, H), jnp.float32),     # fwd hidden carry
                            pltpu.VMEM((Bp, H), jnp.float32)],    # bwd hidden carry
        ),
        compiler_params=pltpu.CompilerParams(
            dimension_semantics=("arbitrary",),    # sequential over time chunks
            vmem_limit_bytes=48 * 1024 * 1024),    # headroom even under v7x's 64 MiB VMEM
    )(lens_p, gi_f, gi_b, whh_f_t, bhh_f, whh_b_t, bhh_b, wfc_t, bfc)

    outputs = jnp.concatenate([out_f[:, :B], out_b[:, :B]], axis=-1)   # (T, B, 2H)
    return outputs, hidden[:B]


# ---------------- pure-JAX reference (for verification) ----------------
def _ref_gru_dir(xs, lens, w_ih, w_hh, b_ih, b_hh, reverse):
    T, B, E = xs.shape
    H = w_hh.shape[1]
    ts = jnp.arange(T)
    if reverse:
        xs, ts = xs[::-1], ts[::-1]

    def step(h, inp):
        x, t = inp
        gi = jnp.dot(x, w_ih.T, precision=PREC) + b_ih
        gh = jnp.dot(h, w_hh.T, precision=PREC) + b_hh
        r = jax.nn.sigmoid(gi[:, :H] + gh[:, :H])
        z = jax.nn.sigmoid(gi[:, H:2 * H] + gh[:, H:2 * H])
        n = jnp.tanh(gi[:, 2 * H:] + r * gh[:, 2 * H:])
        cand = (1.0 - z) * n + z * h
        mask = (t < lens)[:, None]
        return jnp.where(mask, cand, h), jnp.where(mask, cand, 0.0)

    hT, outs = jax.lax.scan(step, jnp.zeros((B, H), jnp.float32), (xs, ts))
    if reverse:
        outs = outs[::-1]
    return outs, hT


def ref_encoder(src, src_len, params):
    emb = params["embedding"][src]
    of, hf = _ref_gru_dir(emb, src_len, params["wih_f"], params["whh_f"],
                          params["bih_f"], params["bhh_f"], reverse=False)
    ob, hb = _ref_gru_dir(emb, src_len, params["wih_b"], params["whh_b"],
                          params["bih_b"], params["bhh_b"], reverse=True)
    outputs = jnp.concatenate([of, ob], axis=-1)
    hidden = jnp.tanh(jnp.dot(jnp.concatenate([hf, hb], axis=-1),
                              params["wfc"].T, precision=PREC) + params["bfc"])
    return outputs, hidden


def make_params(key, input_dim, emb_dim, enc_hid, dec_hid):
    ks = jax.random.split(key, 12)
    kH = 1.0 / math.sqrt(enc_hid)
    kF = 1.0 / math.sqrt(2 * enc_hid)
    u = lambda k, shape, s: jax.random.uniform(k, shape, jnp.float32, -s, s)
    return {
        "embedding": jax.random.normal(ks[0], (input_dim, emb_dim), jnp.float32),
        "wih_f": u(ks[1], (3 * enc_hid, emb_dim), kH),
        "whh_f": u(ks[2], (3 * enc_hid, enc_hid), kH),
        "bih_f": u(ks[3], (3 * enc_hid,), kH),
        "bhh_f": u(ks[4], (3 * enc_hid,), kH),
        "wih_b": u(ks[5], (3 * enc_hid, emb_dim), kH),
        "whh_b": u(ks[6], (3 * enc_hid, enc_hid), kH),
        "bih_b": u(ks[7], (3 * enc_hid,), kH),
        "bhh_b": u(ks[8], (3 * enc_hid,), kH),
        "wfc": u(ks[9], (dec_hid, 2 * enc_hid), kF),
        "bfc": u(ks[10], (dec_hid,), kF),
    }


if __name__ == "__main__":
    INPUT_DIM, EMB_DIM, ENC_HID, DEC_HID = 50, 32, 32, 32
    T, B = 16, 2

    key = jax.random.PRNGKey(0)
    kp, ks = jax.random.split(key)
    params = make_params(kp, INPUT_DIM, EMB_DIM, ENC_HID, DEC_HID)

    src = jax.random.randint(ks, (T, B), 0, INPUT_DIM, dtype=jnp.int32)   # (T, B) token ids
    src_len = jnp.array([T, 5], dtype=jnp.int32)                          # descending, max == T

    fwd = jax.jit(functools.partial(encoder_forward, chunk=8))
    outputs, hidden = fwd(src, src_len, params)
    jax.block_until_ready((outputs, hidden))

    ref_out, ref_hid = ref_encoder(src, src_len, params)
    assert outputs.shape == (T, B, 2 * ENC_HID) and hidden.shape == (B, DEC_HID)
    assert jnp.allclose(outputs, ref_out, atol=1e-4, rtol=1e-4), "outputs mismatch"
    assert jnp.allclose(hidden, ref_hid, atol=1e-4, rtol=1e-4), "hidden mismatch"

    print("KERNEL_OK")
</pallas_src>

<mosaic_0001>
module attributes {stable_mosaic.version = 11 : i64} {
  func.func @proj_kernel(%arg0: i32, %arg1: memref<64x32xf32, #tpu.memory_space<vmem>>, %arg2: memref<32x192xf32, #tpu.memory_space<vmem>>, %arg3: memref<1x192xf32, #tpu.memory_space<vmem>>, %arg4: memref<64x96xf32, #tpu.memory_space<vmem>>, %arg5: memref<64x96xf32, #tpu.memory_space<vmem>>) attributes {dimension_semantics = [#tpu.dimension_semantics<parallel>], iteration_bounds = array<i64: 2>, scalar_prefetch = 0 : i64, scratch_operands = 0 : i64, tpu.core_type = #tpu.core_type<tc>, window_params = [{transform_indices = @transform_0, window_bounds = array<i64: 64, 32>}, {pipeline_mode = #tpu.pipeline_mode<synchronous>, transform_indices = @transform_1, window_bounds = array<i64: 32, 192>}, {pipeline_mode = #tpu.pipeline_mode<synchronous>, transform_indices = @transform_2, window_bounds = array<i64: 1, 192>}, {transform_indices = @transform_3, window_bounds = array<i64: 64, 96>}, {transform_indices = @transform_4, window_bounds = array<i64: 64, 96>}]} {
    %c0 = arith.constant 0 : index
    %c0_0 = arith.constant 0 : index
    %0 = vector.load %arg1[%c0, %c0_0] : memref<64x32xf32, #tpu.memory_space<vmem>>, vector<64x32xf32>
    %c0_1 = arith.constant 0 : index
    %c0_2 = arith.constant 0 : index
    %1 = vector.load %arg2[%c0_1, %c0_2] : memref<32x192xf32, #tpu.memory_space<vmem>>, vector<32x192xf32>
    %cst = arith.constant dense<0.000000e+00> : vector<64x192xf32>
    %2 = tpu.matmul %0, %1, %cst {dimension_numbers = #tpu.dot_dimension_numbers<[1], [0], [0], [1], [0, 0, 1, 1], [], []>, precision = #tpu.contract_precision<fp32>} : vector<64x32xf32>, vector<32x192xf32>, vector<64x192xf32> -> vector<64x192xf32>
    %c0_3 = arith.constant 0 : index
    %c0_4 = arith.constant 0 : index
    %3 = vector.load %arg3[%c0_3, %c0_4] : memref<1x192xf32, #tpu.memory_space<vmem>>, vector<1x192xf32>
    %4 = vector.broadcast %3 : vector<1x192xf32> to vector<64x192xf32>
    %5 = arith.addf %2, %4 : vector<64x192xf32>
    %6 = vector.extract_strided_slice %5 {offsets = [0, 0], sizes = [64, 96], strides = [1, 1]} : vector<64x192xf32> to vector<64x96xf32>
    %c0_5 = arith.constant 0 : index
    %c0_6 = arith.constant 0 : index
    %7 = vector.load %arg4[%c0_5, %c0_6] : memref<64x96xf32, #tpu.memory_space<vmem>>, vector<64x96xf32>
    tpu.vector_store %arg4[%c0_5, %c0_6], %6 {strides = array<i32>} : memref<64x96xf32, #tpu.memory_space<vmem>>, vector<64x96xf32>,
    %8 = vector.extract_strided_slice %5 {offsets = [0, 96], sizes = [64, 96], strides = [1, 1]} : vector<64x192xf32> to vector<64x96xf32>
    %c0_7 = arith.constant 0 : index
    %c0_8 = arith.constant 0 : index
    %9 = vector.load %arg5[%c0_7, %c0_8] : memref<64x96xf32, #tpu.memory_space<vmem>>, vector<64x96xf32>
    tpu.vector_store %arg5[%c0_7, %c0_8], %8 {strides = array<i32>} : memref<64x96xf32, #tpu.memory_space<vmem>>, vector<64x96xf32>,
    return
  }
  func.func @transform_0(%arg0: i32) -> (i32, i32) {
    %c0_i32 = arith.constant 0 : i32
    %c0_i32_0 = arith.constant 0 : i32
    return %arg0, %c0_i32 : i32, i32
  }
  func.func @transform_1(%arg0: i32) -> (i32, i32) {
    %c0_i32 = arith.constant 0 : i32
    %c0_i32_0 = arith.constant 0 : i32
    %c0_i32_1 = arith.constant 0 : i32
    return %c0_i32, %c0_i32_0 : i32, i32
  }
  func.func @transform_2(%arg0: i32) -> (i32, i32) {
    %c0_i32 = arith.constant 0 : i32
    %c0_i32_0 = arith.constant 0 : i32
    %c0_i32_1 = arith.constant 0 : i32
    return %c0_i32, %c0_i32_0 : i32, i32
  }
  func.func @transform_3(%arg0: i32) -> (i32, i32) {
    %c0_i32 = arith.constant 0 : i32
    %c0_i32_0 = arith.constant 0 : i32
    return %arg0, %c0_i32 : i32, i32
  }
  func.func @transform_4(%arg0: i32) -> (i32, i32) {
    %c0_i32 = arith.constant 0 : i32
    %c0_i32_0 = arith.constant 0 : i32
    return %arg0, %c0_i32 : i32, i32
  }
}

module attributes {stable_mosaic.version = 11 : i64} {
  func.func @bigru_kernel(%arg0: i32, %arg1: memref<8x1xi32, #tpu.memory_space<vmem>>, %arg2: memref<8x8x96xf32, #tpu.memory_space<vmem>>, %arg3: memref<8x8x96xf32, #tpu.memory_space<vmem>>, %arg4: memref<32x96xf32, #tpu.memory_space<vmem>>, %arg5: memref<1x96xf32, #tpu.memory_space<vmem>>, %arg6: memref<32x96xf32, #tpu.memory_space<vmem>>, %arg7: memref<1x96xf32, #tpu.memory_space<vmem>>, %arg8: memref<64x32xf32, #tpu.memory_space<vmem>>, %arg9: memref<1x32xf32, #tpu.memory_space<vmem>>, %arg10: memref<8x8x32xf32, #tpu.memory_space<vmem>>, %arg11: memref<8x8x32xf32, #tpu.memory_space<vmem>>, %arg12: memref<8x32xf32, #tpu.memory_space<vmem>>, %arg13: memref<8x32xf32, #tpu.memory_space<vmem>>, %arg14: memref<8x32xf32, #tpu.memory_space<vmem>>) attributes {dimension_semantics = [#tpu.dimension_semantics<arbitrary>], iteration_bounds = array<i64: 2>, scalar_prefetch = 0 : i64, scratch_operands = 2 : i64, tpu.core_type = #tpu.core_type<tc>, window_params = [{pipeline_mode = #tpu.pipeline_mode<synchronous>, transform_indices = @transform_0, window_bounds = array<i64: 8, 1>}, {transform_indices = @transform_1, window_bounds = array<i64: 8, 8, 96>}, {transform_indices = @transform_2, window_bounds = array<i64: 8, 8, 96>}, {pipeline_mode = #tpu.pipeline_mode<synchronous>, transform_indices = @transform_3, window_bounds = array<i64: 32, 96>}, {pipeline_mode = #tpu.pipeline_mode<synchronous>, transform_indices = @transform_4, window_bounds = array<i64: 1, 96>}, {pipeline_mode = #tpu.pipeline_mode<synchronous>, transform_indices = @transform_5, window_bounds = array<i64: 32, 96>}, {pipeline_mode = #tpu.pipeline_mode<synchronous>, transform_indices = @transform_6, window_bounds = array<i64: 1, 96>}, {pipeline_mode = #tpu.pipeline_mode<synchronous>, transform_indices = @transform_7, window_bounds = array<i64: 64, 32>}, {pipeline_mode = #tpu.pipeline_mode<synchronous>, transform_indices = @transform_8, window_bounds = array<i64: 1, 32>}, {transform_indices = @transform_9, window_bounds = array<i64: 8, 8, 32>}, {transform_indices = @transform_10, window_bounds = array<i64: 8, 8, 32>}, {pipeline_mode = #tpu.pipeline_mode<synchronous>, transform_indices = @transform_11, window_bounds = array<i64: 8, 32>}]} {
    %c0_i32 = arith.constant 0 : i32
    %0 = arith.cmpi eq, %arg0, %c0_i32 : i32
    %1 = arith.extui %0 : i1 to i32
    %c0_i32_0 = arith.constant 0 : i32
    %2 = arith.cmpi ne, %1, %c0_i32_0 : i32
    scf.if %2 {
      %cst_187 = arith.constant 0.000000e+00 : f32
      %767 = vector.broadcast %cst_187 : f32 to vector<8x32xf32>
      %c0_188 = arith.constant 0 : index
      %c0_189 = arith.constant 0 : index
      %768 = vector.load %arg13[%c0_188, %c0_189] : memref<8x32xf32, #tpu.memory_space<vmem>>, vector<8x32xf32>
      tpu.vector_store %arg13[%c0_188, %c0_189], %767 {strides = array<i32>} : memref<8x32xf32, #tpu.memory_space<vmem>>, vector<8x32xf32>,
      %cst_190 = arith.constant 0.000000e+00 : f32
      %769 = vector.broadcast %cst_190 : f32 to vector<8x32xf32>
      %c0_191 = arith.constant 0 : index
      %c0_192 = arith.constant 0 : index
      %770 = vector.load %arg14[%c0_191, %c0_192] : memref<8x32xf32, #tpu.memory_space<vmem>>, vector<8x32xf32>
      tpu.vector_store %arg14[%c0_191, %c0_192], %769 {strides = array<i32>} : memref<8x32xf32, #tpu.memory_space<vmem>>, vector<8x32xf32>,
    } else {
    }
    %c0 = arith.constant 0 : index
    %c0_1 = arith.constant 0 : index
    %3 = vector.load %arg1[%c0, %c0_1] : memref<8x1xi32, #tpu.memory_space<vmem>>, vector<8x1xi32>
    %c0_2 = arith.constant 0 : index
    %c0_3 = arith.constant 0 : index
    %4 = vector.load %arg4[%c0_2, %c0_3] : memref<32x96xf32, #tpu.memory_space<vmem>>, vector<32x96xf32>
    %c0_4 = arith.constant 0 : index
    %c0_5 = arith.constant 0 : index
    %5 = vector.load %arg5[%c0_4, %c0_5] : memref<1x96xf32, #tpu.memory_space<vmem>>, vector<1x96xf32>
    %c0_6 = arith.constant 0 : index
    %c0_7 = arith.constant 0 : index
    %6 = vector.load %arg6[%c0_6, %c0_7] : memref<32x96xf32, #tpu.memory_space<vmem>>, vector<32x96xf32>
    %c0_8 = arith.constant 0 : index
    %c0_9 = arith.constant 0 : index
    %7 = vector.load %arg7[%c0_8, %c0_9] : memref<1x96xf32, #tpu.memory_space<vmem>>, vector<1x96xf32>
    %c0_10 = arith.constant 0 : index
    %c0_11 = arith.constant 0 : index
    %8 = vector.load %arg13[%c0_10, %c0_11] : memref<8x32xf32, #tpu.memory_space<vmem>>, vector<8x32xf32>
    %c0_12 = arith.constant 0 : index
    %c0_13 = arith.constant 0 : index
    %9 = vector.load %arg14[%c0_12, %c0_13] : memref<8x32xf32, #tpu.memory_space<vmem>>, vector<8x32xf32>
    %c0_i32_14 = arith.constant 0 : i32
    %c8_i32 = arith.constant 8 : i32
    %10 = arith.muli %arg0, %c8_i32 : i32
    %11 = arith.addi %10, %c0_i32_14 : i32
    %12 = arith.index_cast %c0_i32_14 : i32 to index
    %c0_15 = arith.constant 0 : index
    %c0_16 = arith.constant 0 : index
    %13 = vector.load %arg2[%12, %c0_15, %c0_16] : memref<8x8x96xf32, #tpu.memory_space<vmem>>, vector<1x8x96xf32>
    %14 = vector.shape_cast %13 : vector<1x8x96xf32> to vector<8x96xf32>
    %cst = arith.constant dense<0.000000e+00> : vector<8x96xf32>
    %15 = tpu.matmul %8, %4, %cst {dimension_numbers = #tpu.dot_dimension_numbers<[1], [0], [0], [1], [0, 0, 1, 1], [], []>, precision = #tpu.contract_precision<fp32>} : vector<8x32xf32>, vector<32x96xf32>, vector<8x96xf32> -> vector<8x96xf32>
    %16 = vector.broadcast %5 : vector<1x96xf32> to vector<8x96xf32>
    %17 = arith.addf %15, %16 : vector<8x96xf32>
    %18 = vector.extract_strided_slice %14 {offsets = [0, 0], sizes = [8, 32], strides = [1, 1]} : vector<8x96xf32> to vector<8x32xf32>
    %19 = vector.extract_strided_slice %17 {offsets = [0, 0], sizes = [8, 32], strides = [1, 1]} : vector<8x96xf32> to vector<8x32xf32>
    %20 = arith.addf %18, %19 : vector<8x32xf32>
    %21 = arith.negf %20 : vector<8x32xf32>
    %22 = math.exp %21 : vector<8x32xf32>
    %cst_17 = arith.constant 1.000000e+00 : f32
    %23 = vector.broadcast %cst_17 : f32 to vector<8x32xf32>
    %24 = arith.addf %23, %22 : vector<8x32xf32>
    %25 = arith.divf %23, %24 : vector<8x32xf32>
    %26 = vector.extract_strided_slice %14 {offsets = [0, 32], sizes = [8, 32], strides = [1, 1]} : vector<8x96xf32> to vector<8x32xf32>
    %27 = vector.extract_strided_slice %17 {offsets = [0, 32], sizes = [8, 32], strides = [1, 1]} : vector<8x96xf32> to vector<8x32xf32>
    %28 = arith.addf %26, %27 : vector<8x32xf32>
    %29 = arith.negf %28 : vector<8x32xf32>
    %30 = math.exp %29 : vector<8x32xf32>
    %cst_18 = arith.constant 1.000000e+00 : f32
    %31 = vector.broadcast %cst_18 : f32 to vector<8x32xf32>
    %32 = arith.addf %31, %30 : vector<8x32xf32>
    %33 = arith.divf %31, %32 : vector<8x32xf32>
    %34 = vector.extract_strided_slice %14 {offsets = [0, 64], sizes = [8, 32], strides = [1, 1]} : vector<8x96xf32> to vector<8x32xf32>
    %35 = vector.extract_strided_slice %17 {offsets = [0, 64], sizes = [8, 32], strides = [1, 1]} : vector<8x96xf32> to vector<8x32xf32>
    %36 = arith.mulf %25, %35 : vector<8x32xf32>
    %37 = arith.addf %34, %36 : vector<8x32xf32>
    %38 = math.tanh %37 : vector<8x32xf32>
    %cst_19 = arith.constant 1.000000e+00 : f32
    %39 = vector.broadcast %cst_19 : f32 to vector<8x32xf32>
    %40 = arith.subf %39, %33 : vector<8x32xf32>
    %41 = arith.mulf %40, %38 : vector<8x32xf32>
    %42 = arith.mulf %33, %8 : vector<8x32xf32>
    %43 = arith.addf %41, %42 : vector<8x32xf32>
    %44 = vector.broadcast %11 : i32 to vector<8x1xi32>
    %45 = arith.cmpi slt, %44, %3 : vector<8x1xi32>
    %46 = vector.shape_cast %45 : vector<8x1xi1> to vector<8x1xi1>
    %47 = vector.broadcast %46 : vector<8x1xi1> to vector<8x32xi1>
    %48 = arith.select %47, %43, %8 : vector<8x32xi1>, vector<8x32xf32>
    %cst_20 = arith.constant 0.000000e+00 : f32
    %49 = vector.shape_cast %45 : vector<8x1xi1> to vector<8x1xi1>
    %50 = vector.broadcast %49 : vector<8x1xi1> to vector<8x32xi1>
    %51 = vector.broadcast %cst_20 : f32 to vector<8x32xf32>
    %52 = arith.select %50, %43, %51 : vector<8x32xi1>, vector<8x32xf32>
    %53 = arith.index_cast %c0_i32_14 : i32 to index
    %c0_21 = arith.constant 0 : index
    %c0_22 = arith.constant 0 : index
    %54 = vector.load %arg10[%53, %c0_21, %c0_22] : memref<8x8x32xf32, #tpu.memory_space<vmem>>, vector<1x8x32xf32>
    %55 = vector.shape_cast %54 : vector<1x8x32xf32> to vector<8x32xf32>
    %56 = vector.shape_cast %52 : vector<8x32xf32> to vector<1x8x32xf32>
    tpu.vector_store %arg10[%53, %c0_21, %c0_22], %56 {strides = array<i32>} : memref<8x8x32xf32, #tpu.memory_space<vmem>>, vector<1x8x32xf32>,
    %c7_i32 = arith.constant 7 : i32
    %57 = arith.subi %c7_i32, %c0_i32_14 : i32
    %58 = arith.index_cast %57 : i32 to index
    %c0_23 = arith.constant 0 : index
    %c0_24 = arith.constant 0 : index
    %59 = vector.load %arg3[%58, %c0_23, %c0_24] : memref<8x8x96xf32, #tpu.memory_space<vmem>>, vector<1x8x96xf32>
    %60 = vector.shape_cast %59 : vector<1x8x96xf32> to vector<8x96xf32>
    %cst_25 = arith.constant dense<0.000000e+00> : vector<8x96xf32>
    %61 = tpu.matmul %9, %6, %cst_25 {dimension_numbers = #tpu.dot_dimension_numbers<[1], [0], [0], [1], [0, 0, 1, 1], [], []>, precision = #tpu.contract_precision<fp32>} : vector<8x32xf32>, vector<32x96xf32>, vector<8x96xf32> -> vector<8x96xf32>
    %62 = vector.broadcast %7 : vector<1x96xf32> to vector<8x96xf32>
    %63 = arith.addf %61, %62 : vector<8x96xf32>
    %64 = vector.extract_strided_slice %60 {offsets = [0, 0], sizes = [8, 32], strides = [1, 1]} : vector<8x96xf32> to vector<8x32xf32>
    %65 = vector.extract_strided_slice %63 {offsets = [0, 0], sizes = [8, 32], strides = [1, 1]} : vector<8x96xf32> to vector<8x32xf32>
    %66 = arith.addf %64, %65 : vector<8x32xf32>
    %67 = arith.negf %66 : vector<8x32xf32>
    %68 = math.exp %67 : vector<8x32xf32>
    %cst_26 = arith.constant 1.000000e+00 : f32
    %69 = vector.broadcast %cst_26 : f32 to vector<8x32xf32>
    %70 = arith.addf %69, %68 : vector<8x32xf32>
    %71 = arith.divf %69, %70 : vector<8x32xf32>
    %72 = vector.extract_strided_slice %60 {offsets = [0, 32], sizes = [8, 32], strides = [1, 1]} : vector<8x96xf32> to vector<8x32xf32>
    %73 = vector.extract_strided_slice %63 {offsets = [0, 32], sizes = [8, 32], strides = [1, 1]} : vector<8x96xf32> to vector<8x32xf32>
    %74 = arith.addf %72, %73 : vector<8x32xf32>
    %75 = arith.negf %74 : vector<8x32xf32>
    %76 = math.exp %75 : vector<8x32xf32>
    %cst_27 = arith.constant 1.000000e+00 : f32
    %77 = vector.broadcast %cst_27 : f32 to vector<8x32xf32>
    %78 = arith.addf %77, %76 : vector<8x32xf32>
    %79 = arith.divf %77, %78 : vector<8x32xf32>
    %80 = vector.extract_strided_slice %60 {offsets = [0, 64], sizes = [8, 32], strides = [1, 1]} : vector<8x96xf32> to vector<8x32xf32>
    %81 = vector.extract_strided_slice %63 {offsets = [0, 64], sizes = [8, 32], strides = [1, 1]} : vector<8x96xf32> to vector<8x32xf32>
    %82 = arith.mulf %71, %81 : vector<8x32xf32>
    %83 = arith.addf %80, %82 : vector<8x32xf32>
    %84 = math.tanh %83 : vector<8x32xf32>
    %cst_28 = arith.constant 1.000000e+00 : f32
    %85 = vector.broadcast %cst_28 : f32 to vector<8x32xf32>
    %86 = arith.subf %85, %79 : vector<8x32xf32>
    %87 = arith.mulf %86, %84 : vector<8x32xf32>
    %88 = arith.mulf %79, %9 : vector<8x32xf32>
    %89 = arith.addf %87, %88 : vector<8x32xf32>
    %c15_i32 = arith.constant 15 : i32
    %90 = arith.subi %c15_i32, %11 : i32
    %91 = vector.broadcast %90 : i32 to vector<8x1xi32>
    %92 = arith.cmpi slt, %91, %3 : vector<8x1xi32>
    %93 = vector.shape_cast %92 : vector<8x1xi1> to vector<8x1xi1>
    %94 = vector.broadcast %93 : vector<8x1xi1> to vector<8x32xi1>
    %95 = arith.select %94, %89, %9 : vector<8x32xi1>, vector<8x32xf32>
    %cst_29 = arith.constant 0.000000e+00 : f32
    %96 = vector.shape_cast %92 : vector<8x1xi1> to vector<8x1xi1>
    %97 = vector.broadcast %96 : vector<8x1xi1> to vector<8x32xi1>
    %98 = vector.broadcast %cst_29 : f32 to vector<8x32xf32>
    %99 = arith.select %97, %89, %98 : vector<8x32xi1>, vector<8x32xf32>
    %100 = arith.index_cast %57 : i32 to index
    %c0_30 = arith.constant 0 : index
    %c0_31 = arith.constant 0 : index
    %101 = vector.load %arg11[%100, %c0_30, %c0_31] : memref<8x8x32xf32, #tpu.memory_space<vmem>>, vector<1x8x32xf32>
    %102 = vector.shape_cast %101 : vector<1x8x32xf32> to vector<8x32xf32>
    %103 = vector.shape_cast %99 : vector<8x32xf32> to vector<1x8x32xf32>
    tpu.vector_store %arg11[%100, %c0_30, %c0_31], %103 {strides = array<i32>} : memref<8x8x32xf32, #tpu.memory_space<vmem>>, vector<1x8x32xf32>,
    %c1_i32 = arith.constant 1 : i32
    %c8_i32_32 = arith.constant 8 : i32
    %104 = arith.muli %arg0, %c8_i32_32 : i32
    %105 = arith.addi %104, %c1_i32 : i32
    %106 = arith.index_cast %c1_i32 : i32 to index
    %c0_33 = arith.constant 0 : index
    %c0_34 = arith.constant 0 : index
    %107 = vector.load %arg2[%106, %c0_33, %c0_34] : memref<8x8x96xf32, #tpu.memory_space<vmem>>, vector<1x8x96xf32>
    %108 = vector.shape_cast %107 : vector<1x8x96xf32> to vector<8x96xf32>
    %cst_35 = arith.constant dense<0.000000e+00> : vector<8x96xf32>
    %109 = tpu.matmul %48, %4, %cst_35 {dimension_numbers = #tpu.dot_dimension_numbers<[1], [0], [0], [1], [0, 0, 1, 1], [], []>, precision = #tpu.contract_precision<fp32>} : vector<8x32xf32>, vector<32x96xf32>, vector<8x96xf32> -> vector<8x96xf32>
    %110 = vector.broadcast %5 : vector<1x96xf32> to vector<8x96xf32>
    %111 = arith.addf %109, %110 : vector<8x96xf32>
    %112 = vector.extract_strided_slice %108 {offsets = [0, 0], sizes = [8, 32], strides = [1, 1]} : vector<8x96xf32> to vector<8x32xf32>
    %113 = vector.extract_strided_slice %111 {offsets = [0, 0], sizes = [8, 32], strides = [1, 1]} : vector<8x96xf32> to vector<8x32xf32>
    %114 = arith.addf %112, %113 : vector<8x32xf32>
    %115 = arith.negf %114 : vector<8x32xf32>
    %116 = math.exp %115 : vector<8x32xf32>
    %cst_36 = arith.constant 1.000000e+00 : f32
    %117 = vector.broadcast %cst_36 : f32 to vector<8x32xf32>
    %118 = arith.addf %117, %116 : vector<8x32xf32>
    %119 = arith.divf %117, %118 : vector<8x32xf32>
    %120 = vector.extract_strided_slice %108 {offsets = [0, 32], sizes = [8, 32], strides = [1, 1]} : vector<8x96xf32> to vector<8x32xf32>
    %121 = vector.extract_strided_slice %111 {offsets = [0, 32], sizes = [8, 32], strides = [1, 1]} : vector<8x96xf32> to vector<8x32xf32>
    %122 = arith.addf %120, %121 : vector<8x32xf32>
    %123 = arith.negf %122 : vector<8x32xf32>
    %124 = math.exp %123 : vector<8x32xf32>
    %cst_37 = arith.constant 1.000000e+00 : f32
    %125 = vector.broadcast %cst_37 : f32 to vector<8x32xf32>
    %126 = arith.addf %125, %124 : vector<8x32xf32>
    %127 = arith.divf %125, %126 : vector<8x32xf32>
    %128 = vector.extract_strided_slice %108 {offsets = [0, 64], sizes = [8, 32], strides = [1, 1]} : vector<8x96xf32> to vector<8x32xf32>
    %129 = vector.extract_strided_slice %111 {offsets = [0, 64], sizes = [8, 32], strides = [1, 1]} : vector<8x96xf32> to vector<8x32xf32>
    %130 = arith.mulf %119, %129 : vector<8x32xf32>
    %131 = arith.addf %128, %130 : vector<8x32xf32>
    %132 = math.tanh %131 : vector<8x32xf32>
    %cst_38 = arith.constant 1.000000e+00 : f32
    %133 = vector.broadcast %cst_38 : f32 to vector<8x32xf32>
    %134 = arith.subf %133, %127 : vector<8x32xf32>
    %135 = arith.mulf %134, %132 : vector<8x32xf32>
    %136 = arith.mulf %127, %48 : vector<8x32xf32>
    %137 = arith.addf %135, %136 : vector<8x32xf32>
    %138 = vector.broadcast %105 : i32 to vector<8x1xi32>
    %139 = arith.cmpi slt, %138, %3 : vector<8x1xi32>
    %140 = vector.shape_cast %139 : vector<8x1xi1> to vector<8x1xi1>
    %141 = vector.broadcast %140 : vector<8x1xi1> to vector<8x32xi1>
    %142 = arith.select %141, %137, %48 : vector<8x32xi1>, vector<8x32xf32>
    %cst_39 = arith.constant 0.000000e+00 : f32
    %143 = vector.shape_cast %139 : vector<8x1xi1> to vector<8x1xi1>
    %144 = vector.broadcast %143 : vector<8x1xi1> to vector<8x32xi1>
    %145 = vector.broadcast %cst_39 : f32 to vector<8x32xf32>
    %146 = arith.select %144, %137, %145 : vector<8x32xi1>, vector<8x32xf32>
    %147 = arith.index_cast %c1_i32 : i32 to index
    %c0_40 = arith.constant 0 : index
    %c0_41 = arith.constant 0 : index
    %148 = vector.load %arg10[%147, %c0_40, %c0_41] : memref<8x8x32xf32, #tpu.memory_space<vmem>>, vector<1x8x32xf32>
    %149 = vector.shape_cast %148 : vector<1x8x32xf32> to vector<8x32xf32>
    %150 = vector.shape_cast %146 : vector<8x32xf32> to vector<1x8x32xf32>
    tpu.vector_store %arg10[%147, %c0_40, %c0_41], %150 {strides = array<i32>} : memref<8x8x32xf32, #tpu.memory_space<vmem>>, vector<1x8x32xf32>,
    %c7_i32_42 = arith.constant 7 : i32
    %151 = arith.subi %c7_i32_42, %c1_i32 : i32
    %152 = arith.index_cast %151 : i32 to index
    %c0_43 = arith.constant 0 : index
    %c0_44 = arith.constant 0 : index
    %153 = vector.load %arg3[%152, %c0_43, %c0_44] : memref<8x8x96xf32, #tpu.memory_space<vmem>>, vector<1x8x96xf32>
    %154 = vector.shape_cast %153 : vector<1x8x96xf32> to vector<8x96xf32>
    %cst_45 = arith.constant dense<0.000000e+00> : vector<8x96xf32>
    %155 = tpu.matmul %95, %6, %cst_45 {dimension_numbers = #tpu.dot_dimension_numbers<[1], [0], [0], [1], [0, 0, 1, 1], [], []>, precision = #tpu.contract_precision<fp32>} : vector<8x32xf32>, vector<32x96xf32>, vector<8x96xf32> -> vector<8x96xf32>
    %156 = vector.broadcast %7 : vector<1x96xf32> to vector<8x96xf32>
    %157 = arith.addf %155, %156 : vector<8x96xf32>
    %158 = vector.extract_strided_slice %154 {offsets = [0, 0], sizes = [8, 32], strides = [1, 1]} : vector<8x96xf32> to vector<8x32xf32>
    %159 = vector.extract_strided_slice %157 {offsets = [0, 0], sizes = [8, 32], strides = [1, 1]} : vector<8x96xf32> to vector<8x32xf32>
    %160 = arith.addf %158, %159 : vector<8x32xf32>
    %161 = arith.negf %160 : vector<8x32xf32>
    %162 = math.exp %161 : vector<8x32xf32>
    %cst_46 = arith.constant 1.000000e+00 : f32
    %163 = vector.broadcast %cst_46 : f32 to vector<8x32xf32>
    %164 = arith.addf %163, %162 : vector<8x32xf32>
    %165 = arith.divf %163, %164 : vector<8x32xf32>
    %166 = vector.extract_strided_slice %154 {offsets = [0, 32], sizes = [8, 32], strides = [1, 1]} : vector<8x96xf32> to vector<8x32xf32>
    %167 = vector.extract_strided_slice %157 {offsets = [0, 32], sizes = [8, 32], strides = [1, 1]} : vector<8x96xf32> to vector<8x32xf32>
    %168 = arith.addf %166, %167 : vector<8x32xf32>
    %169 = arith.negf %168 : vector<8x32xf32>
    %170 = math.exp %169 : vector<8x32xf32>
    %cst_47 = arith.constant 1.000000e+00 : f32
    %171 = vector.broadcast %cst_47 : f32 to vector<8x32xf32>
    %172 = arith.addf %171, %170 : vector<8x32xf32>
    %173 = arith.divf %171, %172 : vector<8x32xf32>
    %174 = vector.extract_strided_slice %154 {offsets = [0, 64], sizes = [8, 32], strides = [1, 1]} : vector<8x96xf32> to vector<8x32xf32>
    %175 = vector.extract_strided_slice %157 {offsets = [0, 64], sizes = [8, 32], strides = [1, 1]} : vector<8x96xf32> to vector<8x32xf32>
    %176 = arith.mulf %165, %175 : vector<8x32xf32>
    %177 = arith.addf %174, %176 : vector<8x32xf32>
    %178 = math.tanh %177 : vector<8x32xf32>
    %cst_48 = arith.constant 1.000000e+00 : f32
    %179 = vector.broadcast %cst_48 : f32 to vector<8x32xf32>
    %180 = arith.subf %179, %173 : vector<8x32xf32>
    %181 = arith.mulf %180, %178 : vector<8x32xf32>
    %182 = arith.mulf %173, %95 : vector<8x32xf32>
    %183 = arith.addf %181, %182 : vector<8x32xf32>
    %c15_i32_49 = arith.constant 15 : i32
    %184 = arith.subi %c15_i32_49, %105 : i32
    %185 = vector.broadcast %184 : i32 to vector<8x1xi32>
    %186 = arith.cmpi slt, %185, %3 : vector<8x1xi32>
    %187 = vector.shape_cast %186 : vector<8x1xi1> to vector<8x1xi1>
    %188 = vector.broadcast %187 : vector<8x1xi1> to vector<8x32xi1>
    %189 = arith.select %188, %183, %95 : vector<8x32xi1>, vector<8x32xf32>
    %cst_50 = arith.constant 0.000000e+00 : f32
    %190 = vector.shape_cast %186 : vector<8x1xi1> to vector<8x1xi1>
    %191 = vector.broadcast %190 : vector<8x1xi1> to vector<8x32xi1>
    %192 = vector.broadcast %cst_50 : f32 to vector<8x32xf32>
    %193 = arith.select %191, %183, %192 : vector<8x32xi1>, vector<8x32xf32>
    %194 = arith.index_cast %151 : i32 to index
    %c0_51 = arith.constant 0 : index
    %c0_52 = arith.constant 0 : index
    %195 = vector.load %arg11[%194, %c0_51, %c0_52] : memref<8x8x32xf32, #tpu.memory_space<vmem>>, vector<1x8x32xf32>
    %196 = vector.shape_cast %195 : vector<1x8x32xf32> to vector<8x32xf32>
    %197 = vector.shape_cast %193 : vector<8x32xf32> to vector<1x8x32xf32>
    tpu.vector_store %arg11[%194, %c0_51, %c0_52], %197 {strides = array<i32>} : memref<8x8x32xf32, #tpu.memory_space<vmem>>, vector<1x8x32xf32>,
    %c2_i32 = arith.constant 2 : i32
    %c8_i32_53 = arith.constant 8 : i32
    %198 = arith.muli %arg0, %c8_i32_53 : i32
    %199 = arith.addi %198, %c2_i32 : i32
    %200 = arith.index_cast %c2_i32 : i32 to index
    %c0_54 = arith.constant 0 : index
    %c0_55 = arith.constant 0 : index
    %201 = vector.load %arg2[%200, %c0_54, %c0_55] : memref<8x8x96xf32, #tpu.memory_space<vmem>>, vector<1x8x96xf32>
    %202 = vector.shape_cast %201 : vector<1x8x96xf32> to vector<8x96xf32>
    %cst_56 = arith.constant dense<0.000000e+00> : vector<8x96xf32>
    %203 = tpu.matmul %142, %4, %cst_56 {dimension_numbers = #tpu.dot_dimension_numbers<[1], [0], [0], [1], [0, 0, 1, 1], [], []>, precision = #tpu.contract_precision<fp32>} : vector<8x32xf32>, vector<32x96xf32>, vector<8x96xf32> -> vector<8x96xf32>
    %204 = vector.broadcast %5 : vector<1x96xf32> to vector<8x96xf32>
    %205 = arith.addf %203, %204 : vector<8x96xf32>
    %206 = vector.extract_strided_slice %202 {offsets = [0, 0], sizes = [8, 32], strides = [1, 1]} : vector<8x96xf32> to vector<8x32xf32>
    %207 = vector.extract_strided_slice %205 {offsets = [0, 0], sizes = [8, 32], strides = [1, 1]} : vector<8x96xf32> to vector<8x32xf32>
    %208 = arith.addf %206, %207 : vector<8x32xf32>
    %209 = arith.negf %208 : vector<8x32xf32>
    %210 = math.exp %209 : vector<8x32xf32>
    %cst_57 = arith.constant 1.000000e+00 : f32
    %211 = vector.broadcast %cst_57 : f32 to vector<8x32xf32>
    %212 = arith.addf %211, %210 : vector<8x32xf32>
    %213 = arith.divf %211, %212 : vector<8x32xf32>
    %214 = vector.extract_strided_slice %202 {offsets = [0, 32], sizes = [8, 32], strides = [1, 1]} : vector<8x96xf32> to vector<8x32xf32>
    %215 = vector.extract_strided_slice %205 {offsets = [0, 32], sizes = [8, 32], strides = [1, 1]} : vector<8x96xf32> to vector<8x32xf32>
    %216 = arith.addf %214, %215 : vector<8x32xf32>
    %217 = arith.negf %216 : vector<8x32xf32>
    %218 = math.exp %217 : vector<8x32xf32>
    %cst_58 = arith.constant 1.000000e+00 : f32
    %219 = vector.broadcast %cst_58 : f32 to vector<8x32xf32>
    %220 = arith.addf %219, %218 : vector<8x32xf32>
    %221 = arith.divf %219, %220 : vector<8x32xf32>
    %222 = vector.extract_strided_slice %202 {offsets = [0, 64], sizes = [8, 32], strides = [1, 1]} : vector<8x96xf32> to vector<8x32xf32>
    %223 = vector.extract_strided_slice %205 {offsets = [0, 64], sizes = [8, 32], strides = [1, 1]} : vector<8x96xf32> to vector<8x32xf32>
    %224 = arith.mulf %213, %223 : vector<8x32xf32>
    %225 = arith.addf %222, %224 : vector<8x32xf32>
    %226 = math.tanh %225 : vector<8x32xf32>
    %cst_59 = arith.constant 1.000000e+00 : f32
    %227 = vector.broadcast %cst_59 : f32 to vector<8x32xf32>
    %228 = arith.subf %227, %221 : vector<8x32xf32>
    %229 = arith.mulf %228, %226 : vector<8x32xf32>
    %230 = arith.mulf %221, %142 : vector<8x32xf32>
    %231 = arith.addf %229, %230 : vector<8x32xf32>
    %232 = vector.broadcast %199 : i32 to vector<8x1xi32>
    %233 = arith.cmpi slt, %232, %3 : vector<8x1xi32>
    %234 = vector.shape_cast %233 : vector<8x1xi1> to vector<8x1xi1>
    %235 = vector.broadcast %234 : vector<8x1xi1> to vector<8x32xi1>
    %236 = arith.select %235, %231, %142 : vector<8x32xi1>, vector<8x32xf32>
    %cst_60 = arith.constant 0.000000e+00 : f32
    %237 = vector.shape_cast %233 : vector<8x1xi1> to vector<8x1xi1>
    %238 = vector.broadcast %237 : vector<8x1xi1> to vector<8x32xi1>
    %239 = vector.broadcast %cst_60 : f32 to vector<8x32xf32>
    %240 = arith.select %238, %231, %239 : vector<8x32xi1>, vector<8x32xf32>
    %241 = arith.index_cast %c2_i32 : i32 to index
    %c0_61 = arith.constant 0 : index
    %c0_62 = arith.constant 0 : index
    %242 = vector.load %arg10[%241, %c0_61, %c0_62] : memref<8x8x32xf32, #tpu.memory_space<vmem>>, vector<1x8x32xf32>
    %243 = vector.shape_cast %242 : vector<1x8x32xf32> to vector<8x32xf32>
    %244 = vector.shape_cast %240 : vector<8x32xf32> to vector<1x8x32xf32>
    tpu.vector_store %arg10[%241, %c0_61, %c0_62], %244 {strides = array<i32>} : memref<8x8x32xf32, #tpu.memory_space<vmem>>, vector<1x8x32xf32>,
    %c7_i32_63 = arith.constant 7 : i32
    %245 = arith.subi %c7_i32_63, %c2_i32 : i32
    %246 = arith.index_cast %245 : i32 to index
    %c0_64 = arith.constant 0 : index
    %c0_65 = arith.constant 0 : index
    %247 = vector.load %arg3[%246, %c0_64, %c0_65] : memref<8x8x96xf32, #tpu.memory_space<vmem>>, vector<1x8x96xf32>
    %248 = vector.shape_cast %247 : vector<1x8x96xf32> to vector<8x96xf32>
    %cst_66 = arith.constant dense<0.000000e+00> : vector<8x96xf32>
    %249 = tpu.matmul %189, %6, %cst_66 {dimension_numbers = #tpu.dot_dimension_numbers<[1], [0], [0], [1], [0, 0, 1, 1], [], []>, precision = #tpu.contract_precision<fp32>} : vector<8x32xf32>, vector<32x96xf32>, vector<8x96xf32> -> vector<8x96xf32>
    %250 = vector.broadcast %7 : vector<1x96xf32> to vector<8x96xf32>
    %251 = arith.addf %249, %250 : vector<8x96xf32>
    %252 = vector.extract_strided_slice %248 {offsets = [0, 0], sizes = [8, 32], strides = [1, 1]} : vector<8x96xf32> to vector<8x32xf32>
    %253 = vector.extract_strided_slice %251 {offsets = [0, 0], sizes = [8, 32], strides = [1, 1]} : vector<8x96xf32> to vector<8x32xf32>
    %254 = arith.addf %252, %253 : vector<8x32xf32>
    %255 = arith.negf %254 : vector<8x32xf32>
    %256 = math.exp %255 : vector<8x32xf32>
    %cst_67 = arith.constant 1.000000e+00 : f32
    %257 = vector.broadcast %cst_67 : f32 to vector<8x32xf32>
    %258 = arith.addf %257, %256 : vector<8x32xf32>
    %259 = arith.divf %257, %258 : vector<8x32xf32>
    %260 = vector.extract_strided_slice %248 {offsets = [0, 32], sizes = [8, 32], strides = [1, 1]} : vector<8x96xf32> to vector<8x32xf32>
    %261 = vector.extract_strided_slice %251 {offsets = [0, 32], sizes = [8, 32], strides = [1, 1]} : vector<8x96xf32> to vector<8x32xf32>
    %262 = arith.addf %260, %261 : vector<8x32xf32>
    %263 = arith.negf %262 : vector<8x32xf32>
    %264 = math.exp %263 : vector<8x32xf32>
    %cst_68 = arith.constant 1.000000e+00 : f32
    %265 = vector.broadcast %cst_68 : f32 to vector<8x32xf32>
    %266 = arith.addf %265, %264 : vector<8x32xf32>
    %267 = arith.divf %265, %266 : vector<8x32xf32>
    %268 = vector.extract_strided_slice %248 {offsets = [0, 64], sizes = [8, 32], strides = [1, 1]} : vector<8x96xf32> to vector<8x32xf32>
    %269 = vector.extract_strided_slice %251 {offsets = [0, 64], sizes = [8, 32], strides = [1, 1]} : vector<8x96xf32> to vector<8x32xf32>
    %270 = arith.mulf %259, %269 : vector<8x32xf32>
    %271 = arith.addf %268, %270 : vector<8x32xf32>
    %272 = math.tanh %271 : vector<8x32xf32>
    %cst_69 = arith.constant 1.000000e+00 : f32
    %273 = vector.broadcast %cst_69 : f32 to vector<8x32xf32>
    %274 = arith.subf %273, %267 : vector<8x32xf32>
    %275 = arith.mulf %274, %272 : vector<8x32xf32>
    %276 = arith.mulf %267, %189 : vector<8x32xf32>
    %277 = arith.addf %275, %276 : vector<8x32xf32>
    %c15_i32_70 = arith.constant 15 : i32
    %278 = arith.subi %c15_i32_70, %199 : i32
    %279 = vector.broadcast %278 : i32 to vector<8x1xi32>
    %280 = arith.cmpi slt, %279, %3 : vector<8x1xi32>
    %281 = vector.shape_cast %280 : vector<8x1xi1> to vector<8x1xi1>
    %282 = vector.broadcast %281 : vector<8x1xi1> to vector<8x32xi1>
    %283 = arith.select %282, %277, %189 : vector<8x32xi1>, vector<8x32xf32>
    %cst_71 = arith.constant 0.000000e+00 : f32
    %284 = vector.shape_cast %280 : vector<8x1xi1> to vector<8x1xi1>
    %285 = vector.broadcast %284 : vector<8x1xi1> to vector<8x32xi1>
    %286 = vector.broadcast %cst_71 : f32 to vector<8x32xf32>
    %287 = arith.select %285, %277, %286 : vector<8x32xi1>, vector<8x32xf32>
    %288 = arith.index_cast %245 : i32 to index
    %c0_72 = arith.constant 0 : index
    %c0_73 = arith.constant 0 : index
    %289 = vector.load %arg11[%288, %c0_72, %c0_73] : memref<8x8x32xf32, #tpu.memory_space<vmem>>, vector<1x8x32xf32>
    %290 = vector.shape_cast %289 : vector<1x8x32xf32> to vector<8x32xf32>
    %291 = vector.shape_cast %287 : vector<8x32xf32> to vector<1x8x32xf32>
    tpu.vector_store %arg11[%288, %c0_72, %c0_73], %291 {strides = array<i32>} : memref<8x8x32xf32, #tpu.memory_space<vmem>>, vector<1x8x32xf32>,
    %c3_i32 = arith.constant 3 : i32
    %c8_i32_74 = arith.constant 8 : i32
    %292 = arith.muli %arg0, %c8_i32_74 : i32
    %293 = arith.addi %292, %c3_i32 : i32
    %294 = arith.index_cast %c3_i32 : i32 to index
    %c0_75 = arith.constant 0 : index
    %c0_76 = arith.constant 0 : index
    %295 = vector.load %arg2[%294, %c0_75, %c0_76] : memref<8x8x96xf32, #tpu.memory_space<vmem>>, vector<1x8x96xf32>
    %296 = vector.shape_cast %295 : vector<1x8x96xf32> to vector<8x96xf32>
    %cst_77 = arith.constant dense<0.000000e+00> : vector<8x96xf32>
    %297 = tpu.matmul %236, %4, %cst_77 {dimension_numbers = #tpu.dot_dimension_numbers<[1], [0], [0], [1], [0, 0, 1, 1], [], []>, precision = #tpu.contract_precision<fp32>} : vector<8x32xf32>, vector<32x96xf32>, vector<8x96xf32> -> vector<8x96xf32>
    %298 = vector.broadcast %5 : vector<1x96xf32> to vector<8x96xf32>
    %299 = arith.addf %297, %298 : vector<8x96xf32>
    %300 = vector.extract_strided_slice %296 {offsets = [0, 0], sizes = [8, 32], strides = [1, 1]} : vector<8x96xf32> to vector<8x32xf32>
    %301 = vector.extract_strided_slice %299 {offsets = [0, 0], sizes = [8, 32], strides = [1, 1]} : vector<8x96xf32> to vector<8x32xf32>
    %302 = arith.addf %300, %301 : vector<8x32xf32>
    %303 = arith.negf %302 : vector<8x32xf32>
    %304 = math.exp %303 : vector<8x32xf32>
    %cst_78 = arith.constant 1.000000e+00 : f32
    %305 = vector.broadcast %cst_78 : f32 to vector<8x32xf32>
    %306 = arith.addf %305, %304 : vector<8x32xf32>
    %307 = arith.divf %305, %306 : vector<8x32xf32>
    %308 = vector.extract_strided_slice %296 {offsets = [0, 32], sizes = [8, 32], strides = [1, 1]} : vector<8x96xf32> to vector<8x32xf32>
    %309 = vector.extract_strided_slice %299 {offsets = [0, 32], sizes = [8, 32], strides = [1, 1]} : vector<8x96xf32> to vector<8x32xf32>
    %310 = arith.addf %308, %309 : vector<8x32xf32>
    %311 = arith.negf %310 : vector<8x32xf32>
    %312 = math.exp %311 : vector<8x32xf32>
    %cst_79 = arith.constant 1.000000e+00 : f32
    %313 = vector.broadcast %cst_79 : f32 to vector<8x32xf32>
    %314 = arith.addf %313, %312 : vector<8x32xf32>
    %315 = arith.divf %313, %314 : vector<8x32xf32>
    %316 = vector.extract_strided_slice %296 {offsets = [0, 64], sizes = [8, 32], strides = [1, 1]} : vector<8x96xf32> to vector<8x32xf32>
    %317 = vector.extract_strided_slice %299 {offsets = [0, 64], sizes = [8, 32], strides = [1, 1]} : vector<8x96xf32> to vector<8x32xf32>
    %318 = arith.mulf %307, %317 : vector<8x32xf32>
    %319 = arith.addf %316, %318 : vector<8x32xf32>
    %320 = math.tanh %319 : vector<8x32xf32>
    %cst_80 = arith.constant 1.000000e+00 : f32
    %321 = vector.broadcast %cst_80 : f32 to vector<8x32xf32>
    %322 = arith.subf %321, %315 : vector<8x32xf32>
    %323 = arith.mulf %322, %320 : vector<8x32xf32>
    %324 = arith.mulf %315, %236 : vector<8x32xf32>
    %325 = arith.addf %323, %324 : vector<8x32xf32>
    %326 = vector.broadcast %293 : i32 to vector<8x1xi32>
    %327 = arith.cmpi slt, %326, %3 : vector<8x1xi32>
    %328 = vector.shape_cast %327 : vector<8x1xi1> to vector<8x1xi1>
    %329 = vector.broadcast %328 : vector<8x1xi1> to vector<8x32xi1>
    %330 = arith.select %329, %325, %236 : vector<8x32xi1>, vector<8x32xf32>
    %cst_81 = arith.constant 0.000000e+00 : f32
    %331 = vector.shape_cast %327 : vector<8x1xi1> to vector<8x1xi1>
    %332 = vector.broadcast %331 : vector<8x1xi1> to vector<8x32xi1>
    %333 = vector.broadcast %cst_81 : f32 to vector<8x32xf32>
    %334 = arith.select %332, %325, %333 : vector<8x32xi1>, vector<8x32xf32>
    %335 = arith.index_cast %c3_i32 : i32 to index
    %c0_82 = arith.constant 0 : index
    %c0_83 = arith.constant 0 : index
    %336 = vector.load %arg10[%335, %c0_82, %c0_83] : memref<8x8x32xf32, #tpu.memory_space<vmem>>, vector<1x8x32xf32>
    %337 = vector.shape_cast %336 : vector<1x8x32xf32> to vector<8x32xf32>
    %338 = vector.shape_cast %334 : vector<8x32xf32> to vector<1x8x32xf32>
    tpu.vector_store %arg10[%335, %c0_82, %c0_83], %338 {strides = array<i32>} : memref<8x8x32xf32, #tpu.memory_space<vmem>>, vector<1x8x32xf32>,
    %c7_i32_84 = arith.constant 7 : i32
    %339 = arith.subi %c7_i32_84, %c3_i32 : i32
    %340 = arith.index_cast %339 : i32 to index
    %c0_85 = arith.constant 0 : index
    %c0_86 = arith.constant 0 : index
    %341 = vector.load %arg3[%340, %c0_85, %c0_86] : memref<8x8x96xf32, #tpu.memory_space<vmem>>, vector<1x8x96xf32>
    %342 = vector.shape_cast %341 : vector<1x8x96xf32> to vector<8x96xf32>
    %cst_87 = arith.constant dense<0.000000e+00> : vector<8x96xf32>
    %343 = tpu.matmul %283, %6, %cst_87 {dimension_numbers = #tpu.dot_dimension_numbers<[1], [0], [0], [1], [0, 0, 1, 1], [], []>, precision = #tpu.contract_precision<fp32>} : vector<8x32xf32>, vector<32x96xf32>, vector<8x96xf32> -> vector<8x96xf32>
    %344 = vector.broadcast %7 : vector<1x96xf32> to vector<8x96xf32>
    %345 = arith.addf %343, %344 : vector<8x96xf32>
    %346 = vector.extract_strided_slice %342 {offsets = [0, 0], sizes = [8, 32], strides = [1, 1]} : vector<8x96xf32> to vector<8x32xf32>
    %347 = vector.extract_strided_slice %345 {offsets = [0, 0], sizes = [8, 32], strides = [1, 1]} : vector<8x96xf32> to vector<8x32xf32>
    %348 = arith.addf %346, %347 : vector<8x32xf32>
    %349 = arith.negf %348 : vector<8x32xf32>
    %350 = math.exp %349 : vector<8x32xf32>
    %cst_88 = arith.constant 1.000000e+00 : f32
    %351 = vector.broadcast %cst_88 : f32 to vector<8x32xf32>
    %352 = arith.addf %351, %350 : vector<8x32xf32>
    %353 = arith.divf %351, %352 : vector<8x32xf32>
    %354 = vector.extract_strided_slice %342 {offsets = [0, 32], sizes = [8, 32], strides = [1, 1]} : vector<8x96xf32> to vector<8x32xf32>
    %355 = vector.extract_strided_slice %345 {offsets = [0, 32], sizes = [8, 32], strides = [1, 1]} : vector<8x96xf32> to vector<8x32xf32>
    %356 = arith.addf %354, %355 : vector<8x32xf32>
    %357 = arith.negf %356 : vector<8x32xf32>
    %358 = math.exp %357 : vector<8x32xf32>
    %cst_89 = arith.constant 1.000000e+00 : f32
    %359 = vector.broadcast %cst_89 : f32 to vector<8x32xf32>
    %360 = arith.addf %359, %358 : vector<8x32xf32>
    %361 = arith.divf %359, %360 : vector<8x32xf32>
    %362 = vector.extract_strided_slice %342 {offsets = [0, 64], sizes = [8, 32], strides = [1, 1]} : vector<8x96xf32> to vector<8x32xf32>
    %363 = vector.extract_strided_slice %345 {offsets = [0, 64], sizes = [8, 32], strides = [1, 1]} : vector<8x96xf32> to vector<8x32xf32>
    %364 = arith.mulf %353, %363 : vector<8x32xf32>
    %365 = arith.addf %362, %364 : vector<8x32xf32>
    %366 = math.tanh %365 : vector<8x32xf32>
    %cst_90 = arith.constant 1.000000e+00 : f32
    %367 = vector.broadcast %cst_90 : f32 to vector<8x32xf32>
    %368 = arith.subf %367, %361 : vector<8x32xf32>
    %369 = arith.mulf %368, %366 : vector<8x32xf32>
    %370 = arith.mulf %361, %283 : vector<8x32xf32>
    %371 = arith.addf %369, %370 : vector<8x32xf32>
    %c15_i32_91 = arith.constant 15 : i32
    %372 = arith.subi %c15_i32_91, %293 : i32
    %373 = vector.broadcast %372 : i32 to vector<8x1xi32>
    %374 = arith.cmpi slt, %373, %3 : vector<8x1xi32>
    %375 = vector.shape_cast %374 : vector<8x1xi1> to vector<8x1xi1>
    %376 = vector.broadcast %375 : vector<8x1xi1> to vector<8x32xi1>
    %377 = arith.select %376, %371, %283 : vector<8x32xi1>, vector<8x32xf32>
    %cst_92 = arith.constant 0.000000e+00 : f32
    %378 = vector.shape_cast %374 : vector<8x1xi1> to vector<8x1xi1>
    %379 = vector.broadcast %378 : vector<8x1xi1> to vector<8x32xi1>
    %380 = vector.broadcast %cst_92 : f32 to vector<8x32xf32>
    %381 = arith.select %379, %371, %380 : vector<8x32xi1>, vector<8x32xf32>
    %382 = arith.index_cast %339 : i32 to index
    %c0_93 = arith.constant 0 : index
    %c0_94 = arith.constant 0 : index
    %383 = vector.load %arg11[%382, %c0_93, %c0_94] : memref<8x8x32xf32, #tpu.memory_space<vmem>>, vector<1x8x32xf32>
    %384 = vector.shape_cast %383 : vector<1x8x32xf32> to vector<8x32xf32>
    %385 = vector.shape_cast %381 : vector<8x32xf32> to vector<1x8x32xf32>
    tpu.vector_store %arg11[%382, %c0_93, %c0_94], %385 {strides = array<i32>} : memref<8x8x32xf32, #tpu.memory_space<vmem>>, vector<1x8x32xf32>,
    %c4_i32 = arith.constant 4 : i32
    %c8_i32_95 = arith.constant 8 : i32
    %386 = arith.muli %arg0, %c8_i32_95 : i32
    %387 = arith.addi %386, %c4_i32 : i32
    %388 = arith.index_cast %c4_i32 : i32 to index
    %c0_96 = arith.constant 0 : index
    %c0_97 = arith.constant 0 : index
    %389 = vector.load %arg2[%388, %c0_96, %c0_97] : memref<8x8x96xf32, #tpu.memory_space<vmem>>, vector<1x8x96xf32>
    %390 = vector.shape_cast %389 : vector<1x8x96xf32> to vector<8x96xf32>
    %cst_98 = arith.constant dense<0.000000e+00> : vector<8x96xf32>
    %391 = tpu.matmul %330, %4, %cst_98 {dimension_numbers = #tpu.dot_dimension_numbers<[1], [0], [0], [1], [0, 0, 1, 1], [], []>, precision = #tpu.contract_precision<fp32>} : vector<8x32xf32>, vector<32x96xf32>, vector<8x96xf32> -> vector<8x96xf32>
    %392 = vector.broadcast %5 : vector<1x96xf32> to vector<8x96xf32>
    %393 = arith.addf %391, %392 : vector<8x96xf32>
    %394 = vector.extract_strided_slice %390 {offsets = [0, 0], sizes = [8, 32], strides = [1, 1]} : vector<8x96xf32> to vector<8x32xf32>
    %395 = vector.extract_strided_slice %393 {offsets = [0, 0], sizes = [8, 32], strides = [1, 1]} : vector<8x96xf32> to vector<8x32xf32>
    %396 = arith.addf %394, %395 : vector<8x32xf32>
    %397 = arith.negf %396 : vector<8x32xf32>
    %398 = math.exp %397 : vector<8x32xf32>
    %cst_99 = arith.constant 1.000000e+00 : f32
    %399 = vector.broadcast %cst_99 : f32 to vector<8x32xf32>
    %400 = arith.addf %399, %398 : vector<8x32xf32>
    %401 = arith.divf %399, %400 : vector<8x32xf32>
    %402 = vector.extract_strided_slice %390 {offsets = [0, 32], sizes = [8, 32], strides = [1, 1]} : vector<8x96xf32> to vector<8x32xf32>
    %403 = vector.extract_strided_slice %393 {offsets = [0, 32], sizes = [8, 32], strides = [1, 1]} : vector<8x96xf32> to vector<8x32xf32>
    %404 = arith.addf %402, %403 : vector<8x32xf32>
    %405 = arith.negf %404 : vector<8x32xf32>
    %406 = math.exp %405 : vector<8x32xf32>
    %cst_100 = arith.constant 1.000000e+00 : f32
    %407 = vector.broadcast %cst_100 : f32 to vector<8x32xf32>
    %408 = arith.addf %407, %406 : vector<8x32xf32>
    %409 = arith.divf %407, %408 : vector<8x32xf32>
    %410 = vector.extract_strided_slice %390 {offsets = [0, 64], sizes = [8, 32], strides = [1, 1]} : vector<8x96xf32> to vector<8x32xf32>
    %411 = vector.extract_strided_slice %393 {offsets = [0, 64], sizes = [8, 32], strides = [1, 1]} : vector<8x96xf32> to vector<8x32xf32>
    %412 = arith.mulf %401, %411 : vector<8x32xf32>
    %413 = arith.addf %410, %412 : vector<8x32xf32>
    %414 = math.tanh %413 : vector<8x32xf32>
    %cst_101 = arith.constant 1.000000e+00 : f32
    %415 = vector.broadcast %cst_101 : f32 to vector<8x32xf32>
    %416 = arith.subf %415, %409 : vector<8x32xf32>
    %417 = arith.mulf %416, %414 : vector<8x32xf32>
    %418 = arith.mulf %409, %330 : vector<8x32xf32>
    %419 = arith.addf %417, %418 : vector<8x32xf32>
    %420 = vector.broadcast %387 : i32 to vector<8x1xi32>
    %421 = arith.cmpi slt, %420, %3 : vector<8x1xi32>
    %422 = vector.shape_cast %421 : vector<8x1xi1> to vector<8x1xi1>
    %423 = vector.broadcast %422 : vector<8x1xi1> to vector<8x32xi1>
    %424 = arith.select %423, %419, %330 : vector<8x32xi1>, vector<8x32xf32>
    %cst_102 = arith.constant 0.000000e+00 : f32
    %425 = vector.shape_cast %421 : vector<8x1xi1> to vector<8x1xi1>
    %426 = vector.broadcast %425 : vector<8x1xi1> to vector<8x32xi1>
    %427 = vector.broadcast %cst_102 : f32 to vector<8x32xf32>
    %428 = arith.select %426, %419, %427 : vector<8x32xi1>, vector<8x32xf32>
    %429 = arith.index_cast %c4_i32 : i32 to index
    %c0_103 = arith.constant 0 : index
    %c0_104 = arith.constant 0 : index
    %430 = vector.load %arg10[%429, %c0_103, %c0_104] : memref<8x8x32xf32, #tpu.memory_space<vmem>>, vector<1x8x32xf32>
    %431 = vector.shape_cast %430 : vector<1x8x32xf32> to vector<8x32xf32>
    %432 = vector.shape_cast %428 : vector<8x32xf32> to vector<1x8x32xf32>
    tpu.vector_store %arg10[%429, %c0_103, %c0_104], %432 {strides = array<i32>} : memref<8x8x32xf32, #tpu.memory_space<vmem>>, vector<1x8x32xf32>,
    %c7_i32_105 = arith.constant 7 : i32
    %433 = arith.subi %c7_i32_105, %c4_i32 : i32
    %434 = arith.index_cast %433 : i32 to index
    %c0_106 = arith.constant 0 : index
    %c0_107 = arith.constant 0 : index
    %435 = vector.load %arg3[%434, %c0_106, %c0_107] : memref<8x8x96xf32, #tpu.memory_space<vmem>>, vector<1x8x96xf32>
    %436 = vector.shape_cast %435 : vector<1x8x96xf32> to vector<8x96xf32>
    %cst_108 = arith.constant dense<0.000000e+00> : vector<8x96xf32>
    %437 = tpu.matmul %377, %6, %cst_108 {dimension_numbers = #tpu.dot_dimension_numbers<[1], [0], [0], [1], [0, 0, 1, 1], [], []>, precision = #tpu.contract_precision<fp32>} : vector<8x32xf32>, vector<32x96xf32>, vector<8x96xf32> -> vector<8x96xf32>
    %438 = vector.broadcast %7 : vector<1x96xf32> to vector<8x96xf32>
    %439 = arith.addf %437, %438 : vector<8x96xf32>
    %440 = vector.extract_strided_slice %436 {offsets = [0, 0], sizes = [8, 32], strides = [1, 1]} : vector<8x96xf32> to vector<8x32xf32>
    %441 = vector.extract_strided_slice %439 {offsets = [0, 0], sizes = [8, 32], strides = [1, 1]} : vector<8x96xf32> to vector<8x32xf32>
    %442 = arith.addf %440, %441 : vector<8x32xf32>
    %443 = arith.negf %442 : vector<8x32xf32>
    %444 = math.exp %443 : vector<8x32xf32>
    %cst_109 = arith.constant 1.000000e+00 : f32
    %445 = vector.broadcast %cst_109 : f32 to vector<8x32xf32>
    %446 = arith.addf %445, %444 : vector<8x32xf32>
    %447 = arith.divf %445, %446 : vector<8x32xf32>
    %448 = vector.extract_strided_slice %436 {offsets = [0, 32], sizes = [8, 32], strides = [1, 1]} : vector<8x96xf32> to vector<8x32xf32>
    %449 = vector.extract_strided_slice %439 {offsets = [0, 32], sizes = [8, 32], strides = [1, 1]} : vector<8x96xf32> to vector<8x32xf32>
    %450 = arith.addf %448, %449 : vector<8x32xf32>
    %451 = arith.negf %450 : vector<8x32xf32>
    %452 = math.exp %451 : vector<8x32xf32>
    %cst_110 = arith.constant 1.000000e+00 : f32
    %453 = vector.broadcast %cst_110 : f32 to vector<8x32xf32>
    %454 = arith.addf %453, %452 : vector<8x32xf32>
    %455 = arith.divf %453, %454 : vector<8x32xf32>
    %456 = vector.extract_strided_slice %436 {offsets = [0, 64], sizes = [8, 32], strides = [1, 1]} : vector<8x96xf32> to vector<8x32xf32>
    %457 = vector.extract_strided_slice %439 {offsets = [0, 64], sizes = [8, 32], strides = [1, 1]} : vector<8x96xf32> to vector<8x32xf32>
    %458 = arith.mulf %447, %457 : vector<8x32xf32>
    %459 = arith.addf %456, %458 : vector<8x32xf32>
    %460 = math.tanh %459 : vector<8x32xf32>
    %cst_111 = arith.constant 1.000000e+00 : f32
    %461 = vector.broadcast %cst_111 : f32 to vector<8x32xf32>
    %462 = arith.subf %461, %455 : vector<8x32xf32>
    %463 = arith.mulf %462, %460 : vector<8x32xf32>
    %464 = arith.mulf %455, %377 : vector<8x32xf32>
    %465 = arith.addf %463, %464 : vector<8x32xf32>
    %c15_i32_112 = arith.constant 15 : i32
    %466 = arith.subi %c15_i32_112, %387 : i32
    %467 = vector.broadcast %466 : i32 to vector<8x1xi32>
    %468 = arith.cmpi slt, %467, %3 : vector<8x1xi32>
    %469 = vector.shape_cast %468 : vector<8x1xi1> to vector<8x1xi1>
    %470 = vector.broadcast %469 : vector<8x1xi1> to vector<8x32xi1>
    %471 = arith.select %470, %465, %377 : vector<8x32xi1>, vector<8x32xf32>
    %cst_113 = arith.constant 0.000000e+00 : f32
    %472 = vector.shape_cast %468 : vector<8x1xi1> to vector<8x1xi1>
    %473 = vector.broadcast %472 : vector<8x1xi1> to vector<8x32xi1>
    %474 = vector.broadcast %cst_113 : f32 to vector<8x32xf32>
    %475 = arith.select %473, %465, %474 : vector<8x32xi1>, vector<8x32xf32>
    %476 = arith.index_cast %433 : i32 to index
    %c0_114 = arith.constant 0 : index
    %c0_115 = arith.constant 0 : index
    %477 = vector.load %arg11[%476, %c0_114, %c0_115] : memref<8x8x32xf32, #tpu.memory_space<vmem>>, vector<1x8x32xf32>
    %478 = vector.shape_cast %477 : vector<1x8x32xf32> to vector<8x32xf32>
    %479 = vector.shape_cast %475 : vector<8x32xf32> to vector<1x8x32xf32>
    tpu.vector_store %arg11[%476, %c0_114, %c0_115], %479 {strides = array<i32>} : memref<8x8x32xf32, #tpu.memory_space<vmem>>, vector<1x8x32xf32>,
    %c5_i32 = arith.constant 5 : i32
    %c8_i32_116 = arith.constant 8 : i32
    %480 = arith.muli %arg0, %c8_i32_116 : i32
    %481 = arith.addi %480, %c5_i32 : i32
    %482 = arith.index_cast %c5_i32 : i32 to index
    %c0_117 = arith.constant 0 : index
    %c0_118 = arith.constant 0 : index
    %483 = vector.load %arg2[%482, %c0_117, %c0_118] : memref<8x8x96xf32, #tpu.memory_space<vmem>>, vector<1x8x96xf32>
    %484 = vector.shape_cast %483 : vector<1x8x96xf32> to vector<8x96xf32>
    %cst_119 = arith.constant dense<0.000000e+00> : vector<8x96xf32>
    %485 = tpu.matmul %424, %4, %cst_119 {dimension_numbers = #tpu.dot_dimension_numbers<[1], [0], [0], [1], [0, 0, 1, 1], [], []>, precision = #tpu.contract_precision<fp32>} : vector<8x32xf32>, vector<32x96xf32>, vector<8x96xf32> -> vector<8x96xf32>
    %486 = vector.broadcast %5 : vector<1x96xf32> to vector<8x96xf32>
    %487 = arith.addf %485, %486 : vector<8x96xf32>
    %488 = vector.extract_strided_slice %484 {offsets = [0, 0], sizes = [8, 32], strides = [1, 1]} : vector<8x96xf32> to vector<8x32xf32>
    %489 = vector.extract_strided_slice %487 {offsets = [0, 0], sizes = [8, 32], strides = [1, 1]} : vector<8x96xf32> to vector<8x32xf32>
    %490 = arith.addf %488, %489 : vector<8x32xf32>
    %491 = arith.negf %490 : vector<8x32xf32>
    %492 = math.exp %491 : vector<8x32xf32>
    %cst_120 = arith.constant 1.000000e+00 : f32
    %493 = vector.broadcast %cst_120 : f32 to vector<8x32xf32>
    %494 = arith.addf %493, %492 : vector<8x32xf32>
    %495 = arith.divf %493, %494 : vector<8x32xf32>
    %496 = vector.extract_strided_slice %484 {offsets = [0, 32], sizes = [8, 32], strides = [1, 1]} : vector<8x96xf32> to vector<8x32xf32>
    %497 = vector.extract_strided_slice %487 {offsets = [0, 32], sizes = [8, 32], strides = [1, 1]} : vector<8x96xf32> to vector<8x32xf32>
    %498 = arith.addf %496, %497 : vector<8x32xf32>
    %499 = arith.negf %498 : vector<8x32xf32>
    %500 = math.exp %499 : vector<8x32xf32>
    %cst_121 = arith.constant 1.000000e+00 : f32
    %501 = vector.broadcast %cst_121 : f32 to vector<8x32xf32>
    %502 = arith.addf %501, %500 : vector<8x32xf32>
    %503 = arith.divf %501, %502 : vector<8x32xf32>
    %504 = vector.extract_strided_slice %484 {offsets = [0, 64], sizes = [8, 32], strides = [1, 1]} : vector<8x96xf32> to vector<8x32xf32>
    %505 = vector.extract_strided_slice %487 {offsets = [0, 64], sizes = [8, 32], strides = [1, 1]} : vector<8x96xf32> to vector<8x32xf32>
    %506 = arith.mulf %495, %505 : vector<8x32xf32>
    %507 = arith.addf %504, %506 : vector<8x32xf32>
    %508 = math.tanh %507 : vector<8x32xf32>
    %cst_122 = arith.constant 1.000000e+00 : f32
    %509 = vector.broadcast %cst_122 : f32 to vector<8x32xf32>
    %510 = arith.subf %509, %503 : vector<8x32xf32>
    %511 = arith.mulf %510, %508 : vector<8x32xf32>
    %512 = arith.mulf %503, %424 : vector<8x32xf32>
    %513 = arith.addf %511, %512 : vector<8x32xf32>
    %514 = vector.broadcast %481 : i32 to vector<8x1xi32>
    %515 = arith.cmpi slt, %514, %3 : vector<8x1xi32>
    %516 = vector.shape_cast %515 : vector<8x1xi1> to vector<8x1xi1>
    %517 = vector.broadcast %516 : vector<8x1xi1> to vector<8x32xi1>
    %518 = arith.select %517, %513, %424 : vector<8x32xi1>, vector<8x32xf32>
    %cst_123 = arith.constant 0.000000e+00 : f32
    %519 = vector.shape_cast %515 : vector<8x1xi1> to vector<8x1xi1>
    %520 = vector.broadcast %519 : vector<8x1xi1> to vector<8x32xi1>
    %521 = vector.broadcast %cst_123 : f32 to vector<8x32xf32>
    %522 = arith.select %520, %513, %521 : vector<8x32xi1>, vector<8x32xf32>
    %523 = arith.index_cast %c5_i32 : i32 to index
    %c0_124 = arith.constant 0 : index
    %c0_125 = arith.constant 0 : index
    %524 = vector.load %arg10[%523, %c0_124, %c0_125] : memref<8x8x32xf32, #tpu.memory_space<vmem>>, vector<1x8x32xf32>
    %525 = vector.shape_cast %524 : vector<1x8x32xf32> to vector<8x32xf32>
    %526 = vector.shape_cast %522 : vector<8x32xf32> to vector<1x8x32xf32>
    tpu.vector_store %arg10[%523, %c0_124, %c0_125], %526 {strides = array<i32>} : memref<8x8x32xf32, #tpu.memory_space<vmem>>, vector<1x8x32xf32>,
    %c7_i32_126 = arith.constant 7 : i32
    %527 = arith.subi %c7_i32_126, %c5_i32 : i32
    %528 = arith.index_cast %527 : i32 to index
    %c0_127 = arith.constant 0 : index
    %c0_128 = arith.constant 0 : index
    %529 = vector.load %arg3[%528, %c0_127, %c0_128] : memref<8x8x96xf32, #tpu.memory_space<vmem>>, vector<1x8x96xf32>
    %530 = vector.shape_cast %529 : vector<1x8x96xf32> to vector<8x96xf32>
    %cst_129 = arith.constant dense<0.000000e+00> : vector<8x96xf32>
    %531 = tpu.matmul %471, %6, %cst_129 {dimension_numbers = #tpu.dot_dimension_numbers<[1], [0], [0], [1], [0, 0, 1, 1], [], []>, precision = #tpu.contract_precision<fp32>} : vector<8x32xf32>, vector<32x96xf32>, vector<8x96xf32> -> vector<8x96xf32>
    %532 = vector.broadcast %7 : vector<1x96xf32> to vector<8x96xf32>
    %533 = arith.addf %531, %532 : vector<8x96xf32>
    %534 = vector.extract_strided_slice %530 {offsets = [0, 0], sizes = [8, 32], strides = [1, 1]} : vector<8x96xf32> to vector<8x32xf32>
    %535 = vector.extract_strided_slice %533 {offsets = [0, 0], sizes = [8, 32], strides = [1, 1]} : vector<8x96xf32> to vector<8x32xf32>
    %536 = arith.addf %534, %535 : vector<8x32xf32>
    %537 = arith.negf %536 : vector<8x32xf32>
    %538 = math.exp %537 : vector<8x32xf32>
    %cst_130 = arith.constant 1.000000e+00 : f32
    %539 = vector.broadcast %cst_130 : f32 to vector<8x32xf32>
    %540 = arith.addf %539, %538 : vector<8x32xf32>
    %541 = arith.divf %539, %540 : vector<8x32xf32>
    %542 = vector.extract_strided_slice %530 {offsets = [0, 32], sizes = [8, 32], strides = [1, 1]} : vector<8x96xf32> to vector<8x32xf32>
    %543 = vector.extract_strided_slice %533 {offsets = [0, 32], sizes = [8, 32], strides = [1, 1]} : vector<8x96xf32> to vector<8x32xf32>
    %544 = arith.addf %542, %543 : vector<8x32xf32>
    %545 = arith.negf %544 : vector<8x32xf32>
    %546 = math.exp %545 : vector<8x32xf32>
    %cst_131 = arith.constant 1.000000e+00 : f32
    %547 = vector.broadcast %cst_131 : f32 to vector<8x32xf32>
    %548 = arith.addf %547, %546 : vector<8x32xf32>
    %549 = arith.divf %547, %548 : vector<8x32xf32>
    %550 = vector.extract_strided_slice %530 {offsets = [0, 64], sizes = [8, 32], strides = [1, 1]} : vector<8x96xf32> to vector<8x32xf32>
    %551 = vector.extract_strided_slice %533 {offsets = [0, 64], sizes = [8, 32], strides = [1, 1]} : vector<8x96xf32> to vector<8x32xf32>
    %552 = arith.mulf %541, %551 : vector<8x32xf32>
    %553 = arith.addf %550, %552 : vector<8x32xf32>
    %554 = math.tanh %553 : vector<8x32xf32>
    %cst_132 = arith.constant 1.000000e+00 : f32
    %555 = vector.broadcast %cst_132 : f32 to vector<8x32xf32>
    %556 = arith.subf %555, %549 : vector<8x32xf32>
    %557 = arith.mulf %556, %554 : vector<8x32xf32>
    %558 = arith.mulf %549, %471 : vector<8x32xf32>
    %559 = arith.addf %557, %558 : vector<8x32xf32>
    %c15_i32_133 = arith.constant 15 : i32
    %560 = arith.subi %c15_i32_133, %481 : i32
    %561 = vector.broadcast %560 : i32 to vector<8x1xi32>
    %562 = arith.cmpi slt, %561, %3 : vector<8x1xi32>
    %563 = vector.shape_cast %562 : vector<8x1xi1> to vector<8x1xi1>
    %564 = vector.broadcast %563 : vector<8x1xi1> to vector<8x32xi1>
    %565 = arith.select %564, %559, %471 : vector<8x32xi1>, vector<8x32xf32>
    %cst_134 = arith.constant 0.000000e+00 : f32
    %566 = vector.shape_cast %562 : vector<8x1xi1> to vector<8x1xi1>
    %567 = vector.broadcast %566 : vector<8x1xi1> to vector<8x32xi1>
    %568 = vector.broadcast %cst_134 : f32 to vector<8x32xf32>
    %569 = arith.select %567, %559, %568 : vector<8x32xi1>, vector<8x32xf32>
    %570 = arith.index_cast %527 : i32 to index
    %c0_135 = arith.constant 0 : index
    %c0_136 = arith.constant 0 : index
    %571 = vector.load %arg11[%570, %c0_135, %c0_136] : memref<8x8x32xf32, #tpu.memory_space<vmem>>, vector<1x8x32xf32>
    %572 = vector.shape_cast %571 : vector<1x8x32xf32> to vector<8x32xf32>
    %573 = vector.shape_cast %569 : vector<8x32xf32> to vector<1x8x32xf32>
    tpu.vector_store %arg11[%570, %c0_135, %c0_136], %573 {strides = array<i32>} : memref<8x8x32xf32, #tpu.memory_space<vmem>>, vector<1x8x32xf32>,
    %c6_i32 = arith.constant 6 : i32
    %c8_i32_137 = arith.constant 8 : i32
    %574 = arith.muli %arg0, %c8_i32_137 : i32
    %575 = arith.addi %574, %c6_i32 : i32
    %576 = arith.index_cast %c6_i32 : i32 to index
    %c0_138 = arith.constant 0 : index
    %c0_139 = arith.constant 0 : index
    %577 = vector.load %arg2[%576, %c0_138, %c0_139] : memref<8x8x96xf32, #tpu.memory_space<vmem>>, vector<1x8x96xf32>
    %578 = vector.shape_cast %577 : vector<1x8x96xf32> to vector<8x96xf32>
    %cst_140 = arith.constant dense<0.000000e+00> : vector<8x96xf32>
    %579 = tpu.matmul %518, %4, %cst_140 {dimension_numbers = #tpu.dot_dimension_numbers<[1], [0], [0], [1], [0, 0, 1, 1], [], []>, precision = #tpu.contract_precision<fp32>} : vector<8x32xf32>, vector<32x96xf32>, vector<8x96xf32> -> vector<8x96xf32>
    %580 = vector.broadcast %5 : vector<1x96xf32> to vector<8x96xf32>
    %581 = arith.addf %579, %580 : vector<8x96xf32>
    %582 = vector.extract_strided_slice %578 {offsets = [0, 0], sizes = [8, 32], strides = [1, 1]} : vector<8x96xf32> to vector<8x32xf32>
    %583 = vector.extract_strided_slice %581 {offsets = [0, 0], sizes = [8, 32], strides = [1, 1]} : vector<8x96xf32> to vector<8x32xf32>
    %584 = arith.addf %582, %583 : vector<8x32xf32>
    %585 = arith.negf %584 : vector<8x32xf32>
    %586 = math.exp %585 : vector<8x32xf32>
    %cst_141 = arith.constant 1.000000e+00 : f32
    %587 = vector.broadcast %cst_141 : f32 to vector<8x32xf32>
    %588 = arith.addf %587, %586 : vector<8x32xf32>
    %589 = arith.divf %587, %588 : vector<8x32xf32>
    %590 = vector.extract_strided_slice %578 {offsets = [0, 32], sizes = [8, 32], strides = [1, 1]} : vector<8x96xf32> to vector<8x32xf32>
    %591 = vector.extract_strided_slice %581 {offsets = [0, 32], sizes = [8, 32], strides = [1, 1]} : vector<8x96xf32> to vector<8x32xf32>
    %592 = arith.addf %590, %591 : vector<8x32xf32>
    %593 = arith.negf %592 : vector<8x32xf32>
    %594 = math.exp %593 : vector<8x32xf32>
    %cst_142 = arith.constant 1.000000e+00 : f32
    %595 = vector.broadcast %cst_142 : f32 to vector<8x32xf32>
    %596 = arith.addf %595, %594 : vector<8x32xf32>
    %597 = arith.divf %595, %596 : vector<8x32xf32>
    %598 = vector.extract_strided_slice %578 {offsets = [0, 64], sizes = [8, 32], strides = [1, 1]} : vector<8x96xf32> to vector<8x32xf32>
    %599 = vector.extract_strided_slice %581 {offsets = [0, 64], sizes = [8, 32], strides = [1, 1]} : vector<8x96xf32> to vector<8x32xf32>
    %600 = arith.mulf %589, %599 : vector<8x32xf32>
    %601 = arith.addf %598, %600 : vector<8x32xf32>
    %602 = math.tanh %601 : vector<8x32xf32>
    %cst_143 = arith.constant 1.000000e+00 : f32
    %603 = vector.broadcast %cst_143 : f32 to vector<8x32xf32>
    %604 = arith.subf %603, %597 : vector<8x32xf32>
    %605 = arith.mulf %604, %602 : vector<8x32xf32>
    %606 = arith.mulf %597, %518 : vector<8x32xf32>
    %607 = arith.addf %605, %606 : vector<8x32xf32>
    %608 = vector.broadcast %575 : i32 to vector<8x1xi32>
    %609 = arith.cmpi slt, %608, %3 : vector<8x1xi32>
    %610 = vector.shape_cast %609 : vector<8x1xi1> to vector<8x1xi1>
    %611 = vector.broadcast %610 : vector<8x1xi1> to vector<8x32xi1>
    %612 = arith.select %611, %607, %518 : vector<8x32xi1>, vector<8x32xf32>
    %cst_144 = arith.constant 0.000000e+00 : f32
    %613 = vector.shape_cast %609 : vector<8x1xi1> to vector<8x1xi1>
    %614 = vector.broadcast %613 : vector<8x1xi1> to vector<8x32xi1>
    %615 = vector.broadcast %cst_144 : f32 to vector<8x32xf32>
    %616 = arith.select %614, %607, %615 : vector<8x32xi1>, vector<8x32xf32>
    %617 = arith.index_cast %c6_i32 : i32 to index
    %c0_145 = arith.constant 0 : index
    %c0_146 = arith.constant 0 : index
    %618 = vector.load %arg10[%617, %c0_145, %c0_146] : memref<8x8x32xf32, #tpu.memory_space<vmem>>, vector<1x8x32xf32>
    %619 = vector.shape_cast %618 : vector<1x8x32xf32> to vector<8x32xf32>
    %620 = vector.shape_cast %616 : vector<8x32xf32> to vector<1x8x32xf32>
    tpu.vector_store %arg10[%617, %c0_145, %c0_146], %620 {strides = array<i32>} : memref<8x8x32xf32, #tpu.memory_space<vmem>>, vector<1x8x32xf32>,
    %c7_i32_147 = arith.constant 7 : i32
    %621 = arith.subi %c7_i32_147, %c6_i32 : i32
    %622 = arith.index_cast %621 : i32 to index
    %c0_148 = arith.constant 0 : index
    %c0_149 = arith.constant 0 : index
    %623 = vector.load %arg3[%622, %c0_148, %c0_149] : memref<8x8x96xf32, #tpu.memory_space<vmem>>, vector<1x8x96xf32>
    %624 = vector.shape_cast %623 : vector<1x8x96xf32> to vector<8x96xf32>
    %cst_150 = arith.constant dense<0.000000e+00> : vector<8x96xf32>
    %625 = tpu.matmul %565, %6, %cst_150 {dimension_numbers = #tpu.dot_dimension_numbers<[1], [0], [0], [1], [0, 0, 1, 1], [], []>, precision = #tpu.contract_precision<fp32>} : vector<8x32xf32>, vector<32x96xf32>, vector<8x96xf32> -> vector<8x96xf32>
    %626 = vector.broadcast %7 : vector<1x96xf32> to vector<8x96xf32>
    %627 = arith.addf %625, %626 : vector<8x96xf32>
    %628 = vector.extract_strided_slice %624 {offsets = [0, 0], sizes = [8, 32], strides = [1, 1]} : vector<8x96xf32> to vector<8x32xf32>
    %629 = vector.extract_strided_slice %627 {offsets = [0, 0], sizes = [8, 32], strides = [1, 1]} : vector<8x96xf32> to vector<8x32xf32>
    %630 = arith.addf %628, %629 : vector<8x32xf32>
    %631 = arith.negf %630 : vector<8x32xf32>
    %632 = math.exp %631 : vector<8x32xf32>
    %cst_151 = arith.constant 1.000000e+00 : f32
    %633 = vector.broadcast %cst_151 : f32 to vector<8x32xf32>
    %634 = arith.addf %633, %632 : vector<8x32xf32>
    %635 = arith.divf %633, %634 : vector<8x32xf32>
    %636 = vector.extract_strided_slice %624 {offsets = [0, 32], sizes = [8, 32], strides = [1, 1]} : vector<8x96xf32> to vector<8x32xf32>
    %637 = vector.extract_strided_slice %627 {offsets = [0, 32], sizes = [8, 32], strides = [1, 1]} : vector<8x96xf32> to vector<8x32xf32>
    %638 = arith.addf %636, %637 : vector<8x32xf32>
    %639 = arith.negf %638 : vector<8x32xf32>
    %640 = math.exp %639 : vector<8x32xf32>
    %cst_152 = arith.constant 1.000000e+00 : f32
    %641 = vector.broadcast %cst_152 : f32 to vector<8x32xf32>
    %642 = arith.addf %641, %640 : vector<8x32xf32>
    %643 = arith.divf %641, %642 : vector<8x32xf32>
    %644 = vector.extract_strided_slice %624 {offsets = [0, 64], sizes = [8, 32], strides = [1, 1]} : vector<8x96xf32> to vector<8x32xf32>
    %645 = vector.extract_strided_slice %627 {offsets = [0, 64], sizes = [8, 32], strides = [1, 1]} : vector<8x96xf32> to vector<8x32xf32>
    %646 = arith.mulf %635, %645 : vector<8x32xf32>
    %647 = arith.addf %644, %646 : vector<8x32xf32>
    %648 = math.tanh %647 : vector<8x32xf32>
    %cst_153 = arith.constant 1.000000e+00 : f32
    %649 = vector.broadcast %cst_153 : f32 to vector<8x32xf32>
    %650 = arith.subf %649, %643 : vector<8x32xf32>
    %651 = arith.mulf %650, %648 : vector<8x32xf32>
    %652 = arith.mulf %643, %565 : vector<8x32xf32>
    %653 = arith.addf %651, %652 : vector<8x32xf32>
    %c15_i32_154 = arith.constant 15 : i32
    %654 = arith.subi %c15_i32_154, %575 : i32
    %655 = vector.broadcast %654 : i32 to vector<8x1xi32>
    %656 = arith.cmpi slt, %655, %3 : vector<8x1xi32>
    %657 = vector.shape_cast %656 : vector<8x1xi1> to vector<8x1xi1>
    %658 = vector.broadcast %657 : vector<8x1xi1> to vector<8x32xi1>
    %659 = arith.select %658, %653, %565 : vector<8x32xi1>, vector<8x32xf32>
    %cst_155 = arith.constant 0.000000e+00 : f32
    %660 = vector.shape_cast %656 : vector<8x1xi1> to vector<8x1xi1>
    %661 = vector.broadcast %660 : vector<8x1xi1> to vector<8x32xi1>
    %662 = vector.broadcast %cst_155 : f32 to vector<8x32xf32>
    %663 = arith.select %661, %653, %662 : vector<8x32xi1>, vector<8x32xf32>
    %664 = arith.index_cast %621 : i32 to index
    %c0_156 = arith.constant 0 : index
    %c0_157 = arith.constant 0 : index
    %665 = vector.load %arg11[%664, %c0_156, %c0_157] : memref<8x8x32xf32, #tpu.memory_space<vmem>>, vector<1x8x32xf32>
    %666 = vector.shape_cast %665 : vector<1x8x32xf32> to vector<8x32xf32>
    %667 = vector.shape_cast %663 : vector<8x32xf32> to vector<1x8x32xf32>
    tpu.vector_store %arg11[%664, %c0_156, %c0_157], %667 {strides = array<i32>} : memref<8x8x32xf32, #tpu.memory_space<vmem>>, vector<1x8x32xf32>,
    %c7_i32_158 = arith.constant 7 : i32
    %c8_i32_159 = arith.constant 8 : i32
    %668 = arith.muli %arg0, %c8_i32_159 : i32
    %669 = arith.addi %668, %c7_i32_158 : i32
    %670 = arith.index_cast %c7_i32_158 : i32 to index
    %c0_160 = arith.constant 0 : index
    %c0_161 = arith.constant 0 : index
    %671 = vector.load %arg2[%670, %c0_160, %c0_161] : memref<8x8x96xf32, #tpu.memory_space<vmem>>, vector<1x8x96xf32>
    %672 = vector.shape_cast %671 : vector<1x8x96xf32> to vector<8x96xf32>
    %cst_162 = arith.constant dense<0.000000e+00> : vector<8x96xf32>
    %673 = tpu.matmul %612, %4, %cst_162 {dimension_numbers = #tpu.dot_dimension_numbers<[1], [0], [0], [1], [0, 0, 1, 1], [], []>, precision = #tpu.contract_precision<fp32>} : vector<8x32xf32>, vector<32x96xf32>, vector<8x96xf32> -> vector<8x96xf32>
    %674 = vector.broadcast %5 : vector<1x96xf32> to vector<8x96xf32>
    %675 = arith.addf %673, %674 : vector<8x96xf32>
    %676 = vector.extract_strided_slice %672 {offsets = [0, 0], sizes = [8, 32], strides = [1, 1]} : vector<8x96xf32> to vector<8x32xf32>
    %677 = vector.extract_strided_slice %675 {offsets = [0, 0], sizes = [8, 32], strides = [1, 1]} : vector<8x96xf32> to vector<8x32xf32>
    %678 = arith.addf %676, %677 : vector<8x32xf32>
    %679 = arith.negf %678 : vector<8x32xf32>
    %680 = math.exp %679 : vector<8x32xf32>
    %cst_163 = arith.constant 1.000000e+00 : f32
    %681 = vector.broadcast %cst_163 : f32 to vector<8x32xf32>
    %682 = arith.addf %681, %680 : vector<8x32xf32>
    %683 = arith.divf %681, %682 : vector<8x32xf32>
    %684 = vector.extract_strided_slice %672 {offsets = [0, 32], sizes = [8, 32], strides = [1, 1]} : vector<8x96xf32> to vector<8x32xf32>
    %685 = vector.extract_strided_slice %675 {offsets = [0, 32], sizes = [8, 32], strides = [1, 1]} : vector<8x96xf32> to vector<8x32xf32>
    %686 = arith.addf %684, %685 : vector<8x32xf32>
    %687 = arith.negf %686 : vector<8x32xf32>
    %688 = math.exp %687 : vector<8x32xf32>
    %cst_164 = arith.constant 1.000000e+00 : f32
    %689 = vector.broadcast %cst_164 : f32 to vector<8x32xf32>
    %690 = arith.addf %689, %688 : vector<8x32xf32>
    %691 = arith.divf %689, %690 : vector<8x32xf32>
    %692 = vector.extract_strided_slice %672 {offsets = [0, 64], sizes = [8, 32], strides = [1, 1]} : vector<8x96xf32> to vector<8x32xf32>
    %693 = vector.extract_strided_slice %675 {offsets = [0, 64], sizes = [8, 32], strides = [1, 1]} : vector<8x96xf32> to vector<8x32xf32>
    %694 = arith.mulf %683, %693 : vector<8x32xf32>
    %695 = arith.addf %692, %694 : vector<8x32xf32>
    %696 = math.tanh %695 : vector<8x32xf32>
    %cst_165 = arith.constant 1.000000e+00 : f32
    %697 = vector.broadcast %cst_165 : f32 to vector<8x32xf32>
    %698 = arith.subf %697, %691 : vector<8x32xf32>
    %699 = arith.mulf %698, %696 : vector<8x32xf32>
    %700 = arith.mulf %691, %612 : vector<8x32xf32>
    %701 = arith.addf %699, %700 : vector<8x32xf32>
    %702 = vector.broadcast %669 : i32 to vector<8x1xi32>
    %703 = arith.cmpi slt, %702, %3 : vector<8x1xi32>
    %704 = vector.shape_cast %703 : vector<8x1xi1> to vector<8x1xi1>
    %705 = vector.broadcast %704 : vector<8x1xi1> to vector<8x32xi1>
    %706 = arith.select %705, %701, %612 : vector<8x32xi1>, vector<8x32xf32>
    %cst_166 = arith.constant 0.000000e+00 : f32
    %707 = vector.shape_cast %703 : vector<8x1xi1> to vector<8x1xi1>
    %708 = vector.broadcast %707 : vector<8x1xi1> to vector<8x32xi1>
    %709 = vector.broadcast %cst_166 : f32 to vector<8x32xf32>
    %710 = arith.select %708, %701, %709 : vector<8x32xi1>, vector<8x32xf32>
    %711 = arith.index_cast %c7_i32_158 : i32 to index
    %c0_167 = arith.constant 0 : index
    %c0_168 = arith.constant 0 : index
    %712 = vector.load %arg10[%711, %c0_167, %c0_168] : memref<8x8x32xf32, #tpu.memory_space<vmem>>, vector<1x8x32xf32>
    %713 = vector.shape_cast %712 : vector<1x8x32xf32> to vector<8x32xf32>
    %714 = vector.shape_cast %710 : vector<8x32xf32> to vector<1x8x32xf32>
    tpu.vector_store %arg10[%711, %c0_167, %c0_168], %714 {strides = array<i32>} : memref<8x8x32xf32, #tpu.memory_space<vmem>>, vector<1x8x32xf32>,
    %c7_i32_169 = arith.constant 7 : i32
    %715 = arith.subi %c7_i32_169, %c7_i32_158 : i32
    %716 = arith.index_cast %715 : i32 to index
    %c0_170 = arith.constant 0 : index
    %c0_171 = arith.constant 0 : index
    %717 = vector.load %arg3[%716, %c0_170, %c0_171] : memref<8x8x96xf32, #tpu.memory_space<vmem>>, vector<1x8x96xf32>
    %718 = vector.shape_cast %717 : vector<1x8x96xf32> to vector<8x96xf32>
    %cst_172 = arith.constant dense<0.000000e+00> : vector<8x96xf32>
    %719 = tpu.matmul %659, %6, %cst_172 {dimension_numbers = #tpu.dot_dimension_numbers<[1], [0], [0], [1], [0, 0, 1, 1], [], []>, precision = #tpu.contract_precision<fp32>} : vector<8x32xf32>, vector<32x96xf32>, vector<8x96xf32> -> vector<8x96xf32>
    %720 = vector.broadcast %7 : vector<1x96xf32> to vector<8x96xf32>
    %721 = arith.addf %719, %720 : vector<8x96xf32>
    %722 = vector.extract_strided_slice %718 {offsets = [0, 0], sizes = [8, 32], strides = [1, 1]} : vector<8x96xf32> to vector<8x32xf32>
    %723 = vector.extract_strided_slice %721 {offsets = [0, 0], sizes = [8, 32], strides = [1, 1]} : vector<8x96xf32> to vector<8x32xf32>
    %724 = arith.addf %722, %723 : vector<8x32xf32>
    %725 = arith.negf %724 : vector<8x32xf32>
    %726 = math.exp %725 : vector<8x32xf32>
    %cst_173 = arith.constant 1.000000e+00 : f32
    %727 = vector.broadcast %cst_173 : f32 to vector<8x32xf32>
    %728 = arith.addf %727, %726 : vector<8x32xf32>
    %729 = arith.divf %727, %728 : vector<8x32xf32>
    %730 = vector.extract_strided_slice %718 {offsets = [0, 32], sizes = [8, 32], strides = [1, 1]} : vector<8x96xf32> to vector<8x32xf32>
    %731 = vector.extract_strided_slice %721 {offsets = [0, 32], sizes = [8, 32], strides = [1, 1]} : vector<8x96xf32> to vector<8x32xf32>
    %732 = arith.addf %730, %731 : vector<8x32xf32>
    %733 = arith.negf %732 : vector<8x32xf32>
    %734 = math.exp %733 : vector<8x32xf32>
    %cst_174 = arith.constant 1.000000e+00 : f32
    %735 = vector.broadcast %cst_174 : f32 to vector<8x32xf32>
    %736 = arith.addf %735, %734 : vector<8x32xf32>
    %737 = arith.divf %735, %736 : vector<8x32xf32>
    %738 = vector.extract_strided_slice %718 {offsets = [0, 64], sizes = [8, 32], strides = [1, 1]} : vector<8x96xf32> to vector<8x32xf32>
    %739 = vector.extract_strided_slice %721 {offsets = [0, 64], sizes = [8, 32], strides = [1, 1]} : vector<8x96xf32> to vector<8x32xf32>
    %740 = arith.mulf %729, %739 : vector<8x32xf32>
    %741 = arith.addf %738, %740 : vector<8x32xf32>
    %742 = math.tanh %741 : vector<8x32xf32>
    %cst_175 = arith.constant 1.000000e+00 : f32
    %743 = vector.broadcast %cst_175 : f32 to vector<8x32xf32>
    %744 = arith.subf %743, %737 : vector<8x32xf32>
    %745 = arith.mulf %744, %742 : vector<8x32xf32>
    %746 = arith.mulf %737, %659 : vector<8x32xf32>
    %747 = arith.addf %745, %746 : vector<8x32xf32>
    %c15_i32_176 = arith.constant 15 : i32
    %748 = arith.subi %c15_i32_176, %669 : i32
    %749 = vector.broadcast %748 : i32 to vector<8x1xi32>
    %750 = arith.cmpi slt, %749, %3 : vector<8x1xi32>
    %751 = vector.shape_cast %750 : vector<8x1xi1> to vector<8x1xi1>
    %752 = vector.broadcast %751 : vector<8x1xi1> to vector<8x32xi1>
    %753 = arith.select %752, %747, %659 : vector<8x32xi1>, vector<8x32xf32>
    %cst_177 = arith.constant 0.000000e+00 : f32
    %754 = vector.shape_cast %750 : vector<8x1xi1> to vector<8x1xi1>
    %755 = vector.broadcast %754 : vector<8x1xi1> to vector<8x32xi1>
    %756 = vector.broadcast %cst_177 : f32 to vector<8x32xf32>
    %757 = arith.select %755, %747, %756 : vector<8x32xi1>, vector<8x32xf32>
    %758 = arith.index_cast %715 : i32 to index
    %c0_178 = arith.constant 0 : index
    %c0_179 = arith.constant 0 : index
    %759 = vector.load %arg11[%758, %c0_178, %c0_179] : memref<8x8x32xf32, #tpu.memory_space<vmem>>, vector<1x8x32xf32>
    %760 = vector.shape_cast %759 : vector<1x8x32xf32> to vector<8x32xf32>
    %761 = vector.shape_cast %757 : vector<8x32xf32> to vector<1x8x32xf32>
    tpu.vector_store %arg11[%758, %c0_178, %c0_179], %761 {strides = array<i32>} : memref<8x8x32xf32, #tpu.memory_space<vmem>>, vector<1x8x32xf32>,
    %c8_i32_180 = arith.constant 8 : i32
    %c0_181 = arith.constant 0 : index
    %c0_182 = arith.constant 0 : index
    %762 = vector.load %arg13[%c0_181, %c0_182] : memref<8x32xf32, #tpu.memory_space<vmem>>, vector<8x32xf32>
    tpu.vector_store %arg13[%c0_181, %c0_182], %706 {strides = array<i32>} : memref<8x32xf32, #tpu.memory_space<vmem>>, vector<8x32xf32>,
    %c0_183 = arith.constant 0 : index
    %c0_184 = arith.constant 0 : index
    %763 = vector.load %arg14[%c0_183, %c0_184] : memref<8x32xf32, #tpu.memory_space<vmem>>, vector<8x32xf32>
    tpu.vector_store %arg14[%c0_183, %c0_184], %753 {strides = array<i32>} : memref<8x32xf32, #tpu.memory_space<vmem>>, vector<8x32xf32>,
    %c1_i32_185 = arith.constant 1 : i32
    %764 = arith.cmpi eq, %arg0, %c1_i32_185 : i32
    %765 = arith.extui %764 : i1 to i32
    %c0_i32_186 = arith.constant 0 : i32
    %766 = arith.cmpi ne, %765, %c0_i32_186 : i32
    scf.if %766 {
      %767 = tpu.concatenate %706, %753 in 1 : vector<8x32xf32>, vector<8x32xf32> -> vector<8x64xf32>
      %c0_187 = arith.constant 0 : index
      %c0_188 = arith.constant 0 : index
      %768 = vector.load %arg8[%c0_187, %c0_188] : memref<64x32xf32, #tpu.memory_space<vmem>>, vector<64x32xf32>
      %cst_189 = arith.constant dense<0.000000e+00> : vector<8x32xf32>
      %769 = tpu.matmul %767, %768, %cst_189 {dimension_numbers = #tpu.dot_dimension_numbers<[1], [0], [0], [1], [0, 0, 1, 1], [], []>, precision = #tpu.contract_precision<fp32>} : vector<8x64xf32>, vector<64x32xf32>, vector<8x32xf32> -> vector<8x32xf32>
      %c0_190 = arith.constant 0 : index
      %c0_191 = arith.constant 0 : index
      %770 = vector.load %arg9[%c0_190, %c0_191] : memref<1x32xf32, #tpu.memory_space<vmem>>, vector<1x32xf32>
      %771 = vector.broadcast %770 : vector<1x32xf32> to vector<8x32xf32>
      %772 = arith.addf %769, %771 : vector<8x32xf32>
      %773 = math.tanh %772 : vector<8x32xf32>
      %c0_192 = arith.constant 0 : index
      %c0_193 = arith.constant 0 : index
      %774 = vector.load %arg12[%c0_192, %c0_193] : memref<8x32xf32, #tpu.memory_space<vmem>>, vector<8x32xf32>
      tpu.vector_store %arg12[%c0_192, %c0_193], %773 {strides = array<i32>} : memref<8x32xf32, #tpu.memory_space<vmem>>, vector<8x32xf32>,
    } else {
    }
    return
  }
  func.func @transform_0(%arg0: i32) -> (i32, i32) {
    %c0_i32 = arith.constant 0 : i32
    %c0_i32_0 = arith.constant 0 : i32
    %c0_i32_1 = arith.constant 0 : i32
    return %c0_i32, %c0_i32_0 : i32, i32
  }
  func.func @transform_1(%arg0: i32) -> (i32, i32, i32) {
    %c0_i32 = arith.constant 0 : i32
    %c0_i32_0 = arith.constant 0 : i32
    %c0_i32_1 = arith.constant 0 : i32
    return %arg0, %c0_i32, %c0_i32_0 : i32, i32, i32
  }
  func.func @transform_2(%arg0: i32) -> (i32, i32, i32) {
    %c1_i32 = arith.constant 1 : i32
    %0 = arith.subi %c1_i32, %arg0 : i32
    %c0_i32 = arith.constant 0 : i32
    %c0_i32_0 = arith.constant 0 : i32
    %c0_i32_1 = arith.constant 0 : i32
    return %0, %c0_i32, %c0_i32_0 : i32, i32, i32
  }
  func.func @transform_3(%arg0: i32) -> (i32, i32) {
    %c0_i32 = arith.constant 0 : i32
    %c0_i32_0 = arith.constant 0 : i32
    %c0_i32_1 = arith.constant 0 : i32
    return %c0_i32, %c0_i32_0 : i32, i32
  }
  func.func @transform_4(%arg0: i32) -> (i32, i32) {
    %c0_i32 = arith.constant 0 : i32
    %c0_i32_0 = arith.constant 0 : i32
    %c0_i32_1 = arith.constant 0 : i32
    return %c0_i32, %c0_i32_0 : i32, i32
  }
  func.func @transform_5(%arg0: i32) -> (i32, i32) {
    %c0_i32 = arith.constant 0 : i32
    %c0_i32_0 = arith.constant 0 : i32
    %c0_i32_1 = arith.constant 0 : i32
    return %c0_i32, %c0_i32_0 : i32, i32
  }
  func.func @transform_6(%arg0: i32) -> (i32, i32) {
    %c0_i32 = arith.constant 0 : i32
    %c0_i32_0 = arith.constant 0 : i32
    %c0_i32_1 = arith.constant 0 : i32
    return %c0_i32, %c0_i32_0 : i32, i32
  }
  func.func @transform_7(%arg0: i32) -> (i32, i32) {
    %c0_i32 = arith.constant 0 : i32
    %c0_i32_0 = arith.constant 0 : i32
    %c0_i32_1 = arith.constant 0 : i32
    return %c0_i32, %c0_i32_0 : i32, i32
  }
  func.func @transform_8(%arg0: i32) -> (i32, i32) {
    %c0_i32 = arith.constant 0 : i32
    %c0_i32_0 = arith.constant 0 : i32
    %c0_i32_1 = arith.constant 0 : i32
    return %c0_i32, %c0_i32_0 : i32, i32
  }
  func.func @transform_9(%arg0: i32) -> (i32, i32, i32) {
    %c0_i32 = arith.constant 0 : i32
    %c0_i32_0 = arith.constant 0 : i32
    %c0_i32_1 = arith.constant 0 : i32
    return %arg0, %c0_i32, %c0_i32_0 : i32, i32, i32
  }
  func.func @transform_10(%arg0: i32) -> (i32, i32, i32) {
    %c1_i32 = arith.constant 1 : i32
    %0 = arith.subi %c1_i32, %arg0 : i32
    %c0_i32 = arith.constant 0 : i32
    %c0_i32_0 = arith.constant 0 : i32
    %c0_i32_1 = arith.constant 0 : i32
    return %0, %c0_i32, %c0_i32_0 : i32, i32, i32
  }
  func.func @transform_11(%arg0: i32) -> (i32, i32) {
    %c0_i32 = arith.constant 0 : i32
    %c0_i32_0 = arith.constant 0 : i32
    %c0_i32_1 = arith.constant 0 : i32
    return %c0_i32, %c0_i32_0 : i32, i32
  }
}

</mosaic_0001>

<bundles_post_ra>
// kernel: encoder_forward.2
= control target key start
LH: loop header
LB: loop body
LE: loop exit
PB: predicated region body
PF: predicated region fallthrough
CT: control target
= control target key end

     0   :  { %s1293_s15 = smov 0   ;;  %s1812_s0 = inlined_call_operand.vmem [shape: f32[128,32], index: 0, kind: input, shape index: {}]   ;;  %s1813_s1 = inlined_call_operand.vmem [shape: f32[32,192], index: 1, kind: input, shape index: {}]   ;;  %s1814_s2 = inlined_call_operand.vmem [shape: f32[1,192], index: 2, kind: input, shape index: {}]   ;;  %s1815_s3 = inlined_call_operand.vmem [shape: f32[128,96], index: 3, kind: output, shape index: {0}]   ;;  %s1816_s4 = inlined_call_operand.vmem [shape: f32[128,96], index: 4, kind: output, shape index: {1}]  }
   0x1 LB: > { %s1237_s16 = sadd.s32 4294967295, %s1265_s15   ;;  %p1241_p0 = scmp.ge.s32.totalorder %s1265_s15, 1  ;;  %s1265_s15 = sphi %s1293_s15, %s15_s15  }
   0x2   : > { %p166_p1 = scmp.lt.s32.totalorder %s1265_s15, 3 }
   0x4   : > { %p167_p2 = pnand %p1241_p0, %p166_p1 }
   0x5   : > { %s1242_s23 = sshll.u32 (!%p167_p2), %s1237_s16, 3  ;;  %s1267_s18 = smov (!%p167_p2), 32  }
   0x6   : > { %170 = sbr.rel (%p167_p2) target bundleno = 465 (0x1d1), region = 32  ;;  %p198_p3 = scmp.lt.s32.totalorder (!%p167_p2), %s1242_s23, 15 }
   0xb   : > { %v229_v0 = vld [vmem:[%s1813_s1 + $0x30] sm:$0xff]  ;;  %v227_v1 = vld [vmem:[%s1813_s1 + $0x20] sm:$0xff]  ;;  %v230_v7 = vld [vmem:[%s1813_s1 + $0x38] sm:$0xff]  ;;  %s1818_s23 = smov (!%p198_p3, %s1242_s23), 15  ;;  %vm237_vm0 = vcmask 261120   ;;  %vm1066_vm1 = vcmask 785408  }
   0xc   : > { %v225_v2 = vld [vmem:[%s1813_s1 + $0x10] sm:$0xff]  ;;  %v1310_v3 = vand.u32 4294901760, %v229_v0  ;;  %v1312_v4 = vand.u32 4294901760, %v227_v1  ;;  %v223_v6 = vld [vmem:[%s1813_s1] sm:$0xff]  ;;  %v1324_v9 = vand.u32 4294901760, %v230_v7  ;;  %v228_v10 = vld [vmem:[%s1813_s1 + $0x28] sm:$0xff] }
   0xd   : > { %v1314_v5 = vand.u32 4294901760, %v225_v2  ;;  %v1322_v8 = vand.u32 4294901760, %v223_v6  ;;  %v1336_v14 = vand.u32 4294901760, %v228_v10  ;;  %s1345_s30 = sshll.u32 %s1818_s23, 3  ;;  %v226_v47 = vld [vmem:[%s1813_s1 + $0x18] sm:$0xff] }
   0xe   : > { %v360_v11 = vsub.f32 %v229_v0, %v1310_v3  ;;  %275 = vmatpush.msra.mxu0 %v1310_v3  ;;  %v366_v12 = vsub.f32 %v227_v1, %v1312_v4  ;;  %494 = vmatpush.msra.mxu3 %v1310_v3  ;;  %v1342_v16 = vsub.f32 %v230_v7, %v1324_v9  ;;  %s1356_s7 = scalar_lea.vmem %s1812_s0, %s1345_s30  ;;  %v1400_v48 = vand.u32 4294901760, %v226_v47  ;;  %s1663_s17 = scalar_lea.vmem %s1815_s3, %s1345_s30 }
   0xf   : > { %v1334_v13 = vsub.f32 %v225_v2, %v1314_v5  ;;  %v1339_v15 = vsub.f32 %v223_v6, %v1322_v8  ;;  %v1349_v20 = vsub.f32 %v228_v10, %v1336_v14  ;;  %v215_v25 = vld [vmem:[%s1356_s7] sm:$0xff]  ;;  %v216_v27 = vld [vmem:[%s1356_s7 + $0x8] sm:$0xff]  ;;  %v217_v36 = vld [vmem:[%s1356_s7 + $0x10] sm:$0xff]  ;;  %s213_s21 = scalar_lea.vmem %s1816_s4, %s1345_s30 }
  0x10   : > { %430 = vmatpush.msra.mxu2 %v360_v11  ;;  %277 = vmatpush.msra.mxu0 %v1312_v4  ;;  %v361_v17 = vand.u32 4294901760, %v360_v11  ;;  %v367_v18 = vand.u32 4294901760, %v366_v12  ;;  %v763_v21 = vand.u32 4294901760, %v1342_v16  ;;  %v239_v29 = vsel %vm237_vm0, %v215_v25, 0  ;;  %v218_v53 = vld [vmem:[%s1356_s7 + $0x18] sm:$0xff]  ;;  %v219_v63 = vld [vmem:[%s1356_s7 + $0x20] sm:$0xff] }
  0x11   : > { %v373_v19 = vand.u32 4294901760, %v1334_v13  ;;  %496 = vmatpush.msra.mxu3 %v1312_v4  ;;  %v379_v22 = vand.u32 4294901760, %v1339_v15  ;;  %v769_v28 = vand.u32 4294901760, %v1349_v20  ;;  %v242_v31 = vsel %vm237_vm0, %v216_v27, 0  ;;  %v220_v10 = vld [vmem:[%s1356_s7 + $0x28] sm:$0xff] }
  0x12   : > { %433 = vmatpush.msra.mxu2 %v366_v12  ;;  %v362_v23 = vsub.f32 %v360_v11, %v361_v17  ;;  %279 = vmatpush.msra.mxu0 %v1314_v5  ;;  %v368_v24 = vsub.f32 %v366_v12, %v367_v18  ;;  %v764_v30 = vsub.f32 %v1342_v16, %v763_v21  ;;  %v1372_v34 = vand.u32 4294901760, %v239_v29 }
  0x13   : > { %v374_v26 = vsub.f32 %v1334_v13, %v373_v19  ;;  %498 = vmatpush.msra.mxu3 %v1314_v5  ;;  %v380_v35 = vsub.f32 %v1339_v15, %v379_v22  ;;  %v1378_v38 = vand.u32 4294901760, %v242_v31  ;;  %v770_v41 = vsub.f32 %v1349_v20, %v769_v28 }
  0x14   : > { %v363_v32 = vand.u32 4294901760, %v362_v23  ;;  %436 = vmatpush.msra.mxu2 %v1334_v13  ;;  %v369_v33 = vand.u32 4294901760, %v368_v24  ;;  %281 = vmatpush.msra.mxu0 %v1322_v8  ;;  %v765_v37 = vand.u32 4294901760, %v764_v30  ;;  %v1382_v39 = vsub.f32 %v239_v29, %v1372_v34  ;;  %v222_v29 = vld [vmem:[%s1356_s7 + $0x38] sm:$0xff] }
  0x15   : > { %500 = vmatpush.msra.mxu3 %v1322_v8  ;;  %v375_v40 = vand.u32 4294901760, %v374_v26  ;;  %v1389_v42 = vsub.f32 %v242_v31, %v1378_v38  ;;  %v245_v43 = vsel %vm237_vm0, %v217_v36, 0  ;;  %v381_v45 = vand.u32 4294901760, %v380_v35 }
  0x16   : > { %565 = vmatpush.msrb.mxu0 %v361_v17  ;;  %364 = vmatpush.msra.mxu1 %v363_v32  ;;  %v1394_v44 = vand.u32 4294901760, %v1382_v39  ;;  %v771_v46 = vand.u32 4294901760, %v770_v41  ;;  %v1408_v51 = vand.u32 4294901760, %v245_v43  ;;  %v774_v56 = vsub.f32 %v226_v47, %v1400_v48 }
  0x17   : > { %439 = vmatpush.msra.mxu2 %v1339_v15  ;;  %766 = vmatpush.msrb.mxu3 %v765_v37  ;;  %v1406_v50 = vand.u32 4294901760, %v1389_v42  ;;  %v248_v57 = vsel %vm237_vm0, %v218_v53, 0  ;;  %v254_v15 = vsel %vm237_vm0, %v220_v10, 0  ;;  %v260_v30 = vsel %vm237_vm0, %v222_v29, 0 }
  0x18   : > { %370 = vmatpush.msra.mxu1 %v369_v33  ;;  %442 = vmatmul.f32.vlgmr.msra.gmra.mxu2 %v1382_v39  ;;  %v285_v49 = vsub.f32 %v1382_v39, %v1394_v44  ;;  %v1420_v55 = vsub.f32 %v245_v43, %v1408_v51  ;;  %v775_v58 = vand.u32 4294901760, %v774_v56  ;;  %v1433_v61 = vand.u32 4294901760, %v248_v57 }
  0x19   : > { %677 = vmatpush.msrb.mxu2 %v1324_v9  ;;  %569 = vmatpush.msrb.mxu0 %v367_v18  ;;  %v293_v54 = vsub.f32 %v1389_v42, %v1406_v50  ;;  %v1513_v33 = vand.u32 4294901760, %v260_v30 }
  0x1a   : > { %376 = vmatpush.msra.mxu1 %v375_v40  ;;  %504 = vmatmul.f32.vlgmr.msra.gmra.mxu3 %v1394_v44  ;;  %v1411_v52 = vand.u32 4294901760, %v285_v49  ;;  %v1431_v60 = vand.u32 4294901760, %v1420_v55  ;;  %v776_v62 = vsub.f32 %v774_v56, %v775_v58  ;;  %v1444_v2 = vsub.f32 %v248_v57, %v1433_v61 }
  0x1b   : > { %679 = vmatpush.msrb.mxu2 %v1336_v14  ;;  %772 = vmatpush.msrb.mxu3 %v771_v46  ;;  %v1427_v59 = vand.u32 4294901760, %v293_v54  ;;  %v1519_v36 = vsub.f32 %v260_v30, %v1513_v33 }
  0x1c   : > { %382 = vmatpush.msra.mxu1 %v381_v45  ;;  %573 = vmatpush.msrb.mxu0 %v373_v19  ;;  %v777_v0 = vand.u32 4294901760, %v776_v62  ;;  %v301_v1 = vsub.f32 %v1420_v55, %v1431_v60  ;;  %v1457_v7 = vand.u32 4294901760, %v1444_v2  ;;  %v1480_v19 = vand.u32 4294901760, %v254_v15 }
  0x1d   : > { %681 = vmatpush.msrb.mxu2 %v1400_v48  ;;  %384 = vmatmul.f32.vlgmr.msra.gmra.mxu1 %v1372_v34  ;;  %v1524_v40 = vand.u32 4294901760, %v1519_v36 }
  0x1e   : > { %287 = vmatmul.f32.vlgmr.msra.gmra.mxu0 %v1411_v52  ;;  %624 = vmatpush.msrb.mxu1 %v1310_v3  ;;  %v251_v3 = vsel %vm237_vm0, %v219_v63, 0  ;;  %v1453_v6 = vand.u32 4294901760, %v301_v1  ;;  %v309_v11 = vsub.f32 %v1444_v2, %v1457_v7  ;;  %v1487_v24 = vsub.f32 %v254_v15, %v1480_v19 }
  0x1f   : > { %577 = vmatpush.msrb.mxu0 %v379_v22  ;;  %778 = vmatpush.msrb.mxu3 %v777_v0  ;;  %v341_v41 = vsub.f32 %v1519_v36, %v1524_v40  ;;  %v1624_v0 = vld [vmem:[%s1814_s2] sm:$0x3] }
  0x20   : > { %447 = vmatmul.f32.gmra.mxu2 %v1389_v42  ;;  %626 = vmatpush.msrb.mxu1 %v1312_v4  ;;  %v224_v4 = vld [vmem:[%s1813_s1 + $0x8] sm:$0xff]  ;;  %v310_v17 = vand.u32 4294901760, %v309_v11  ;;  %v1495_v27 = vand.u32 4294901760, %v1487_v24  ;;  %v1628_v1 = vperm.slane %v1624_v0, 0 }
  0x21   : > { %832 = vmatpush.msra.mxu0 %v1342_v16  ;;  %v342_v43 = vand.u32 4294901760, %v341_v41 }
  0x22   : > { %510 = vmatmul.f32.gmra.mxu3 %v1406_v50  ;;  %628 = vmatpush.msrb.mxu1 %v1314_v5  ;;  %v682_v5 = vand.u32 4294901760, %v224_v4 }
  0x23   : > { %835 = vmatpush.msra.mxu0 %v1349_v20  ;;  %v221_v20 = vld [vmem:[%s1356_s7 + $0x30] sm:$0xff] }
  0x24   : > { %630 = vmatpush.msrb.mxu1 %v1322_v8  ;;  %v1459_v8 = vand.u32 4294901760, %v251_v3  ;;  %683 = vmatpush.msrb.mxu2 %v682_v5  ;;  %v780_v13 = vsub.f32 %v224_v4, %v682_v5  ;;  %v257_v25 = vsel %vm237_vm0, %v221_v20, 0 }
  0x25   : > { %388 = vmatmul.f32.gmra.mxu1 %v1378_v38  ;;  %838 = vmatpush.msra.mxu0 %v774_v56 }
  0x26   : > { %295 = vmatmul.f32.gmra.mxu0 %v1427_v59  ;;  %896 = vmatpush.msra.mxu1 %v1324_v9  ;;  %v1470_v12 = vsub.f32 %v251_v3, %v1459_v8  ;;  %v781_v16 = vand.u32 4294901760, %v780_v13 }
  0x27   : > { %967 = vmatpush.msra.mxu2 %v763_v21  ;;  %841 = vmatpush.msra.mxu0 %v780_v13 }
  0x28   : > { %452 = vmatmul.f32.gmra.mxu2 %v1420_v55  ;;  %898 = vmatpush.msra.mxu1 %v1336_v14  ;;  %v1478_v18 = vand.u32 4294901760, %v1470_v12  ;;  %v782_v21 = vsub.f32 %v780_v13, %v781_v16 }
  0x29   : > { %971 = vmatpush.msra.mxu2 %v769_v28  ;;  %v1497_v28 = vand.u32 4294901760, %v257_v25 }
  0x2a   : > { %516 = vmatmul.f32.gmra.mxu3 %v1431_v60  ;;  %900 = vmatpush.msra.mxu1 %v1400_v48  ;;  %v783_v22 = vand.u32 4294901760, %v782_v21  ;;  %v317_v23 = vsub.f32 %v1470_v12, %v1478_v18 }
  0x2b   : > { %975 = vmatpush.msra.mxu2 %v775_v58 }
  0x2c   : > { %902 = vmatpush.msra.mxu1 %v682_v5  ;;  %784 = vmatpush.msrb.mxu3 %v783_v22  ;;  %v318_v26 = vand.u32 4294901760, %v317_v23 }
  0x2d   : > { %392 = vmatmul.f32.gmra.mxu1 %v1408_v51  ;;  %979 = vmatpush.msra.mxu2 %v781_v16 }
  0x2e   : > { %303 = vmatmul.f32.gmra.mxu0 %v1453_v6  ;;  %1026 = vmatpush.msra.mxu3 %v1324_v9  ;;  %v325_v9 = vsub.f32 %v1487_v24, %v1495_v27 }
  0x30   : > { %457 = vmatmul.f32.gmra.mxu2 %v1444_v2  ;;  %1028 = vmatpush.msra.mxu3 %v1336_v14  ;;  %v1505_v14 = vsub.f32 %v257_v25, %v1497_v28  ;;  %v326_v31 = vand.u32 4294901760, %v325_v9 }
  0x32   : > { %522 = vmatmul.f32.gmra.mxu3 %v1457_v7  ;;  %v1511_v32 = vand.u32 4294901760, %v1505_v14 }
  0x33   : > { %1030 = vmatpush.msra.mxu3 %v1400_v48 }
  0x34   : > { %v333_v35 = vsub.f32 %v1505_v14, %v1511_v32 }
  0x35   : > { %396 = vmatmul.f32.gmra.mxu1 %v1433_v61  ;;  %1032 = vmatpush.msra.mxu3 %v682_v5 }
  0x36   : > { %311 = vmatmul.f32.gmra.mxu0 %v310_v17  ;;  %v334_v37 = vand.u32 4294901760, %v333_v35 }
  0x38   : > { %462 = vmatmul.f32.gmra.mxu2 %v1470_v12 }
  0x3a   : > { %528 = vmatmul.f32.gmra.mxu3 %v1478_v18 }
  0x3d   : > { %400 = vmatmul.f32.gmra.mxu1 %v1459_v8 }
  0x3e   : > { %319 = vmatmul.f32.gmra.mxu0 %v318_v26 }
  0x40   : > { %467 = vmatmul.f32.gmra.mxu2 %v1487_v24 }
  0x42   : > { %534 = vmatmul.f32.gmra.mxu3 %v1495_v27 }
  0x45   : > { %404 = vmatmul.f32.gmra.mxu1 %v1480_v19 }
  0x46   : > { %327 = vmatmul.f32.gmra.mxu0 %v326_v31 }
  0x48   : > { %472 = vmatmul.f32.gmra.mxu2 %v1505_v14 }
  0x4a   : > { %540 = vmatmul.f32.gmra.mxu3 %v1511_v32 }
  0x4d   : > { %408 = vmatmul.f32.gmra.mxu1 %v1497_v28 }
  0x4e   : > { %335 = vmatmul.f32.gmra.mxu0 %v334_v37 }
  0x50   : > { %477 = vmatmul.f32.gmra.mxu2 %v1519_v36 }
  0x52   : > { %546 = vmatmul.f32.gmra.mxu3 %v1524_v40 }
  0x55   : > { %412 = vmatmul.f32.gmra.mxu1 %v1513_v33 }
  0x56   : > { %343 = vmatmul.f32.gmra.mxu0 %v342_v43 }
  0x58   : > { %689 = vmatmul.f32.vlgmr.msrb.gmra.mxu2 %v1411_v52 }
  0x5a   : > { %786 = vmatmul.f32.vlgmr.msrb.gmra.mxu3 %v1372_v34 }
  0x5d   : > { %632 = vmatmul.f32.vlgmr.msrb.gmra.mxu1 %v1372_v34 }
  0x5e   : > { %579 = vmatmul.f32.vlgmr.msrb.gmra.mxu0 %v1372_v34 }
  0x60   : > { %697 = vmatmul.f32.gmra.mxu2 %v1427_v59 }
  0x62   : > { %790 = vmatmul.f32.gmra.mxu3 %v1378_v38 }
  0x65   : > { %636 = vmatmul.f32.gmra.mxu1 %v1378_v38 }
  0x66   : > { %583 = vmatmul.f32.gmra.mxu0 %v1378_v38 }
  0x68   : > { %705 = vmatmul.f32.gmra.mxu2 %v1453_v6 }
  0x6a   : > { %794 = vmatmul.f32.gmra.mxu3 %v1408_v51 }
  0x6d   : > { %640 = vmatmul.f32.gmra.mxu1 %v1408_v51 }
  0x6e   : > { %587 = vmatmul.f32.gmra.mxu0 %v1408_v51 }
  0x70   : > { %713 = vmatmul.f32.gmra.mxu2 %v310_v17 }
  0x72   : > { %798 = vmatmul.f32.gmra.mxu3 %v1433_v61 }
  0x75   : > { %644 = vmatmul.f32.gmra.mxu1 %v1433_v61 }
  0x76   : > { %591 = vmatmul.f32.gmra.mxu0 %v1433_v61 }
  0x78   : > { %721 = vmatmul.f32.gmra.mxu2 %v318_v26 }
  0x7a   : > { %802 = vmatmul.f32.gmra.mxu3 %v1459_v8 }
  0x7d   : > { %648 = vmatmul.f32.gmra.mxu1 %v1459_v8 }
  0x7e   : > { %595 = vmatmul.f32.gmra.mxu0 %v1459_v8 }
  0x80   : > { %729 = vmatmul.f32.gmra.mxu2 %v326_v31 }
  0x82   : > { %806 = vmatmul.f32.gmra.mxu3 %v1480_v19 }
  0x85   : > { %652 = vmatmul.f32.gmra.mxu1 %v1480_v19 }
  0x86   : > { %599 = vmatmul.f32.gmra.mxu0 %v1480_v19 }
  0x88   : > { %737 = vmatmul.f32.gmra.mxu2 %v334_v37 }
  0x8a   : > { %810 = vmatmul.f32.gmra.mxu3 %v1497_v28 }
  0x8d   : > { %656 = vmatmul.f32.gmra.mxu1 %v1497_v28 }
  0x8e   : > { %603 = vmatmul.f32.gmra.mxu0 %v1497_v28 }
  0x90   : > { %745 = vmatmul.f32.gmra.mxu2 %v342_v43 }
  0x92   : > { %814 = vmatmul.f32.gmra.mxu3 %v1513_v33 }
  0x95   : > { %660 = vmatmul.f32.gmra.mxu1 %v1513_v33 }
  0x96   : > { %607 = vmatmul.f32.gmra.mxu0 %v1513_v33 }
  0x98   : > { %981 = vmatmul.f32.vlgmr.msra.gmra.mxu2 %v1372_v34 }
  0x9a   : > { %v385_v45 = vpop.f32.mrf.mxu1  ;;  %1034 = vmatmul.f32.vlgmr.msra.gmra.mxu3 %v1372_v34 }
  0x9b   : > { %v288_v46 = vpop.f32.mrf.mxu0  ;;  %v1561_v47 = vpop.f32.mrf.mxu2 }
  0x9c   : > { %v289_v6 = vadd.f32 %v288_v46, %v1628_v1 }
  0x9d   : > { %906 = vmatmul.f32.vlgmr.msra.gmra.mxu1 %v1394_v44  ;;  %v1564_v48 = vpop.f32.mrf.mxu3 }
  0x9e   : > { %844 = vmatmul.f32.vlgmr.msra.gmra.mxu0 %v1382_v39 }
  0xa0   : > { %985 = vmatmul.f32.gmra.mxu2 %v1378_v38 }
  0xa2   : > { %v389_v49 = vpop.f32.mrf.mxu1  ;;  %1038 = vmatmul.f32.gmra.mxu3 %v1378_v38 }
  0xa3   : > { %v296_v52 = vpop.f32.mrf.mxu0  ;;  %v1569_v53 = vpop.f32.mrf.mxu2 }
  0xa4   : > { %v297_v15 = vadd.f32 %v296_v52, %v1628_v1 }
  0xa5   : > { %912 = vmatmul.f32.gmra.mxu1 %v1406_v50  ;;  %v1572_v34 = vpop.f32.mrf.mxu3 }
  0xa6   : > { %849 = vmatmul.f32.gmra.mxu0 %v1389_v42  ;;  %v390_v17 = vadd.f32 %v389_v49, %v297_v15 }
  0xa8   : > { %989 = vmatmul.f32.gmra.mxu2 %v1408_v51  ;;  %v449_v23 = vadd.f32 %v1569_v53, %v390_v17 }
  0xaa   : > { %v1576_v44 = vpop.f32.mrf.mxu1  ;;  %1042 = vmatmul.f32.gmra.mxu3 %v1408_v51  ;;  %v512_v26 = vadd.f32 %v1572_v34, %v449_v23 }
  0xab   : > { %v304_v39 = vpop.f32.mrf.mxu0  ;;  %v1579_v54 = vpop.f32.mrf.mxu2 }
  0xad   : > { %918 = vmatmul.f32.gmra.mxu1 %v1431_v60  ;;  %v1582_v38 = vpop.f32.mrf.mxu3 }
  0xae   : > { %854 = vmatmul.f32.gmra.mxu0 %v1420_v55 }
  0xb0   : > { %993 = vmatmul.f32.gmra.mxu2 %v1433_v61 }
  0xb2   : > { %v1586_v50 = vpop.f32.mrf.mxu1  ;;  %1046 = vmatmul.f32.gmra.mxu3 %v1433_v61 }
  0xb3   : > { %v1589_v42 = vpop.f32.mrf.mxu0  ;;  %v1591_v56 = vpop.f32.mrf.mxu2 }
  0xb5   : > { %924 = vmatmul.f32.gmra.mxu1 %v1457_v7  ;;  %v1594_v51 = vpop.f32.mrf.mxu3  ;;  %v386_v7 = vadd.f32 %v385_v45, %v289_v6 }
  0xb6   : > { %859 = vmatmul.f32.gmra.mxu0 %v1444_v2 }
  0xb7   : > { %v444_v13 = vadd.f32 %v1561_v47, %v386_v7 }
  0xb8   : > { %997 = vmatmul.f32.gmra.mxu2 %v1459_v8 }
  0xb9   : > { %v506_v16 = vadd.f32 %v1564_v48, %v444_v13 }
  0xba   : > { %v1598_v57 = vpop.f32.mrf.mxu1  ;;  %1050 = vmatmul.f32.gmra.mxu3 %v1459_v8 }
  0xbb   : > { %v1601_v55 = vpop.f32.mrf.mxu0  ;;  %v1603_v58 = vpop.f32.mrf.mxu2 }
  0xbc   : > { %v321_v47 = vadd.f32 %v1601_v55, %v1628_v1 }
  0xbd   : > { %930 = vmatmul.f32.gmra.mxu1 %v1478_v18  ;;  %v1606_v59 = vpop.f32.mrf.mxu3 }
  0xbe   : > { %864 = vmatmul.f32.gmra.mxu0 %v1470_v12  ;;  %v402_v52 = vadd.f32 %v1598_v57, %v321_v47 }
  0xc0   : > { %1001 = vmatmul.f32.gmra.mxu2 %v1480_v19 }
  0xc2   : > { %v1610_v60 = vpop.f32.mrf.mxu1  ;;  %1054 = vmatmul.f32.gmra.mxu3 %v1480_v19 }
  0xc3   : > { %v1613_v61 = vpop.f32.mrf.mxu0  ;;  %v1615_v62 = vpop.f32.mrf.mxu2 }
  0xc5   : > { %936 = vmatmul.f32.gmra.mxu1 %v1495_v27  ;;  %v1618_v63 = vpop.f32.mrf.mxu3 }
  0xc6   : > { %869 = vmatmul.f32.gmra.mxu0 %v1487_v24  ;;  %v305_v24 = vadd.f32 %v304_v39, %v1628_v1 }
  0xc8   : > { %1005 = vmatmul.f32.gmra.mxu2 %v1497_v28  ;;  %v394_v27 = vadd.f32 %v1576_v44, %v305_v24 }
  0xca   : > { %v1630_v2 = vpop.f32.mrf.mxu1  ;;  %1058 = vmatmul.f32.gmra.mxu3 %v1497_v28  ;;  %v454_v31 = vadd.f32 %v1579_v54, %v394_v27 }
  0xcb   : > { %v1633_v3 = vpop.f32.mrf.mxu0  ;;  %v1635_v4 = vpop.f32.mrf.mxu2 }
  0xcc   : > { %v518_v35 = vadd.f32 %v1582_v38, %v454_v31  ;;  %v464_v38 = vadd.f32 %v1603_v58, %v402_v52 }
  0xcd   : > { %942 = vmatmul.f32.gmra.mxu1 %v1511_v32  ;;  %v1638_v5 = vpop.f32.mrf.mxu3  ;;  %v313_v32 = vadd.f32 %v1589_v42, %v1628_v1 }
  0xce   : > { %874 = vmatmul.f32.gmra.mxu0 %v1505_v14 }
  0xd0   : > { %1009 = vmatmul.f32.gmra.mxu2 %v1513_v33 }
  0xd2   : > { %v1643_v8 = vpop.f32.mrf.mxu1  ;;  %1062 = vmatmul.f32.gmra.mxu3 %v1513_v33 }
  0xd3   : > { %v1646_v10 = vpop.f32.mrf.mxu0  ;;  %v1648_v11 = vpop.f32.mrf.mxu2 }
  0xd5   : > { %948 = vmatmul.f32.gmra.mxu1 %v1524_v40  ;;  %v1651_v12 = vpop.f32.mrf.mxu3 }
  0xd6   : > { %879 = vmatmul.f32.gmra.mxu0 %v1519_v36  ;;  %v398_v36 = vadd.f32 %v1586_v50, %v313_v32  ;;  %v329_v50 = vadd.f32 %v1613_v61, %v1628_v1  ;;  %v337_v61 = vadd.f32 %v1633_v3, %v1628_v1  ;;  %v345_v3 = vadd.f32 %v1646_v10, %v1628_v1 }
  0xd8   : > { %v459_v46 = vadd.f32 %v1591_v56, %v398_v36  ;;  %v530_v56 = vadd.f32 %v1606_v59, %v464_v38 }
  0xda   : > { %v633_v18 = vpop.f32.mrf.mxu1  ;;  %v524_v49 = vadd.f32 %v1594_v51, %v459_v46  ;;  %v406_v51 = vadd.f32 %v1610_v60, %v329_v50  ;;  %v410_v60 = vadd.f32 %v1630_v2, %v337_v61  ;;  %v414_v2 = vadd.f32 %v1643_v8, %v345_v3 }
  0xdb   : > { %v580_v19 = vpop.f32.mrf.mxu0  ;;  %v1657_v21 = vpop.f32.mrf.mxu2 }
  0xdc   : > { %v581_v20 = vadd.f32 %v580_v19, %v506_v16  ;;  %v469_v58 = vadd.f32 %v1615_v62, %v406_v51  ;;  %v474_v62 = vadd.f32 %v1635_v4, %v410_v60  ;;  %v479_v4 = vadd.f32 %v1648_v11, %v414_v2 }
  0xdd   : > { %v1665_v22 = vpop.f32.mrf.mxu3 }
  0xde   : > { %v634_v25 = vadd.f32 %v633_v18, %v581_v20  ;;  %v536_v59 = vadd.f32 %v1618_v63, %v469_v58  ;;  %v542_v63 = vadd.f32 %v1638_v5, %v474_v62  ;;  %v548_v10 = vadd.f32 %v1651_v12, %v479_v4 }
  0xdf   : > { %v1744_v5 = vperm.slane %v1624_v0, 1 }
  0xe0   : > { %1067 = vst.msk [vmem:[%s1663_s17] sm:$0xff] %vm1066_vm1, %v634_v25  ;;  %1091 = vrot.lane.b32.xlu0 %v634_v25, %s1267_s18 }
  0xe1   : > { %v691_v11 = vadd.f32 %v1657_v21, %v1744_v5 }
  0xe2   : > { %v637_v28 = vpop.f32.mrf.mxu1 }
  0xe3   : > { %v584_v29 = vpop.f32.mrf.mxu0  ;;  %v1674_v9 = vpop.f32.mrf.mxu2  ;;  %v788_v12 = vadd.f32 %v1665_v22, %v691_v11 }
  0xe4   : > { %v585_v14 = vadd.f32 %v584_v29, %v512_v26 }
  0xe5   : > { %v1676_v30 = vpop.f32.mrf.mxu3 }
  0xe6   : > { %v638_v33 = vadd.f32 %v637_v28, %v585_v14 }
  0xe8   : > { %1068 = vst.msk [vmem:[%s1663_s17 + $0x8] sm:$0xff] %vm1066_vm1, %v638_v33  ;;  %1095 = vrot.lane.b32.xlu1 %v638_v33, %s1267_s18 }
  0xea   : > { %v641_v37 = vpop.f32.mrf.mxu1 }
  0xeb   : > { %v588_v40 = vpop.f32.mrf.mxu0  ;;  %v1686_v41 = vpop.f32.mrf.mxu2 }
  0xec   : > { %v589_v43 = vadd.f32 %v588_v40, %v518_v35 }
  0xed   : > { %v1688_v45 = vpop.f32.mrf.mxu3 }
  0xee   : > { %v642_v48 = vadd.f32 %v641_v37, %v589_v43  ;;  %v699_v43 = vadd.f32 %v1674_v9, %v1744_v5 }
  0xf0   : > { %1069 = vst.msk [vmem:[%s1663_s17 + $0x10] sm:$0xff] %vm1066_vm1, %v642_v48  ;;  %1099 = vrot.lane.b32.xlu2 %v642_v48, %s1267_s18  ;;  %v792_v48 = vadd.f32 %v1676_v30, %v699_v43 }
  0xf2   : > { %v645_v53 = vpop.f32.mrf.mxu1 }
  0xf3   : > { %v592_v34 = vpop.f32.mrf.mxu0  ;;  %v1698_v44 = vpop.f32.mrf.mxu2 }
  0xf4   : > { %v593_v39 = vadd.f32 %v592_v34, %v524_v49 }
  0xf5   : > { %v1700_v54 = vpop.f32.mrf.mxu3 }
  0xf6   : > { %v646_v42 = vadd.f32 %v645_v53, %v593_v39  ;;  %v707_v39 = vadd.f32 %v1686_v41, %v1744_v5 }
  0xf8   : > { %1070 = vst.msk [vmem:[%s1663_s17 + $0x18] sm:$0xff] %vm1066_vm1, %v646_v42  ;;  %1103 = vrot.lane.b32.xlu0 %v646_v42, %s1267_s18  ;;  %v796_v42 = vadd.f32 %v1688_v45, %v707_v39 }
  0xfa   : > { %v649_v57 = vpop.f32.mrf.mxu1 }
  0xfb   : > { %v596_v55 = vpop.f32.mrf.mxu0  ;;  %v1710_v6 = vpop.f32.mrf.mxu2 }
  0xfc   : > { %v597_v7 = vadd.f32 %v596_v55, %v530_v56 }
  0xfd   : > { %v1712_v13 = vpop.f32.mrf.mxu3 }
  0xfe   : > { %v650_v15 = vadd.f32 %v649_v57, %v597_v7  ;;  %v715_v7 = vadd.f32 %v1698_v44, %v1744_v5 }
 0x100   : > { %1071 = vst.msk [vmem:[%s1663_s17 + $0x20] sm:$0xff] %vm1066_vm1, %v650_v15  ;;  %1107 = vrot.lane.b32.xlu2 %v650_v15, %s1267_s18  ;;  %v800_v15 = vadd.f32 %v1700_v54, %v715_v7 }
 0x102   : > { %v653_v16 = vpop.f32.mrf.mxu1 }
 0x103   : > { %v600_v17 = vpop.f32.mrf.mxu0  ;;  %v1722_v18 = vpop.f32.mrf.mxu2 }
 0x104   : > { %v601_v19 = vadd.f32 %v600_v17, %v536_v59 }
 0x105   : > { %v1724_v20 = vpop.f32.mrf.mxu3 }
 0x106   : > { %v654_v23 = vadd.f32 %v653_v16, %v601_v19  ;;  %v723_v19 = vadd.f32 %v1710_v6, %v1744_v5 }
 0x108   : > { %1072 = vst.msk [vmem:[%s1663_s17 + $0x28] sm:$0xff] %vm1066_vm1, %v654_v23  ;;  %1111 = vrot.lane.b32.xlu1 %v654_v23, %s1267_s18  ;;  %v804_v23 = vadd.f32 %v1712_v13, %v723_v19 }
 0x10a   : > { %v657_v24 = vpop.f32.mrf.mxu1 }
 0x10b   : > { %v604_v25 = vpop.f32.mrf.mxu0  ;;  %v1734_v26 = vpop.f32.mrf.mxu2 }
 0x10c   : > { %v605_v27 = vadd.f32 %v604_v25, %v542_v63 }
 0x10d   : > { %v1736_v28 = vpop.f32.mrf.mxu3 }
 0x10e   : > { %v658_v1 = vadd.f32 %v657_v24, %v605_v27  ;;  %v731_v27 = vadd.f32 %v1722_v18, %v1744_v5 }
 0x110   : > { %1073 = vst.msk [vmem:[%s1663_s17 + $0x30] sm:$0xff] %vm1066_vm1, %v658_v1  ;;  %1115 = vrot.lane.b32.xlu0 %v658_v1, %s1267_s18 }
 0x112   : > { %v661_v8 = vpop.f32.mrf.mxu1 }
 0x113   : > { %v608_v29 = vpop.f32.mrf.mxu0  ;;  %v1746_v14 = vpop.f32.mrf.mxu2 }
 0x114   : > { %v609_v31 = vadd.f32 %v608_v29, %v548_v10  ;;  %v808_v10 = vadd.f32 %v1724_v20, %v731_v27 }
 0x115   : > { %v1748_v32 = vpop.f32.mrf.mxu3 }
 0x116   : > { %v1752_v33 = vadd.f32 %v661_v8, %v609_v31 }
 0x118   : > { %1074 = vst.msk [vmem:[%s1663_s17 + $0x38] sm:$0xff] %vm1066_vm1, %v1752_v33 }
 0x11a   : > { %v907_v35 = vpop.f32.mrf.mxu1 }
 0x11b   : > { %v845_v0 = vpop.f32.mrf.mxu0  ;;  %v982_v36 = vpop.f32.mrf.mxu2 }
 0x11c   : > { %v846_v37 = vadd.f32 %v845_v0, %v788_v12  ;;  %v739_v12 = vadd.f32 %v1734_v26, %v1744_v5 }
 0x11d   : > { %v1035_v40 = vpop.f32.mrf.mxu3 }
 0x11e   : > { %v908_v46 = vadd.f32 %v907_v35, %v846_v37 }
 0x120   : > { %v983_v47 = vadd.f32 %v982_v36, %v908_v46  ;;  %v812_v36 = vadd.f32 %v1736_v28, %v739_v12 }
 0x122   : > { %v1036_v21 = vadd.f32 %v1035_v40, %v983_v47  ;;  %v913_v49 = vpop.f32.mrf.mxu1  ;;  %v747_v47 = vadd.f32 %v1746_v14, %v1744_v5 }
 0x123   : > { %v850_v52 = vpop.f32.mrf.mxu0  ;;  %v986_v53 = vpop.f32.mrf.mxu2 }
 0x124   : > { %v851_v34 = vadd.f32 %v850_v52, %v792_v48  ;;  %1093 = vrot.lane.b32.xlu0 %v1036_v21, %s1267_s18 }
 0x125   : > { %v1039_v22 = vpop.f32.mrf.mxu3 }
 0x126   : > { %v914_v38 = vadd.f32 %v913_v49, %v851_v34  ;;  %v816_v49 = vadd.f32 %v1748_v32, %v747_v47 }
 0x128   : > { %v987_v50 = vadd.f32 %v986_v53, %v914_v38 }
 0x12a   : > { %v1040_v9 = vadd.f32 %v1039_v22, %v987_v50  ;;  %v919_v56 = vpop.f32.mrf.mxu1 }
 0x12b   : > { %v855_v51 = vpop.f32.mrf.mxu0  ;;  %v990_v57 = vpop.f32.mrf.mxu2 }
 0x12c   : > { %v856_v30 = vadd.f32 %v855_v51, %v796_v42  ;;  %1097 = vrot.lane.b32.xlu1 %v1040_v9, %s1267_s18 }
 0x12d   : > { %v1043_v55 = vpop.f32.mrf.mxu3 }
 0x12e   : > { %v920_v58 = vadd.f32 %v919_v56, %v856_v30 }
 0x130   : > { %v991_v61 = vadd.f32 %v990_v57, %v920_v58 }
 0x132   : > { %v1044_v41 = vadd.f32 %v1043_v55, %v991_v61  ;;  %v925_v59 = vpop.f32.mrf.mxu1 }
 0x133   : > { %v860_v60 = vpop.f32.mrf.mxu0  ;;  %v994_v16 = vpop.f32.mrf.mxu2 }
 0x134   : > { %v861_v45 = vadd.f32 %v860_v60, %v800_v15  ;;  %1101 = vrot.lane.b32.xlu2 %v1044_v41, %s1267_s18 }
 0x135   : > { %v1047_v17 = vpop.f32.mrf.mxu3 }
 0x136   : > { %v926_v62 = vadd.f32 %v925_v59, %v861_v45 }
 0x138   : > { %v995_v3 = vadd.f32 %v994_v16, %v926_v62 }
 0x13a   : > { %v1048_v44 = vadd.f32 %v1047_v17, %v995_v3  ;;  %v931_v63 = vpop.f32.mrf.mxu1 }
 0x13b   : > { %v865_v2 = vpop.f32.mrf.mxu0  ;;  %v998_v24 = vpop.f32.mrf.mxu2 }
 0x13c   : > { %v866_v54 = vadd.f32 %v865_v2, %v804_v23  ;;  %1105 = vrot.lane.b32.xlu1 %v1048_v44, %s1267_s18 }
 0x13d   : > { %v1051_v25 = vpop.f32.mrf.mxu3 }
 0x13e   : > { %v932_v4 = vadd.f32 %v931_v63, %v866_v54 }
 0x140   : > { %v999_v1 = vadd.f32 %v998_v24, %v932_v4 }
 0x142   : > { %v1052_v6 = vadd.f32 %v1051_v25, %v999_v1  ;;  %v937_v8 = vpop.f32.mrf.mxu1 }
 0x143   : > { %v870_v29 = vpop.f32.mrf.mxu0  ;;  %v1002_v31 = vpop.f32.mrf.mxu2 }
 0x144   : > { %v871_v13 = vadd.f32 %v870_v29, %v808_v10  ;;  %1109 = vrot.lane.b32.xlu0 %v1052_v6, %s1267_s18 }
 0x145   : > { %v1055_v11 = vpop.f32.mrf.mxu3 }
 0x146   : > { %v938_v35 = vadd.f32 %v937_v8, %v871_v13 }
 0x148   : > { %v1003_v0 = vadd.f32 %v1002_v31, %v938_v35 }
 0x14a   : > { %v1056_v18 = vadd.f32 %v1055_v11, %v1003_v0  ;;  %v943_v37 = vpop.f32.mrf.mxu1  ;;  %v1100_v5 = vpop.permute.xlu2 %1099 }
 0x14b   : > { %v875_v40 = vpop.f32.mrf.mxu0  ;;  %v1006_v43 = vpop.f32.mrf.mxu2 }
 0x14c   : > { %v876_v20 = vadd.f32 %v875_v40, %v812_v36  ;;  %1113 = vrot.lane.b32.xlu2 %v1056_v18, %s1267_s18 }
 0x14d   : > { %v1059_v46 = vpop.f32.mrf.mxu3 }
 0x14e   : > { %v944_v48 = vadd.f32 %v943_v37, %v876_v20 }
 0x150   : > { %v1007_v21 = vadd.f32 %v1006_v43, %v944_v48 }
 0x152   : > { %v1060_v26 = vadd.f32 %v1059_v46, %v1007_v21  ;;  %v949_v53 = vpop.f32.mrf.mxu1  ;;  %v1092_v14 = vpop.permute.xlu0 %1091 }
 0x153   : > { %v880_v52 = vpop.f32.mrf.mxu0  ;;  %v1010_v34 = vpop.f32.mrf.mxu2 }
 0x154   : > { %v881_v28 = vadd.f32 %v880_v52, %v816_v49  ;;  %1119 = vrot.lane.b32.xlu2 %v1752_v33, %s1267_s18  ;;  %1117 = vrot.lane.b32.xlu1 %v1060_v26, %s1267_s18 }
 0x155   : > { %v1063_v39 = vpop.f32.mrf.mxu3 }
 0x156   : > { %v950_v22 = vadd.f32 %v949_v53, %v881_v28 }
 0x158   : > { %v1011_v38 = vadd.f32 %v1010_v34, %v950_v22 }
 0x15a   : > { %v1064_v50 = vadd.f32 %v1063_v39, %v1011_v38  ;;  %v1108_v32 = vpop.permute.xlu2 %1107  ;;  %v1096_v9 = vpop.permute.xlu1 %1095 }
 0x15c   : > { %1121 = vrot.lane.b32.xlu0 %v1064_v50, %s1267_s18 }
 0x16a   : > { %v1104_v42 = vpop.permute.xlu0 %1103 }
 0x17a   : > { %v1112_v57 = vpop.permute.xlu1 %1111 }
 0x182   : > { %v1116_v56 = vpop.permute.xlu0 %1115 }
 0x18e   : > { %v1102_v33 = vpop.permute.xlu2 %1101 }
 0x18f   : > { %v1125_v51 = vsel %vm237_vm0, %v1100_v5, %v1102_v33 }
 0x190   : > { %1141 = vst.msk [vmem:[%s213_s21 + $0x10] sm:$0xff] %vm1066_vm1, %v1125_v51 }
 0x196   : > { %v1094_v30 = vpop.permute.xlu0 %1093 }
 0x197   : > { %v1123_v55 = vsel %vm237_vm0, %v1092_v14, %v1094_v30 }
 0x198   : > { %1139 = vst.msk [vmem:[%s213_s21] sm:$0xff] %vm1066_vm1, %v1123_v55 }
 0x19e   : > { %v1098_v7 = vpop.permute.xlu1 %1097 }
 0x19f   : > { %v1124_v58 = vsel %vm237_vm0, %v1096_v9, %v1098_v7 }
 0x1a0   : > { %1140 = vst.msk [vmem:[%s213_s21 + $0x8] sm:$0xff] %vm1066_vm1, %v1124_v58 }
 0x1a6   : > { %v1114_v61 = vpop.permute.xlu2 %1113 }
 0x1a7   : > { %v1128_v15 = vsel %vm237_vm0, %v1112_v57, %v1114_v61 }
 0x1a8   : > { %1144 = vst.msk [vmem:[%s213_s21 + $0x28] sm:$0xff] %vm1066_vm1, %v1128_v15 }
 0x1ae   : > { %v1106_v41 = vpop.permute.xlu1 %1105  ;;  %v1120_v19 = vpop.permute.xlu2 %1119 }
 0x1af   : > { %v1126_v59 = vsel %vm237_vm0, %v1104_v42, %v1106_v41 }
 0x1b0   : > { %1142 = vst.msk [vmem:[%s213_s21 + $0x18] sm:$0xff] %vm1066_vm1, %v1126_v59 }
 0x1b6   : > { %v1110_v60 = vpop.permute.xlu0 %1109 }
 0x1b7   : > { %v1127_v16 = vsel %vm237_vm0, %v1108_v32, %v1110_v60 }
 0x1b8   : > { %1143 = vst.msk [vmem:[%s213_s21 + $0x20] sm:$0xff] %vm1066_vm1, %v1127_v16 }
 0x1c6   : > { %v1118_v45 = vpop.permute.xlu1 %1117 }
 0x1c7   : > { %v1129_v17 = vsel %vm237_vm0, %v1116_v56, %v1118_v45 }
 0x1c8   : > { %1145 = vst.msk [vmem:[%s213_s21 + $0x30] sm:$0xff] %vm1066_vm1, %v1129_v17 }
 0x1ce   : > { %v1122_v62 = vpop.permute.xlu0 %1121 }
 0x1cf   : > { %v1130_v3 = vsel %vm237_vm0, %v1120_v19, %v1122_v62 }
 0x1d0   : > { %1146 = vst.msk [vmem:[%s213_s21 + $0x38] sm:$0xff] %vm1066_vm1, %v1130_v3 }
 0x1d1 PF: > { %s15_s15 = sadd.s32 1, %s1265_s15  }
 0x1d2   : > { %p12_p4 = scmp.ge.s32.totalorder %s15_s15, 4  }
 0x1d4   :  { %14 = sbr.rel (!%p12_p4) target bundleno = 1 (0x1), region = 74 }

// kernel: encoder_forward.3
= control target key start
LH: loop header
LB: loop body
LE: loop exit
PB: predicated region body
PF: predicated region fallthrough
CT: control target
= control target key end

     0   :  { %s5051_s17 = smov 0   ;;  %s6110_s0 = inlined_call_operand.vmem [shape: s32[8,1], index: 0, kind: input, shape index: {}]   ;;  %s6111_s1 = inlined_call_operand.vmem [shape: f32[16,8,96], index: 1, kind: input, shape index: {}]   ;;  %s6112_s2 = inlined_call_operand.vmem [shape: f32[16,8,96], index: 2, kind: input, shape index: {}]   ;;  %s6113_s3 = inlined_call_operand.vmem [shape: f32[32,96], index: 3, kind: input, shape index: {}]   ;;  %s6114_s4 = inlined_call_operand.vmem [shape: f32[1,96], index: 4, kind: input, shape index: {}]   ;;  %s6115_s5 = inlined_call_operand.vmem [shape: f32[32,96], index: 5, kind: input, shape index: {}]   ;;  %s6116_s6 = inlined_call_operand.vmem [shape: f32[1,96], index: 6, kind: input, shape index: {}]   ;;  %s6117_s7 = inlined_call_operand.vmem [shape: f32[64,32], index: 7, kind: input, shape index: {}]   ;;  %s6118_s8 = inlined_call_operand.vmem [shape: f32[1,32], index: 8, kind: input, shape index: {}]   ;;  %s6119_s9 = inlined_call_operand.vmem [shape: f32[16,8,32], index: 9, kind: output, shape index: {0}]   ;;  %s6120_s10 = inlined_call_operand.vmem [shape: f32[16,8,32], index: 10, kind: output, shape index: {1}]   ;;  %s6121_s11 = inlined_call_operand.vmem [shape: f32[8,32], index: 11, kind: output, shape index: {2}]  }
   0x1 LB: > { %s5057_s18 = sadd.s32 4294967295, %s4984_s17   ;;  %p4797_p0 = scmp.ge.s32.totalorder %s4984_s17, 1  ;;  %s4984_s17 = sphi %s5051_s17, %s22_s17  }
   0x2   : > { %p355_p1 = scmp.lt.s32.totalorder %s4984_s17, 3 }
   0x4   : > { %p356_p2 = pnand %p4797_p0, %p355_p1 }
   0x6   : > { %359 = sbr.rel (%p356_p2) target bundleno = 5052 (0x13bc), region = 56 }
   0xb   : > { %s5062_s19 = sshll.u32 %s5057_s18, 3  ;;  %s413_s20 = ssub.s32 1, %s5057_s18 }
   0xc   : > { %p408_p3 = scmp.lt.s32.totalorder %s5062_s19, 15  ;;  %s4800_s21 = sshll.u32 %s413_s20, 3 }
   0xd   : > { %p415_p4 = scmp.lt.s32.totalorder %s4800_s21, 15  ;;  %p4806_p5 = scmp.ne.s32.totalorder %s5057_s18, 0 }
   0xe   : > { %s409_s22 = scalar_select %p408_p3, %s5062_s19, 15 }
   0xf   : > { %s6136_s21 = smov (!%p415_p4, %s4800_s21), 15  ;;  %438 = sbr.rel (%p4806_p5) target bundleno = 23 (0x17), region = 60 }
  0x10   : > { %s4799_s23 = sshll.u32 %s409_s22, 3  ;;  %s4801_s27 = sshll.u32 %s6136_s21, 3 }
  0x11   : > { %s5070_s26 = scalar_lea.vmem %s6111_s1, %s4799_s23  ;;  %s5075_s30 = scalar_lea.vmem %s6112_s2, %s4801_s27 }
  0x12   : > { %s5080_s14 = scalar_lea.vmem %s6119_s9, %s4799_s23  ;;  %s5085_s20 = scalar_lea.vmem %s6120_s10, %s4801_s27 }
  0x14   : > { %vm439_vm0 = vcmask 261120   ;;  %v4986_v0 = vmov 0.0  }
  0x15   : > { %440 = vst.msk [vmem:[#allocation2] sm:$0xff] %vm439_vm0, %v4986_v0 }
  0x16   : > { %441 = vst.msk [vmem:[#allocation3] sm:$0xff] %vm439_vm0, %v4986_v0 }
  0x17 PF: > { %v446_v1 = vld [vmem:[%s6113_s3 + $0x18] sm:$0xff]  ;;  %v445_v2 = vld [vmem:[%s6113_s3 + $0x10] sm:$0xff]  ;;  %v444_v3 = vld [vmem:[%s6113_s3 + $0x8] sm:$0xff]  ;;  %vm460_vm1 = vcmask 261120   ;;  %s4987_s24 = smov 32   ;;  %s4988_s13 = smov 64  }
  0x18   : > { %v5097_v4 = vand.u32 4294901760, %v446_v1  ;;  %v5099_v5 = vand.u32 4294901760, %v445_v2  ;;  %v5101_v6 = vand.u32 4294901760, %v444_v3  ;;  %v443_v7 = vld [vmem:[%s6113_s3] sm:$0xff]  ;;  %v451_v9 = vld [vmem:[%s6115_s5 + $0x18] sm:$0xff]  ;;  %v450_v13 = vld [vmem:[%s6115_s5 + $0x10] sm:$0xff] }
  0x19   : > { %v5109_v10 = vand.u32 4294901760, %v443_v7  ;;  %v5112_v12 = vand.u32 4294901760, %v451_v9  ;;  %v449_v14 = vld [vmem:[%s6115_s5 + $0x8] sm:$0xff]  ;;  %v448_v19 = vld [vmem:[%s6115_s5] sm:$0xff]  ;;  %v5140_v21 = vand.u32 4294901760, %v450_v13  ;;  %s4990_s21 = smov 96  }
  0x1a   : > { %v5122_v15 = vsub.f32 %v446_v1, %v5097_v4  ;;  %477 = vmatpush.msra.mxu0 %v5097_v4  ;;  %v5126_v16 = vsub.f32 %v445_v2, %v5099_v5  ;;  %577 = vmatpush.msra.mxu3 %v5097_v4  ;;  %v5130_v17 = vsub.f32 %v444_v3, %v5101_v6  ;;  %v5145_v23 = vand.u32 4294901760, %v449_v14  ;;  %v5303_v63 = vld [vmem:[%s6114_s4] ss:$0 sm:$0xff]  ;;  %s940_s22 = ssub.s32 15, %s5062_s19  ;;  %s1434_s23 = ssub.s32 14, %s5062_s19 }
  0x1b   : > { %v5138_v20 = vsub.f32 %v443_v7, %v5109_v10  ;;  %v5143_v22 = vsub.f32 %v451_v9, %v5112_v12  ;;  %v5167_v30 = vsub.f32 %v450_v13, %v5140_v21  ;;  %v5169_v31 = vand.u32 4294901760, %v448_v19  ;;  %s1450_s25 = sadd.s32 2, %s5062_s19  ;;  %s1928_s28 = ssub.s32 13, %s5062_s19 }
  0x1c   : > { %v453_v8 = vld [vmem:[#allocation2] sm:$0xff]  ;;  %548 = vmatpush.msra.mxu2 %v5122_v15  ;;  %479 = vmatpush.msra.mxu0 %v5099_v5  ;;  %v5150_v24 = vand.u32 4294901760, %v5122_v15  ;;  %v5153_v25 = vand.u32 4294901760, %v5126_v16  ;;  %v5157_v27 = vand.u32 4294901760, %v5130_v17  ;;  %v5186_v38 = vsub.f32 %v449_v14, %v5145_v23  ;;  %s1944_s16 = sadd.s32 3, %s5062_s19  ;;  %s2932_s27 = sadd.s32 5, %s5062_s19 }
  0x1d   : > { %v462_v11 = vsel %vm460_vm1, %v453_v8, 0  ;;  %686 = vrot.lane.b32.xlu2 %v453_v8, %s4987_s24  ;;  %579 = vmatpush.msra.mxu3 %v5099_v5  ;;  %v5161_v28 = vand.u32 4294901760, %v5143_v22  ;;  %v5164_v29 = vand.u32 4294901760, %v5138_v20  ;;  %v5183_v37 = vand.u32 4294901760, %v5167_v30  ;;  %v5188_v39 = vld [vmem:[#allocation3] sm:$0xff]  ;;  %s3410_s29 = ssub.s32 10, %s5062_s19 }
  0x1e   : > { %v5132_v18 = vand.u32 4294901760, %v462_v11  ;;  %551 = vmatpush.msra.mxu2 %v5126_v16  ;;  %v508_v32 = vsub.f32 %v5122_v15, %v5150_v24  ;;  %481 = vmatpush.msra.mxu0 %v5101_v6  ;;  %v514_v33 = vsub.f32 %v5126_v16, %v5153_v25  ;;  %v520_v34 = vsub.f32 %v5130_v17, %v5157_v27  ;;  %p4852_p6 = scmp.ne.s32.totalorder %s5057_s18, 1 }
  0x1f   : > { %581 = vmatpush.msra.mxu3 %v5101_v6  ;;  %v757_v36 = vsub.f32 %v5143_v22, %v5161_v28  ;;  %v526_v43 = vsub.f32 %v5138_v20, %v5164_v29  ;;  %v763_v45 = vsub.f32 %v5167_v30, %v5183_v37  ;;  %v5205_v46 = vand.u32 4294901760, %v5186_v38 }
  0x20   : > { %v485_v26 = vsub.f32 %v462_v11, %v5132_v18  ;;  %v5190_v40 = vand.u32 4294901760, %v508_v32  ;;  %554 = vmatpush.msra.mxu2 %v5130_v17  ;;  %v5193_v41 = vand.u32 4294901760, %v514_v33  ;;  %483 = vmatpush.msra.mxu0 %v5109_v10  ;;  %v5209_v47 = vand.u32 4294901760, %v520_v34 }
  0x21   : > { %583 = vmatpush.msra.mxu3 %v5109_v10  ;;  %v5200_v44 = vand.u32 4294901760, %v757_v36  ;;  %v711_v49 = vsel %vm460_vm1, %v5188_v39, 0  ;;  %v5214_v50 = vsub.f32 %v448_v19, %v5169_v31  ;;  %v5216_v51 = vand.u32 4294901760, %v763_v45 }
  0x22   : > { %v486_v35 = vand.u32 4294901760, %v485_v26  ;;  %606 = vmatpush.msrb.mxu0 %v5150_v24  ;;  %510 = vmatpush.msra.mxu1 %v5190_v40  ;;  %v769_v52 = vsub.f32 %v5186_v38, %v5205_v46  ;;  %v733_v53 = vand.u32 4294901760, %v711_v49  ;;  %v5222_v54 = vand.u32 4294901760, %v526_v43 }
  0x23   : > { %557 = vmatpush.msra.mxu2 %v5138_v20  ;;  %v5225_v55 = vand.u32 4294901760, %v5214_v50  ;;  %759 = vmatpush.msrb.mxu3 %v5200_v44 }
  0x24   : > { %v487_v42 = vsub.f32 %v485_v26, %v486_v35  ;;  %560 = vmatmul.f32.vlgmr.msra.gmra.mxu2 %v485_v26  ;;  %587 = vmatmul.f32.vlgmr.msra.gmra.mxu3 %v486_v35  ;;  %v734_v56 = vsub.f32 %v711_v49, %v733_v53  ;;  %v5234_v58 = vand.u32 4294901760, %v769_v52 }
  0x25   : > { %516 = vmatpush.msra.mxu1 %v5193_v41  ;;  %726 = vmatpush.msrb.mxu2 %v5112_v12  ;;  %v775_v57 = vsub.f32 %v5214_v50, %v5225_v55 }
  0x26   : > { %v488_v48 = vand.u32 4294901760, %v487_v42  ;;  %610 = vmatpush.msrb.mxu0 %v5153_v25  ;;  %765 = vmatpush.msrb.mxu3 %v5216_v51  ;;  %v735_v59 = vand.u32 4294901760, %v734_v56 }
  0x27   : > { %522 = vmatpush.msra.mxu1 %v5209_v47  ;;  %728 = vmatpush.msrb.mxu2 %v5140_v21  ;;  %v5240_v61 = vand.u32 4294901760, %v775_v57 }
  0x28   : > { %489 = vmatmul.f32.vlgmr.msra.gmra.mxu0 %v488_v48  ;;  %v736_v60 = vsub.f32 %v734_v56, %v735_v59  ;;  %771 = vmatpush.msrb.mxu3 %v5234_v58 }
  0x29   : > { %528 = vmatpush.msra.mxu1 %v5222_v54  ;;  %730 = vmatpush.msrb.mxu2 %v5145_v23 }
  0x2a   : > { %530 = vmatmul.f32.vlgmr.msra.gmra.mxu1 %v5132_v18  ;;  %614 = vmatpush.msrb.mxu0 %v5157_v27  ;;  %v737_v62 = vand.u32 4294901760, %v736_v60  ;;  %v4809_v60 = vld [vmem:[%s5075_s30 + $0x38] sm:$0xff] }
  0x2b   : > { %637 = vmatpush.msrb.mxu1 %v5097_v4  ;;  %732 = vmatpush.msrb.mxu2 %v5169_v31 }
  0x2c   : > { %618 = vmatpush.msrb.mxu0 %v5164_v29  ;;  %738 = vmatmul.f32.vlgmr.msrb.gmra.mxu2 %v737_v62 }
  0x2d   : > { %639 = vmatpush.msrb.mxu1 %v5099_v5  ;;  %855 = vmatpush.msra.mxu2 %v5161_v28 }
  0x2e   : > { %777 = vmatpush.msrb.mxu3 %v5240_v61  ;;  %797 = vmatpush.msra.mxu0 %v5143_v22 }
  0x2f   : > { %641 = vmatpush.msrb.mxu1 %v5101_v6  ;;  %779 = vmatmul.f32.vlgmr.msrb.gmra.mxu3 %v733_v53 }
  0x30   : > { %620 = vmatmul.f32.vlgmr.msrb.gmra.mxu0 %v5132_v18  ;;  %859 = vmatpush.msra.mxu2 %v5183_v37 }
  0x31   : > { %643 = vmatpush.msrb.mxu1 %v5109_v10  ;;  %886 = vmatpush.msra.mxu3 %v5112_v12 }
  0x32   : > { %645 = vmatmul.f32.vlgmr.msrb.gmra.mxu1 %v5132_v18  ;;  %800 = vmatpush.msra.mxu0 %v5167_v30  ;;  %v5309_v18 = vld [vmem:[%s6116_s6] ss:$0 sm:$0xff] }
  0x33   : > { %826 = vmatpush.msra.mxu1 %v5112_v12  ;;  %863 = vmatpush.msra.mxu2 %v5205_v46 }
  0x34   : > { %888 = vmatpush.msra.mxu3 %v5140_v21  ;;  %803 = vmatpush.msra.mxu0 %v5186_v38 }
  0x35   : > { %828 = vmatpush.msra.mxu1 %v5140_v21  ;;  %867 = vmatpush.msra.mxu2 %v5225_v55 }
  0x36   : > { %890 = vmatpush.msra.mxu3 %v5145_v23  ;;  %806 = vmatpush.msra.mxu0 %v5214_v50 }
  0x37   : > { %830 = vmatpush.msra.mxu1 %v5145_v23  ;;  %869 = vmatmul.f32.vlgmr.msra.gmra.mxu2 %v733_v53 }
  0x38   : > { %892 = vmatpush.msra.mxu3 %v5169_v31  ;;  %809 = vmatmul.f32.vlgmr.msra.gmra.mxu0 %v734_v56  ;;  %v456_v56 = vld [vmem:[%s5070_s26] sm:$0xff] }
  0x39   : > { %832 = vmatpush.msra.mxu1 %v5169_v31  ;;  %894 = vmatmul.f32.vlgmr.msra.gmra.mxu3 %v733_v53 }
  0x3a   : > { %836 = vmatmul.f32.vlgmr.msra.gmra.mxu1 %v735_v59  ;;  %1048 = vmatpush.msrb.mxu2 %v5122_v15 }
  0x3b   : > { %1010 = vmatpush.msrb.mxu1 %v5190_v40  ;;  %1077 = vmatpush.msrb.mxu3 %v5097_v4 }
  0x3c   : > { %977 = vmatpush.msrb.mxu0 %v5097_v4  ;;  %1051 = vmatpush.msrb.mxu2 %v5126_v16 }
  0x3d   : > { %1016 = vmatpush.msrb.mxu1 %v5193_v41  ;;  %1079 = vmatpush.msrb.mxu3 %v5099_v5 }
  0x3e   : > { %979 = vmatpush.msrb.mxu0 %v5099_v5  ;;  %1054 = vmatpush.msrb.mxu2 %v5130_v17 }
  0x3f   : > { %1022 = vmatpush.msrb.mxu1 %v5209_v47  ;;  %1081 = vmatpush.msrb.mxu3 %v5101_v6 }
  0x40   : > { %981 = vmatpush.msrb.mxu0 %v5101_v6  ;;  %1057 = vmatpush.msrb.mxu2 %v5138_v20 }
  0x41   : > { %1028 = vmatpush.msrb.mxu1 %v5222_v54  ;;  %1083 = vmatpush.msrb.mxu3 %v5109_v10 }
  0x42   : > { %983 = vmatpush.msrb.mxu0 %v5109_v10  ;;  %1223 = vmatpush.msra.mxu2 %v5112_v12 }
  0x43   : > { %1137 = vmatpush.msra.mxu1 %v5097_v4  ;;  %1256 = vmatpush.msra.mxu3 %v5200_v44 }
  0x44   : > { %1106 = vmatpush.msra.mxu0 %v5150_v24  ;;  %1225 = vmatpush.msra.mxu2 %v5140_v21 }
  0x45   : > { %1139 = vmatpush.msra.mxu1 %v5099_v5  ;;  %1262 = vmatpush.msra.mxu3 %v5216_v51 }
  0x46   : > { %1110 = vmatpush.msra.mxu0 %v5153_v25  ;;  %1227 = vmatpush.msra.mxu2 %v5145_v23 }
  0x47   : > { %1141 = vmatpush.msra.mxu1 %v5101_v6  ;;  %1268 = vmatpush.msra.mxu3 %v5234_v58 }
  0x48   : > { %1114 = vmatpush.msra.mxu0 %v5157_v27  ;;  %1229 = vmatpush.msra.mxu2 %v5169_v31 }
  0x49   : > { %1143 = vmatpush.msra.mxu1 %v5109_v10  ;;  %1274 = vmatpush.msra.mxu3 %v5240_v61 }
  0x4a   : > { %1118 = vmatpush.msra.mxu0 %v5164_v29 }
  0xa5   : > { %v490_v0 = vpop.f32.mrf.mxu0 }
  0xa6   : > { %v491_v1 = vadd.f32 %v5303_v63, %v490_v0 }
  0xa7   : > { %v531_v2 = vpop.f32.mrf.mxu1  ;;  %v561_v3 = vpop.f32.mrf.mxu2 }
  0xa8   : > { %v532_v7 = vadd.f32 %v531_v2, %v491_v1  ;;  %v588_v8 = vpop.f32.mrf.mxu3 }
  0xaa   : > { %v562_v9 = vadd.f32 %v561_v3, %v532_v7 }
  0xac   : > { %v589_v11 = vadd.f32 %v588_v8, %v562_v9 }
  0xad   : > { %v621_v13 = vpop.f32.mrf.mxu0 }
  0xae   : > { %v622_v14 = vadd.f32 %v621_v13, %v589_v11  ;;  %v5319_v13 = vld [vmem:[%s6110_s0] sm:$0xff] }
  0xaf   : > { %v646_v19 = vpop.f32.mrf.mxu1  ;;  %v739_v32 = vpop.f32.mrf.mxu2 }
  0xb0   : > { %v647_v26 = vadd.f32 %v646_v19, %v622_v14  ;;  %v740_v33 = vadd.f32 %v5309_v18, %v739_v32  ;;  %v691_v14 = vstv %s5062_s19  ;;  %v6122_v19 = vmov 0  }
  0xb1   : > { %4868 = vset.pattern.permute.xlu0 %v6122_v19  ;;  %vm692_vm2 = vcmp.lt.s32.totalorder %v691_v14, %v5319_v13  ;;  %4869 = vset.pattern.permute.xlu1 %v6122_v19 }
  0xb2   : > { %670 = vrot.lane.b32.xlu0 %v647_v26, %s4988_s13  ;;  %v780_v34 = vpop.f32.mrf.mxu3  ;;  %v649_v57 = vadd.f32 %v647_v26, %v456_v56  ;;  %v693_v26 = vsel %vm692_vm2, 1, %v6122_v19  ;;  %4870 = vset.pattern.permute.xlu2 %v6122_v19 }
  0xb3   : > { %v781_v35 = vadd.f32 %v780_v34, %v740_v33 }
  0xb4   : > { %v4808_v59 = vmul.f32 -1.442695, %v649_v57 }
  0xb5   : > { %v810_v36 = vpop.f32.mrf.mxu0 }
  0xb6   : > { %v811_v42 = vadd.f32 %v810_v36, %v781_v35  ;;  %4873 = vpow2.f32 %v4808_v59 }
  0xb7   : > { %v837_v43 = vpop.f32.mrf.mxu1 }
  0xb8   : > { %v838_v45 = vadd.f32 %v837_v43, %v811_v42 }
  0xba   : > { %v870_v48 = vpop.f32.mrf.mxu2 }
  0xbb   : > { %v871_v49 = vadd.f32 %v870_v48, %v838_v45 }
  0xbc   : > { %v895_v52 = vpop.f32.mrf.mxu3  ;;  %v4874_v62 = vpop.eup %4873 }
  0xbd   : > { %v896_v53 = vadd.f32 %v895_v52, %v871_v49  ;;  %v653_v1 = vadd.f32 1.0, %v4874_v62 }
  0xbf   : > { %919 = vrot.lane.b32.xlu0 %v896_v53, %s4988_s13  ;;  %v898_v0 = vadd.f32 %v4809_v60, %v896_v53  ;;  %4875 = vrcp.f32 %v653_v1  ;;  %v665_v35 = vand.u32 2147483648, %v653_v1  ;;  %vm659_vm4 = vweird.f32 %v653_v1 }
  0xc0   : > { %v663_v36 = vand.u32 2147483647, %v653_v1 }
  0xc1   : > { %v4810_v2 = vmul.f32 -1.442695, %v898_v0  ;;  %v666_v45 = vor.u32 1.1754944e-38, %v665_v35  ;;  %v687_v35 = vpop.permute.xlu2 %686 }
  0xc2   : > { %vm664_vm6 = vcmp.eq.f32.partialorder %v663_v36, 8.507059e+37 }
  0xc3   : > { %4877 = vpow2.f32 %v4810_v2 }
  0xc5   : > { %v4876_v3 = vpop.eup %4875 }
  0xc6   : > { %v655_v8 = vmul.f32 %v4876_v3, %v653_v1  ;;  %vm660_vm3 = vweird.f32 %v4876_v3 }
  0xc7   : > { %695 = vperm.xlu0 %4868, %v693_v26   ;;  %vm661_vm5 = vmor %vm659_vm4, %vm660_vm3 }
  0xc8   : > { %v656_v11 = vsub.f32 1.0, %v655_v8 }
  0xc9   : > { %v4878_v7 = vpop.eup %4877 }
  0xca   : > { %v902_v9 = vadd.f32 1.0, %v4878_v7  ;;  %v657_v32 = vmul.f32 %v4876_v3, %v656_v11 }
  0xcc   : > { %4879 = vrcp.f32 %v902_v9  ;;  %v658_v34 = vadd.f32 %v4876_v3, %v657_v32  ;;  %v914_v62 = vand.u32 2147483648, %v902_v9  ;;  %vm908_vm8 = vweird.f32 %v902_v9 }
  0xcd   : > { %v912_v0 = vand.u32 2147483647, %v902_v9 }
  0xce   : > { %v662_v43 = vsel %vm661_vm5, %v4876_v3, %v658_v34  ;;  %v915_v1 = vor.u32 1.1754944e-38, %v914_v62 }
  0xcf   : > { %v667_v49 = vsel %vm664_vm6, %v666_v45, %v662_v43  ;;  %vm913_vm10 = vcmp.eq.f32.partialorder %v912_v0, 8.507059e+37 }
  0xd0   : > { %v680_v36 = vsub.f32 1.0, %v667_v49  ;;  %v689_v45 = vmul.f32 %v687_v35, %v667_v49 }
  0xd2   : > { %v4880_v33 = vpop.eup %4879 }
  0xd3   : > { %v904_v42 = vmul.f32 %v4880_v33, %v902_v9  ;;  %vm909_vm7 = vweird.f32 %v4880_v33 }
  0xd4   : > { %vm910_vm9 = vmor %vm908_vm8, %vm909_vm7 }
  0xd5   : > { %v905_v48 = vsub.f32 1.0, %v904_v42 }
  0xd7   : > { %v906_v57 = vmul.f32 %v4880_v33, %v905_v48 }
  0xd9   : > { %v907_v59 = vadd.f32 %v4880_v33, %v906_v57 }
  0xdb   : > { %v911_v2 = vsel %vm910_vm9, %v4880_v33, %v907_v59  ;;  %v941_v33 = vstv %s940_s22 }
  0xdc   : > { %v916_v3 = vsel %vm913_vm10, %v915_v1, %v911_v2  ;;  %vm942_vm11 = vcmp.lt.s32.totalorder %v941_v33, %v5319_v13 }
  0xdd   : > { %v929_v57 = vsub.f32 1.0, %v916_v3 }
 0x124   : > { %v671_v52 = vpop.permute.xlu0 %670 }
 0x125   : > { %v673_v53 = vmul.f32 %v671_v52, %v667_v49 }
 0x127   : > { %675 = vrot.lane.b32.xlu1 %v673_v53, %s4988_s13 }
 0x131   : > { %v920_v7 = vpop.permute.xlu0 %919 }
 0x132   : > { %v922_v8 = vmul.f32 %v920_v7, %v916_v3 }
 0x134   : > { %924 = vrot.lane.b32.xlu1 %v922_v8, %s4988_s13 }
 0x139   : > { %v696_v42 = vpop.permute.xlu0 %695 }
 0x13a   : > { %vm697_vm12 = vcmp.eq.s32.totalorder %v696_v42, 1 }
 0x199   : > { %v676_v11 = vpop.permute.xlu1 %675 }
 0x19a   : > { %v678_v14 = vadd.f32 %v676_v11, %v456_v56  ;;  %v943_v56 = vsel %vm942_vm11, 1, %v6122_v19 }
 0x19c   : > { %4881 = vtanh.f32 %v678_v14 }
 0x1a2   : > { %v4882_v26 = vpop.eup %4881 }
 0x1a3   : > { %682 = vrot.lane.b32.xlu2 %v4882_v26, %s4990_s21 }
 0x1a6   : > { %v925_v32 = vpop.permute.xlu1 %924 }
 0x1a7   : > { %v927_v34 = vadd.f32 %v4809_v60, %v925_v32 }
 0x1a9   : > { %4883 = vtanh.f32 %v927_v34 }
 0x1ab   : > { %935 = vrot.lane.b32.xlu2 %v5188_v39, %s4987_s24  ;;  %s956_s24 = sadd.s32 1, %s5062_s19 }
 0x1af   : > { %v4884_v9 = vpop.eup %4883 }
 0x1b0   : > { %931 = vrot.lane.b32.xlu1 %v4884_v9, %s4990_s21 }
 0x1b8   : > { %945 = vperm.xlu1 %4869, %v943_v56  }
 0x1fd   : > { %v683_v43 = vpop.permute.xlu2 %682 }
 0x1fe   : > { %v685_v60 = vmul.f32 %v683_v43, %v680_v36 }
 0x200   : > { %v690_v48 = vadd.f32 %v689_v45, %v685_v60 }
 0x202   : > { %v5336_v52 = vsel %vm697_vm12, %v690_v48, 0.0  ;;  %v5338_v39 = vsel %vm697_vm12, %v690_v48, %v687_v35 }
 0x203   : > { %6124 = vst [vmem:[#allocation4_spill] sm:$0xff] %v5336_v52  ;;  %960 = vrot.lane.b32.xlu2 %v5338_v39, %s4990_s21  ;;  %v3164_v52 = vstv %s2932_s27 }
 0x205   : > { %v936_v59 = vpop.permute.xlu2 %935 }
 0x206   : > { %v938_v0 = vmul.f32 %v936_v59, %v916_v3 }
 0x222   : > { %v932_v53 = vpop.permute.xlu1 %931 }
 0x223   : > { %v934_v62 = vmul.f32 %v932_v53, %v929_v57 }
 0x225   : > { %v939_v2 = vadd.f32 %v938_v0, %v934_v62 }
 0x22a   : > { %v946_v1 = vpop.permute.xlu1 %945 }
 0x22b   : > { %vm947_vm13 = vcmp.eq.s32.totalorder %v946_v1, 1 }
 0x22c   : > { %v5342_v7 = vsel %vm947_vm13, %v939_v2, 0.0  ;;  %v5344_v49 = vsel %vm947_vm13, %v939_v2, %v936_v59 }
 0x22d   : > { %1206 = vrot.lane.b32.xlu0 %v5344_v49, %s4990_s21 }
 0x25d   : > { %v961_v8 = vpop.permute.xlu2 %960 }
 0x25e   : > { %v962_v11 = vsel %vm460_vm1, %v961_v8, 0 }
 0x25f   : > { %v984_v14 = vand.u32 4294901760, %v962_v11 }
 0x261   : > { %v985_v26 = vsub.f32 %v962_v11, %v984_v14  ;;  %1030 = vmatmul.f32.vlgmr.msrb.gmra.mxu1 %v984_v14 }
 0x262   : > { %1323 = vmatpush.msrb.mxu1 %v5112_v12 }
 0x263   : > { %v986_v32 = vand.u32 4294901760, %v985_v26  ;;  %1060 = vmatmul.f32.vlgmr.msrb.gmra.mxu2 %v985_v26 }
 0x264   : > { %1325 = vmatpush.msrb.mxu1 %v5140_v21  ;;  %1352 = vmatpush.msrb.mxu2 %v5161_v28 }
 0x265   : > { %v987_v3 = vsub.f32 %v985_v26, %v986_v32  ;;  %1087 = vmatmul.f32.vlgmr.msrb.gmra.mxu3 %v986_v32 }
 0x266   : > { %1327 = vmatpush.msrb.mxu1 %v5145_v23  ;;  %1383 = vmatpush.msrb.mxu3 %v5112_v12 }
 0x267   : > { %v988_v34 = vand.u32 4294901760, %v987_v3  ;;  %1356 = vmatpush.msrb.mxu2 %v5183_v37  ;;  %v5402_v3 = vld [vmem:[%s5070_s26 + $0x8] sm:$0xff] }
 0x268   : > { %1329 = vmatpush.msrb.mxu1 %v5169_v31  ;;  %1385 = vmatpush.msrb.mxu3 %v5140_v21 }
 0x269   : > { %989 = vmatmul.f32.vlgmr.msrb.gmra.mxu0 %v988_v34  ;;  %1145 = vmatmul.f32.vlgmr.msra.gmra.mxu1 %v984_v14 }
 0x26a   : > { %1294 = vmatpush.msrb.mxu0 %v5143_v22  ;;  %1387 = vmatpush.msrb.mxu3 %v5145_v23 }
 0x26b   : > { %1360 = vmatpush.msrb.mxu2 %v5205_v46  ;;  %1504 = vmatpush.msra.mxu1 %v5190_v40 }
 0x26c   : > { %1297 = vmatpush.msrb.mxu0 %v5167_v30  ;;  %1389 = vmatpush.msrb.mxu3 %v5169_v31 }
 0x26d   : > { %1364 = vmatpush.msrb.mxu2 %v5225_v55  ;;  %1510 = vmatpush.msra.mxu1 %v5193_v41 }
 0x26e   : > { %1300 = vmatpush.msrb.mxu0 %v5186_v38 }
 0x26f   : > { %1516 = vmatpush.msra.mxu1 %v5209_v47 }
 0x270   : > { %1303 = vmatpush.msrb.mxu0 %v5214_v50 }
 0x271   : > { %1120 = vmatmul.f32.vlgmr.msra.gmra.mxu0 %v984_v14  ;;  %1522 = vmatpush.msra.mxu1 %v5222_v54 }
 0x272   : > { %1471 = vmatpush.msra.mxu0 %v5097_v4 }
 0x274   : > { %1473 = vmatpush.msra.mxu0 %v5099_v5 }
 0x276   : > { %1475 = vmatpush.msra.mxu0 %v5101_v6 }
 0x278   : > { %1477 = vmatpush.msra.mxu0 %v5109_v10 }
 0x29f   : > { %v1207_v9 = vpop.permute.xlu0 %1206 }
 0x2a0   : > { %v1208_v33 = vsel %vm460_vm1, %v1207_v9, 0 }
 0x2a1   : > { %v1230_v56 = vand.u32 4294901760, %v1208_v33 }
 0x2a3   : > { %v1231_v35 = vsub.f32 %v1208_v33, %v1230_v56  ;;  %1276 = vmatmul.f32.vlgmr.msra.gmra.mxu3 %v1230_v56 }
 0x2a4   : > { %1571 = vmatpush.msra.mxu3 %v5097_v4 }
 0x2a5   : > { %v1232_v36 = vand.u32 4294901760, %v1231_v35  ;;  %1306 = vmatmul.f32.vlgmr.msrb.gmra.mxu0 %v1231_v35 }
 0x2a6   : > { %1573 = vmatpush.msra.mxu3 %v5099_v5  ;;  %1600 = vmatpush.msrb.mxu0 %v5150_v24 }
 0x2a7   : > { %v1233_v42 = vsub.f32 %v1231_v35, %v1232_v36  ;;  %1333 = vmatmul.f32.vlgmr.msrb.gmra.mxu1 %v1232_v36 }
 0x2a8   : > { %1575 = vmatpush.msra.mxu3 %v5101_v6  ;;  %1631 = vmatpush.msrb.mxu1 %v5097_v4 }
 0x2a9   : > { %v1234_v43 = vand.u32 4294901760, %v1233_v42  ;;  %1604 = vmatpush.msrb.mxu0 %v5153_v25 }
 0x2aa   : > { %1577 = vmatpush.msra.mxu3 %v5109_v10  ;;  %1633 = vmatpush.msrb.mxu1 %v5099_v5 }
 0x2ab   : > { %1235 = vmatmul.f32.vlgmr.msra.gmra.mxu2 %v1234_v43  ;;  %1391 = vmatmul.f32.vlgmr.msrb.gmra.mxu3 %v1230_v56 }
 0x2ac   : > { %1542 = vmatpush.msra.mxu2 %v5122_v15  ;;  %1635 = vmatpush.msrb.mxu1 %v5101_v6 }
 0x2ad   : > { %1608 = vmatpush.msrb.mxu0 %v5157_v27  ;;  %1750 = vmatpush.msrb.mxu3 %v5200_v44 }
 0x2ae   : > { %1545 = vmatpush.msra.mxu2 %v5126_v16  ;;  %1637 = vmatpush.msrb.mxu1 %v5109_v10 }
 0x2af   : > { %1612 = vmatpush.msrb.mxu0 %v5164_v29  ;;  %1756 = vmatpush.msrb.mxu3 %v5216_v51 }
 0x2b0   : > { %1548 = vmatpush.msra.mxu2 %v5130_v17 }
 0x2b1   : > { %1762 = vmatpush.msrb.mxu3 %v5234_v58 }
 0x2b2   : > { %1551 = vmatpush.msra.mxu2 %v5138_v20 }
 0x2b3   : > { %1366 = vmatmul.f32.vlgmr.msrb.gmra.mxu2 %v1230_v56  ;;  %1768 = vmatpush.msrb.mxu3 %v5240_v61 }
 0x2b4   : > { %1717 = vmatpush.msrb.mxu2 %v5112_v12 }
 0x2b6   : > { %1719 = vmatpush.msrb.mxu2 %v5140_v21 }
 0x2b8   : > { %1721 = vmatpush.msrb.mxu2 %v5145_v23 }
 0x2ba   : > { %1723 = vmatpush.msrb.mxu2 %v5169_v31 }
 0x2de   : > { %v1031_v45 = vpop.f32.mrf.mxu1 }
 0x2e6   : > { %v990_v60 = vpop.f32.mrf.mxu0  ;;  %v1061_v57 = vpop.f32.mrf.mxu2 }
 0x2e7   : > { %v991_v48 = vadd.f32 %v5303_v63, %v990_v60  ;;  %v1146_v8 = vpop.f32.mrf.mxu1 }
 0x2e8   : > { %v1088_v62 = vpop.f32.mrf.mxu3 }
 0x2e9   : > { %v1032_v53 = vadd.f32 %v1031_v45, %v991_v48 }
 0x2eb   : > { %v1062_v59 = vadd.f32 %v1061_v57, %v1032_v53 }
 0x2ed   : > { %v1089_v0 = vadd.f32 %v1088_v62, %v1062_v59 }
 0x2ee   : > { %v1121_v2 = vpop.f32.mrf.mxu0 }
 0x2ef   : > { %v1122_v1 = vadd.f32 %v1121_v2, %v1089_v0 }
 0x2f1   : > { %v1147_v11 = vadd.f32 %v1146_v8, %v1122_v1 }
 0x2f3   : > { %1170 = vrot.lane.b32.xlu1 %v1147_v11, %s4988_s13  ;;  %v1149_v33 = vadd.f32 %v5402_v3, %v1147_v11 }
 0x2f5   : > { %v4813_v43 = vmul.f32 -1.442695, %v1149_v33 }
 0x2f7   : > { %4885 = vpow2.f32 %v4813_v43 }
 0x2fd   : > { %v4886_v53 = vpop.eup %4885 }
 0x2fe   : > { %v1153_v57 = vadd.f32 1.0, %v4886_v53 }
 0x300   : > { %4887 = vrcp.f32 %v1153_v57  ;;  %v1165_v8 = vand.u32 2147483648, %v1153_v57  ;;  %vm1159_vm15 = vweird.f32 %v1153_v57  ;;  %v1163_v11 = vand.u32 2147483647, %v1153_v57 }
 0x302   : > { %vm1164_vm2 = vcmp.eq.f32.partialorder %v1163_v11, 8.507059e+37 }
 0x306   : > { %v4888_v59 = vpop.eup %4887 }
 0x307   : > { %v1155_v62 = vmul.f32 %v4888_v59, %v1153_v57  ;;  %vm1160_vm14 = vweird.f32 %v4888_v59 }
 0x308   : > { %vm1161_vm0 = vmor %vm1159_vm15, %vm1160_vm14 }
 0x309   : > { %v1156_v0 = vsub.f32 1.0, %v1155_v62 }
 0x30b   : > { %v1157_v2 = vmul.f32 %v4888_v59, %v1156_v0 }
 0x30d   : > { %v1158_v1 = vadd.f32 %v4888_v59, %v1157_v2 }
 0x322   : > { %v1307_v9 = vpop.f32.mrf.mxu0 }
 0x324   : > { %v1334_v35 = vpop.f32.mrf.mxu1 }
 0x326   : > { %v1277_v14 = vpop.f32.mrf.mxu3 }
 0x32e   : > { %v1236_v26 = vpop.f32.mrf.mxu2  ;;  %v1392_v60 = vpop.f32.mrf.mxu3 }
 0x32f   : > { %v1237_v32 = vadd.f32 %v5309_v18, %v1236_v26  ;;  %v1162_v26 = vsel %vm1161_vm0, %v4888_v59, %v1158_v1 }
 0x331   : > { %v1278_v34 = vadd.f32 %v1277_v14, %v1237_v32  ;;  %v4815_v14 = vld [vmem:[%s5075_s30 + $0x30] sm:$0xff]  ;;  %v1166_v32 = vor.u32 1.1754944e-38, %v1165_v8 }
 0x333   : > { %v1308_v56 = vadd.f32 %v1307_v9, %v1278_v34  ;;  %v1167_v33 = vsel %vm1164_vm2, %v1166_v32, %v1162_v26 }
 0x335   : > { %v1335_v36 = vadd.f32 %v1334_v35, %v1308_v56  ;;  %v1188_v35 = vstv %s956_s24  ;;  %s3426_s24 = sadd.s32 6, %s5062_s19 }
 0x336   : > { %v1367_v42 = vpop.f32.mrf.mxu2  ;;  %vm1189_vm3 = vcmp.lt.s32.totalorder %v1188_v35, %v5319_v13 }
 0x337   : > { %v1368_v45 = vadd.f32 %v1367_v42, %v1335_v36  ;;  %v1190_v42 = vsel %vm1189_vm3, 1, %v6122_v19 }
 0x339   : > { %v1393_v48 = vadd.f32 %v1392_v60, %v1368_v45 }
 0x33b   : > { %1416 = vrot.lane.b32.xlu2 %v1393_v48, %s4988_s13  ;;  %v1395_v34 = vadd.f32 %v4815_v14, %v1393_v48 }
 0x33d   : > { %v4816_v36 = vmul.f32 -1.442695, %v1395_v34 }
 0x33f   : > { %4889 = vpow2.f32 %v4816_v36 }
 0x345   : > { %v4890_v43 = vpop.eup %4889 }
 0x346   : > { %v1399_v45 = vadd.f32 1.0, %v4890_v43 }
 0x348   : > { %4891 = vrcp.f32 %v1399_v45  ;;  %v1411_v62 = vand.u32 2147483648, %v1399_v45  ;;  %vm1405_vm5 = vweird.f32 %v1399_v45  ;;  %v1409_v0 = vand.u32 2147483647, %v1399_v45 }
 0x34a   : > { %v1412_v1 = vor.u32 1.1754944e-38, %v1411_v62  ;;  %vm1410_vm7 = vcmp.eq.f32.partialorder %v1409_v0, 8.507059e+37 }
 0x34e   : > { %v4892_v60 = vpop.eup %4891 }
 0x34f   : > { %v1401_v53 = vmul.f32 %v4892_v60, %v1399_v45  ;;  %vm1406_vm4 = vweird.f32 %v4892_v60  ;;  %v1180_v45 = vsub.f32 1.0, %v1167_v33 }
 0x350   : > { %vm1407_vm6 = vmor %vm1405_vm5, %vm1406_vm4 }
 0x351   : > { %v1402_v57 = vsub.f32 1.0, %v1401_v53  ;;  %v1186_v53 = vmul.f32 %v1167_v33, %v5338_v39 }
 0x353   : > { %v1403_v48 = vmul.f32 %v4892_v60, %v1402_v57 }
 0x355   : > { %v1404_v59 = vadd.f32 %v4892_v60, %v1403_v48 }
 0x357   : > { %v1408_v2 = vsel %vm1407_vm6, %v4892_v60, %v1404_v59 }
 0x358   : > { %v1413_v11 = vsel %vm1410_vm7, %v1412_v1, %v1408_v2 }
 0x359   : > { %v1432_v1 = vmul.f32 %v1413_v11, %v5344_v49 }
 0x365   : > { %v1171_v9 = vpop.permute.xlu1 %1170 }
 0x366   : > { %v1173_v56 = vmul.f32 %v1171_v9, %v1167_v33 }
 0x368   : > { %1175 = vrot.lane.b32.xlu0 %v1173_v56, %s4988_s13  ;;  %v1435_v56 = vstv %s1434_s23  ;;  %s2422_s23 = ssub.s32 12, %s5062_s19 }
 0x369   : > { %vm1436_vm8 = vcmp.lt.s32.totalorder %v1435_v56, %v5319_v13 }
 0x36a   : > { %v1437_v35 = vsel %vm1436_vm8, 1, %v6122_v19 }
 0x370   : > { %1192 = vperm.xlu0 %4868, %v1190_v42  }
 0x395   : > { %v1417_v8 = vpop.permute.xlu2 %1416 }
 0x396   : > { %v1419_v26 = vmul.f32 %v1417_v8, %v1413_v11 }
 0x398   : > { %1421 = vrot.lane.b32.xlu1 %v1419_v26, %s4988_s13 }
 0x3da   : > { %v1176_v32 = vpop.permute.xlu0 %1175 }
 0x3db   : > { %v1178_v34 = vadd.f32 %v5402_v3, %v1176_v32 }
 0x3dd   : > { %4893 = vtanh.f32 %v1178_v34 }
 0x3e2   : > { %v1193_v3 = vpop.permute.xlu0 %1192 }
 0x3e3   : > { %v4894_v9 = vpop.eup %4893  ;;  %vm1194_vm9 = vcmp.eq.s32.totalorder %v1193_v3, 1 }
 0x3e4   : > { %1182 = vrot.lane.b32.xlu2 %v4894_v9, %s4990_s21 }
 0x3ec   : > { %1439 = vperm.xlu2 %4870, %v1437_v35  }
 0x40a   : > { %v1422_v36 = vpop.permute.xlu1 %1421 }
 0x40b   : > { %v1424_v42 = vadd.f32 %v4815_v14, %v1422_v36  ;;  %v1426_v14 = vsub.f32 1.0, %v1413_v11 }
 0x40d   : > { %4895 = vtanh.f32 %v1424_v42 }
 0x413   : > { %v4896_v43 = vpop.eup %4895 }
 0x414   : > { %1428 = vrot.lane.b32.xlu1 %v4896_v43, %s4990_s21 }
 0x43e   : > { %v1183_v60 = vpop.permute.xlu2 %1182 }
 0x43f   : > { %v1185_v57 = vmul.f32 %v1183_v60, %v1180_v45 }
 0x441   : > { %v1187_v48 = vadd.f32 %v1186_v53, %v1185_v57 }
 0x443   : > { %v5420_v59 = vsel %vm1194_vm9, %v1187_v48, %v5338_v39  ;;  %v5422_v62 = vsel %vm1194_vm9, %v1187_v48, 0.0 }
 0x444   : > { %1454 = vrot.lane.b32.xlu0 %v5420_v59, %s4990_s21 }
 0x446   : > { %v1440_v0 = vpop.permute.xlu2 %1439 }
 0x447   : > { %vm1441_vm10 = vcmp.eq.s32.totalorder %v1440_v0, 1 }
 0x486   : > { %v1429_v2 = vpop.permute.xlu1 %1428 }
 0x487   : > { %v1431_v8 = vmul.f32 %v1429_v2, %v1426_v14 }
 0x489   : > { %v1433_v26 = vadd.f32 %v1432_v1, %v1431_v8 }
 0x48b   : > { %v5427_v33 = vsel %vm1441_vm10, %v1433_v26, 0.0  ;;  %v5430_v32 = vsel %vm1441_vm10, %v1433_v26, %v5344_v49 }
 0x48c   : > { %6125 = vst [vmem:[#allocation5_spill] sm:$0xff] %v5427_v33  ;;  %1700 = vrot.lane.b32.xlu1 %v5430_v32, %s4990_s21 }
 0x4b6   : > { %v1455_v39 = vpop.permute.xlu0 %1454 }
 0x4b7   : > { %v1456_v34 = vsel %vm460_vm1, %v1455_v39, 0 }
 0x4b8   : > { %v1478_v9 = vand.u32 4294901760, %v1456_v34 }
 0x4ba   : > { %v1479_v56 = vsub.f32 %v1456_v34, %v1478_v9  ;;  %1524 = vmatmul.f32.vlgmr.msra.gmra.mxu1 %v1478_v9 }
 0x4bb   : > { %1817 = vmatpush.msra.mxu1 %v5112_v12 }
 0x4bc   : > { %v1480_v11 = vand.u32 4294901760, %v1479_v56  ;;  %1554 = vmatmul.f32.vlgmr.msra.gmra.mxu2 %v1479_v56 }
 0x4bd   : > { %1819 = vmatpush.msra.mxu1 %v5140_v21  ;;  %1846 = vmatpush.msra.mxu2 %v5161_v28 }
 0x4be   : > { %v1481_v35 = vsub.f32 %v1479_v56, %v1480_v11  ;;  %1581 = vmatmul.f32.vlgmr.msra.gmra.mxu3 %v1480_v11  ;;  %v5487_v11 = vld [vmem:[%s5070_s26 + $0x10] sm:$0xff] }
 0x4bf   : > { %1821 = vmatpush.msra.mxu1 %v5145_v23  ;;  %1877 = vmatpush.msra.mxu3 %v5112_v12 }
 0x4c0   : > { %v1482_v49 = vand.u32 4294901760, %v1481_v35  ;;  %1850 = vmatpush.msra.mxu2 %v5183_v37 }
 0x4c1   : > { %1823 = vmatpush.msra.mxu1 %v5169_v31  ;;  %1879 = vmatpush.msra.mxu3 %v5140_v21 }
 0x4c2   : > { %1483 = vmatmul.f32.vlgmr.msra.gmra.mxu0 %v1482_v49  ;;  %1639 = vmatmul.f32.vlgmr.msrb.gmra.mxu1 %v1478_v9 }
 0x4c3   : > { %1788 = vmatpush.msra.mxu0 %v5143_v22  ;;  %1881 = vmatpush.msra.mxu3 %v5145_v23 }
 0x4c4   : > { %1854 = vmatpush.msra.mxu2 %v5205_v46  ;;  %1998 = vmatpush.msrb.mxu1 %v5190_v40 }
 0x4c5   : > { %1791 = vmatpush.msra.mxu0 %v5167_v30  ;;  %1883 = vmatpush.msra.mxu3 %v5169_v31 }
 0x4c6   : > { %1858 = vmatpush.msra.mxu2 %v5225_v55  ;;  %2004 = vmatpush.msrb.mxu1 %v5193_v41 }
 0x4c7   : > { %1794 = vmatpush.msra.mxu0 %v5186_v38 }
 0x4c8   : > { %2010 = vmatpush.msrb.mxu1 %v5209_v47 }
 0x4c9   : > { %1797 = vmatpush.msra.mxu0 %v5214_v50 }
 0x4ca   : > { %1614 = vmatmul.f32.vlgmr.msrb.gmra.mxu0 %v1478_v9  ;;  %2016 = vmatpush.msrb.mxu1 %v5222_v54 }
 0x4cb   : > { %1965 = vmatpush.msrb.mxu0 %v5097_v4 }
 0x4cd   : > { %1967 = vmatpush.msrb.mxu0 %v5099_v5 }
 0x4cf   : > { %1969 = vmatpush.msrb.mxu0 %v5101_v6 }
 0x4d1   : > { %1971 = vmatpush.msrb.mxu0 %v5109_v10 }
 0x4fe   : > { %v1701_v36 = vpop.permute.xlu1 %1700 }
 0x4ff   : > { %v1702_v42 = vsel %vm460_vm1, %v1701_v36, 0 }
 0x500   : > { %v1724_v43 = vand.u32 4294901760, %v1702_v42 }
 0x502   : > { %v1725_v45 = vsub.f32 %v1702_v42, %v1724_v43  ;;  %1770 = vmatmul.f32.vlgmr.msrb.gmra.mxu3 %v1724_v43 }
 0x503   : > { %2065 = vmatpush.msrb.mxu3 %v5097_v4 }
 0x504   : > { %v1726_v60 = vand.u32 4294901760, %v1725_v45  ;;  %1800 = vmatmul.f32.vlgmr.msra.gmra.mxu0 %v1725_v45 }
 0x505   : > { %2067 = vmatpush.msrb.mxu3 %v5099_v5  ;;  %2094 = vmatpush.msra.mxu0 %v5150_v24 }
 0x506   : > { %v1727_v3 = vsub.f32 %v1725_v45, %v1726_v60  ;;  %1827 = vmatmul.f32.vlgmr.msra.gmra.mxu1 %v1726_v60 }
 0x507   : > { %2069 = vmatpush.msrb.mxu3 %v5101_v6  ;;  %2125 = vmatpush.msra.mxu1 %v5097_v4 }
 0x508   : > { %v1728_v53 = vand.u32 4294901760, %v1727_v3  ;;  %2098 = vmatpush.msra.mxu0 %v5153_v25 }
 0x509   : > { %2071 = vmatpush.msrb.mxu3 %v5109_v10  ;;  %2127 = vmatpush.msra.mxu1 %v5099_v5 }
 0x50a   : > { %1729 = vmatmul.f32.vlgmr.msrb.gmra.mxu2 %v1728_v53  ;;  %1885 = vmatmul.f32.vlgmr.msra.gmra.mxu3 %v1724_v43 }
 0x50b   : > { %2036 = vmatpush.msrb.mxu2 %v5122_v15  ;;  %2129 = vmatpush.msra.mxu1 %v5101_v6 }
 0x50c   : > { %2102 = vmatpush.msra.mxu0 %v5157_v27  ;;  %2244 = vmatpush.msra.mxu3 %v5200_v44 }
 0x50d   : > { %2039 = vmatpush.msrb.mxu2 %v5126_v16  ;;  %2131 = vmatpush.msra.mxu1 %v5109_v10 }
 0x50e   : > { %2106 = vmatpush.msra.mxu0 %v5164_v29  ;;  %2250 = vmatpush.msra.mxu3 %v5216_v51 }
 0x50f   : > { %2042 = vmatpush.msrb.mxu2 %v5130_v17 }
 0x510   : > { %2256 = vmatpush.msra.mxu3 %v5234_v58 }
 0x511   : > { %2045 = vmatpush.msrb.mxu2 %v5138_v20 }
 0x512   : > { %1860 = vmatmul.f32.vlgmr.msra.gmra.mxu2 %v1724_v43  ;;  %2262 = vmatpush.msra.mxu3 %v5240_v61 }
 0x513   : > { %2211 = vmatpush.msra.mxu2 %v5112_v12 }
 0x515   : > { %2213 = vmatpush.msra.mxu2 %v5140_v21 }
 0x517   : > { %2215 = vmatpush.msra.mxu2 %v5145_v23 }
 0x519   : > { %2217 = vmatpush.msra.mxu2 %v5169_v31 }
 0x537   : > { %v1525_v57 = vpop.f32.mrf.mxu1 }
 0x53f   : > { %v1484_v48 = vpop.f32.mrf.mxu0  ;;  %v1555_v2 = vpop.f32.mrf.mxu2 }
 0x540   : > { %v1485_v14 = vadd.f32 %v5303_v63, %v1484_v48  ;;  %v1640_v9 = vpop.f32.mrf.mxu1 }
 0x541   : > { %v1582_v8 = vpop.f32.mrf.mxu3 }
 0x542   : > { %v1526_v0 = vadd.f32 %v1525_v57, %v1485_v14 }
 0x544   : > { %v1556_v1 = vadd.f32 %v1555_v2, %v1526_v0 }
 0x546   : > { %v1583_v26 = vadd.f32 %v1582_v8, %v1556_v1 }
 0x547   : > { %v1615_v39 = vpop.f32.mrf.mxu0 }
 0x548   : > { %v1616_v34 = vadd.f32 %v1615_v39, %v1583_v26 }
 0x54a   : > { %v1641_v56 = vadd.f32 %v1640_v9, %v1616_v34 }
 0x54c   : > { %1664 = vrot.lane.b32.xlu2 %v1641_v56, %s4988_s13  ;;  %v1643_v35 = vadd.f32 %v5487_v11, %v1641_v56 }
 0x54e   : > { %v4819_v49 = vmul.f32 -1.442695, %v1643_v35 }
 0x550   : > { %4897 = vpow2.f32 %v4819_v49 }
 0x556   : > { %v4898_v36 = vpop.eup %4897 }
 0x557   : > { %v1647_v42 = vadd.f32 1.0, %v4898_v36 }
 0x559   : > { %4899 = vrcp.f32 %v1647_v42  ;;  %v1659_v56 = vand.u32 2147483648, %v1647_v42  ;;  %vm1653_vm12 = vweird.f32 %v1647_v42 }
 0x55b   : > { %v1660_v49 = vor.u32 1.1754944e-38, %v1659_v56 }
 0x55f   : > { %v4900_v60 = vpop.eup %4899 }
 0x560   : > { %v1649_v48 = vmul.f32 %v4900_v60, %v1647_v42  ;;  %vm1654_vm11 = vweird.f32 %v4900_v60 }
 0x561   : > { %vm1655_vm13 = vmor %vm1653_vm12, %vm1654_vm11 }
 0x562   : > { %v1650_v8 = vsub.f32 1.0, %v1649_v48 }
 0x564   : > { %v1651_v34 = vmul.f32 %v4900_v60, %v1650_v8 }
 0x566   : > { %v1652_v9 = vadd.f32 %v4900_v60, %v1651_v34 }
 0x568   : > { %v1656_v35 = vsel %vm1655_vm13, %v4900_v60, %v1652_v9 }
 0x581   : > { %v1801_v53 = vpop.f32.mrf.mxu0 }
 0x583   : > { %v1828_v14 = vpop.f32.mrf.mxu1 }
 0x585   : > { %v1771_v63 = vpop.f32.mrf.mxu3 }
 0x58d   : > { %v1730_v43 = vpop.f32.mrf.mxu2  ;;  %v1886_v26 = vpop.f32.mrf.mxu3 }
 0x58e   : > { %v1731_v45 = vadd.f32 %v5309_v18, %v1730_v43  ;;  %v1657_v18 = vand.u32 2147483647, %v1647_v42 }
 0x590   : > { %v1772_v3 = vadd.f32 %v1771_v63, %v1731_v45  ;;  %vm1658_vm14 = vcmp.eq.f32.partialorder %v1657_v18, 8.507059e+37  ;;  %v1682_v45 = vstv %s1450_s25  ;;  %s2438_s25 = sadd.s32 4, %s5062_s19 }
 0x591   : > { %v1661_v63 = vsel %vm1658_vm14, %v1660_v49, %v1656_v35  ;;  %vm1683_vm15 = vcmp.lt.s32.totalorder %v1682_v45, %v5319_v13  ;;  %v1929_v45 = vstv %s1928_s28  ;;  %s2916_s28 = ssub.s32 11, %s5062_s19 }
 0x592   : > { %v1802_v57 = vadd.f32 %v1801_v53, %v1772_v3  ;;  %v1684_v3 = vsel %vm1683_vm15, 1, %v6122_v19  ;;  %v4821_v53 = vld [vmem:[%s5075_s30 + $0x28] sm:$0xff]  ;;  %vm1930_vm5 = vcmp.lt.s32.totalorder %v1929_v45, %v5319_v13 }
 0x594   : > { %v1829_v0 = vadd.f32 %v1828_v14, %v1802_v57 }
 0x595   : > { %v1861_v2 = vpop.f32.mrf.mxu2 }
 0x596   : > { %v1862_v1 = vadd.f32 %v1861_v2, %v1829_v0 }
 0x598   : > { %v1887_v39 = vadd.f32 %v1886_v26, %v1862_v1 }
 0x59a   : > { %1910 = vrot.lane.b32.xlu0 %v1887_v39, %s4988_s13  ;;  %v1889_v57 = vadd.f32 %v4821_v53, %v1887_v39 }
 0x59c   : > { %v4822_v48 = vmul.f32 -1.442695, %v1889_v57 }
 0x59e   : > { %4901 = vpow2.f32 %v4822_v48 }
 0x5a4   : > { %v4902_v42 = vpop.eup %4901 }
 0x5a5   : > { %v1893_v60 = vadd.f32 1.0, %v4902_v42 }
 0x5a6   : > { %v1665_v36 = vpop.permute.xlu2 %1664 }
 0x5a7   : > { %v1667_v43 = vmul.f32 %v1665_v36, %v1661_v63  ;;  %4903 = vrcp.f32 %v1893_v60  ;;  %v1905_v26 = vand.u32 2147483648, %v1893_v60  ;;  %vm1899_vm2 = vweird.f32 %v1893_v60 }
 0x5a8   : > { %v1903_v34 = vand.u32 2147483647, %v1893_v60 }
 0x5a9   : > { %1669 = vrot.lane.b32.xlu1 %v1667_v43, %s4988_s13  ;;  %v1906_v56 = vor.u32 1.1754944e-38, %v1905_v26 }
 0x5aa   : > { %vm1904_vm4 = vcmp.eq.f32.partialorder %v1903_v34, 8.507059e+37 }
 0x5ad   : > { %v4904_v14 = vpop.eup %4903 }
 0x5ae   : > { %v1895_v0 = vmul.f32 %v4904_v14, %v1893_v60  ;;  %vm1900_vm0 = vweird.f32 %v4904_v14  ;;  %v1674_v60 = vsub.f32 1.0, %v1661_v63 }
 0x5af   : > { %vm1901_vm3 = vmor %vm1899_vm2, %vm1900_vm0 }
 0x5b0   : > { %v1896_v2 = vsub.f32 1.0, %v1895_v0  ;;  %v1680_v0 = vmul.f32 %v1661_v63, %v5420_v59 }
 0x5b1   : > { %1686 = vperm.xlu1 %4869, %v1684_v3   ;;  %v1931_v3 = vsel %vm1930_vm5, 1, %v6122_v19 }
 0x5b2   : > { %v1897_v1 = vmul.f32 %v4904_v14, %v1896_v2 }
 0x5b4   : > { %v1898_v8 = vadd.f32 %v4904_v14, %v1897_v1 }
 0x5b6   : > { %v1902_v9 = vsel %vm1901_vm3, %v4904_v14, %v1898_v8 }
 0x5b7   : > { %v1907_v18 = vsel %vm1904_vm4, %v1906_v56, %v1902_v9 }
 0x5b8   : > { %v1926_v9 = vmul.f32 %v1907_v18, %v5430_v32 }
 0x60c   : > { %v1911_v39 = vpop.permute.xlu0 %1910 }
 0x60d   : > { %v1913_v35 = vmul.f32 %v1911_v39, %v1907_v18 }
 0x60f   : > { %1915 = vrot.lane.b32.xlu2 %v1913_v35, %s4988_s13 }
 0x61b   : > { %v1670_v49 = vpop.permute.xlu1 %1669 }
 0x61c   : > { %v1672_v36 = vadd.f32 %v5487_v11, %v1670_v49 }
 0x61e   : > { %4905 = vtanh.f32 %v1672_v36 }
 0x623   : > { %v1687_v11 = vpop.permute.xlu1 %1686 }
 0x624   : > { %v4906_v43 = vpop.eup %4905  ;;  %vm1688_vm6 = vcmp.eq.s32.totalorder %v1687_v11, 1 }
 0x625   : > { %1676 = vrot.lane.b32.xlu0 %v4906_v43, %s4990_s21 }
 0x62d   : > { %1933 = vperm.xlu0 %4868, %v1931_v3  }
 0x669   : > { %v1916_v57 = vpop.permute.xlu2 %1915 }
 0x66a   : > { %v1918_v48 = vadd.f32 %v4821_v53, %v1916_v57  ;;  %v1920_v53 = vsub.f32 1.0, %v1907_v18 }
 0x66c   : > { %4907 = vtanh.f32 %v1918_v48 }
 0x672   : > { %v4908_v42 = vpop.eup %4907 }
 0x673   : > { %1922 = vrot.lane.b32.xlu2 %v4908_v42, %s4990_s21 }
 0x697   : > { %v1677_v14 = vpop.permute.xlu0 %1676 }
 0x698   : > { %v1679_v2 = vmul.f32 %v1677_v14, %v1674_v60 }
 0x69a   : > { %v1681_v1 = vadd.f32 %v1680_v0, %v1679_v2 }
 0x69c   : > { %v5506_v8 = vsel %vm1688_vm6, %v1681_v1, %v5420_v59  ;;  %v5508_v13 = vsel %vm1688_vm6, %v1681_v1, 0.0  ;;  %v5573_v1 = vld [vmem:[%s6114_s4] ss:$0 sm:$0xff] }
 0x69d   : > { %1948 = vrot.lane.b32.xlu1 %v5506_v8, %s4990_s21 }
 0x69f   : > { %v1934_v34 = vpop.permute.xlu0 %1933 }
 0x6a0   : > { %vm1935_vm7 = vcmp.eq.s32.totalorder %v1934_v34, 1 }
 0x6cd   : > { %v1923_v26 = vpop.permute.xlu2 %1922 }
 0x6ce   : > { %v1925_v56 = vmul.f32 %v1923_v26, %v1920_v53 }
 0x6d0   : > { %v1927_v39 = vadd.f32 %v1926_v9, %v1925_v56 }
 0x6d2   : > { %v5514_v63 = vsel %vm1935_vm7, %v1927_v39, %v5430_v32  ;;  %v5516_v35 = vsel %vm1935_vm7, %v1927_v39, 0.0 }
 0x6d3   : > { %2194 = vrot.lane.b32.xlu2 %v5514_v63, %s4990_s21 }
 0x70f   : > { %v1949_v59 = vpop.permute.xlu1 %1948 }
 0x710   : > { %v1950_v49 = vsel %vm460_vm1, %v1949_v59, 0 }
 0x711   : > { %v1972_v36 = vand.u32 4294901760, %v1950_v49 }
 0x713   : > { %v1973_v43 = vsub.f32 %v1950_v49, %v1972_v36  ;;  %2018 = vmatmul.f32.vlgmr.msrb.gmra.mxu1 %v1972_v36 }
 0x714   : > { %2311 = vmatpush.msrb.mxu1 %v5112_v12 }
 0x715   : > { %v1974_v18 = vand.u32 4294901760, %v1973_v43  ;;  %2048 = vmatmul.f32.vlgmr.msrb.gmra.mxu2 %v1973_v43 }
 0x716   : > { %2313 = vmatpush.msrb.mxu1 %v5140_v21  ;;  %2340 = vmatpush.msrb.mxu2 %v5161_v28 }
 0x717   : > { %v1975_v32 = vsub.f32 %v1973_v43, %v1974_v18  ;;  %2075 = vmatmul.f32.vlgmr.msrb.gmra.mxu3 %v1974_v18 }
 0x718   : > { %2315 = vmatpush.msrb.mxu1 %v5145_v23  ;;  %2371 = vmatpush.msrb.mxu3 %v5112_v12 }
 0x719   : > { %v1976_v45 = vand.u32 4294901760, %v1975_v32  ;;  %2344 = vmatpush.msrb.mxu2 %v5183_v37 }
 0x71a   : > { %2317 = vmatpush.msrb.mxu1 %v5169_v31  ;;  %2373 = vmatpush.msrb.mxu3 %v5140_v21 }
 0x71b   : > { %1977 = vmatmul.f32.vlgmr.msrb.gmra.mxu0 %v1976_v45  ;;  %2133 = vmatmul.f32.vlgmr.msra.gmra.mxu1 %v1972_v36  ;;  %v5580_v45 = vld [vmem:[%s6116_s6] ss:$0 sm:$0xff] }
 0x71c   : > { %2282 = vmatpush.msrb.mxu0 %v5143_v22  ;;  %2375 = vmatpush.msrb.mxu3 %v5145_v23 }
 0x71d   : > { %2348 = vmatpush.msrb.mxu2 %v5205_v46  ;;  %2492 = vmatpush.msra.mxu1 %v5190_v40 }
 0x71e   : > { %2285 = vmatpush.msrb.mxu0 %v5167_v30  ;;  %2377 = vmatpush.msrb.mxu3 %v5169_v31 }
 0x71f   : > { %2352 = vmatpush.msrb.mxu2 %v5225_v55  ;;  %2498 = vmatpush.msra.mxu1 %v5193_v41 }
 0x720   : > { %2288 = vmatpush.msrb.mxu0 %v5186_v38 }
 0x721   : > { %2504 = vmatpush.msra.mxu1 %v5209_v47 }
 0x722   : > { %2291 = vmatpush.msrb.mxu0 %v5214_v50 }
 0x723   : > { %2108 = vmatmul.f32.vlgmr.msra.gmra.mxu0 %v1972_v36  ;;  %2510 = vmatpush.msra.mxu1 %v5222_v54 }
 0x724   : > { %2459 = vmatpush.msra.mxu0 %v5097_v4 }
 0x726   : > { %2461 = vmatpush.msra.mxu0 %v5099_v5 }
 0x728   : > { %2463 = vmatpush.msra.mxu0 %v5101_v6 }
 0x72a   : > { %2465 = vmatpush.msra.mxu0 %v5109_v10 }
 0x72d   : > { %v2195_v3 = vpop.permute.xlu2 %2194 }
 0x72e   : > { %v2196_v57 = vsel %vm460_vm1, %v2195_v3, 0 }
 0x72f   : > { %v2218_v48 = vand.u32 4294901760, %v2196_v57 }
 0x731   : > { %v2219_v42 = vsub.f32 %v2196_v57, %v2218_v48  ;;  %2264 = vmatmul.f32.vlgmr.msra.gmra.mxu3 %v2218_v48 }
 0x732   : > { %2559 = vmatpush.msra.mxu3 %v5097_v4 }
 0x733   : > { %v2220_v60 = vand.u32 4294901760, %v2219_v42  ;;  %2294 = vmatmul.f32.vlgmr.msrb.gmra.mxu0 %v2219_v42 }
 0x734   : > { %2561 = vmatpush.msra.mxu3 %v5099_v5  ;;  %2588 = vmatpush.msrb.mxu0 %v5150_v24 }
 0x735   : > { %v2221_v14 = vsub.f32 %v2219_v42, %v2220_v60  ;;  %2321 = vmatmul.f32.vlgmr.msrb.gmra.mxu1 %v2220_v60 }
 0x736   : > { %2563 = vmatpush.msra.mxu3 %v5101_v6  ;;  %2619 = vmatpush.msrb.mxu1 %v5097_v4 }
 0x737   : > { %v2222_v11 = vand.u32 4294901760, %v2221_v14  ;;  %2592 = vmatpush.msrb.mxu0 %v5153_v25 }
 0x738   : > { %2565 = vmatpush.msra.mxu3 %v5109_v10  ;;  %2621 = vmatpush.msrb.mxu1 %v5099_v5 }
 0x739   : > { %2223 = vmatmul.f32.vlgmr.msra.gmra.mxu2 %v2222_v11  ;;  %2379 = vmatmul.f32.vlgmr.msrb.gmra.mxu3 %v2218_v48 }
 0x73a   : > { %2530 = vmatpush.msra.mxu2 %v5122_v15  ;;  %2623 = vmatpush.msrb.mxu1 %v5101_v6 }
 0x73b   : > { %2596 = vmatpush.msrb.mxu0 %v5157_v27  ;;  %2738 = vmatpush.msrb.mxu3 %v5200_v44 }
 0x73c   : > { %2533 = vmatpush.msra.mxu2 %v5126_v16  ;;  %2625 = vmatpush.msrb.mxu1 %v5109_v10 }
 0x73d   : > { %2600 = vmatpush.msrb.mxu0 %v5164_v29  ;;  %2744 = vmatpush.msrb.mxu3 %v5216_v51 }
 0x73e   : > { %2536 = vmatpush.msra.mxu2 %v5130_v17 }
 0x73f   : > { %2750 = vmatpush.msrb.mxu3 %v5234_v58 }
 0x740   : > { %2539 = vmatpush.msra.mxu2 %v5138_v20 }
 0x741   : > { %2354 = vmatmul.f32.vlgmr.msrb.gmra.mxu2 %v2218_v48  ;;  %2756 = vmatpush.msrb.mxu3 %v5240_v61 }
 0x742   : > { %2705 = vmatpush.msrb.mxu2 %v5112_v12 }
 0x744   : > { %2707 = vmatpush.msrb.mxu2 %v5140_v21 }
 0x746   : > { %2709 = vmatpush.msrb.mxu2 %v5145_v23 }
 0x748   : > { %2711 = vmatpush.msrb.mxu2 %v5169_v31 }
 0x790   : > { %v2019_v0 = vpop.f32.mrf.mxu1 }
 0x798   : > { %v1978_v2 = vpop.f32.mrf.mxu0  ;;  %v2049_v34 = vpop.f32.mrf.mxu2 }
 0x799   : > { %v1979_v53 = vadd.f32 %v5573_v1, %v1978_v2  ;;  %v2134_v36 = vpop.f32.mrf.mxu1 }
 0x79a   : > { %v2076_v56 = vpop.f32.mrf.mxu3 }
 0x79b   : > { %v2020_v26 = vadd.f32 %v2019_v0, %v1979_v53 }
 0x79d   : > { %v2050_v9 = vadd.f32 %v2049_v34, %v2020_v26  ;;  %v4824_v26 = vld [vmem:[%s5070_s26 + $0x18] sm:$0xff] }
 0x79f   : > { %v2077_v39 = vadd.f32 %v2076_v56, %v2050_v9 }
 0x7a0   : > { %v2109_v59 = vpop.f32.mrf.mxu0 }
 0x7a1   : > { %v2110_v49 = vadd.f32 %v2109_v59, %v2077_v39 }
 0x7a3   : > { %v2135_v43 = vadd.f32 %v2134_v36, %v2110_v49  ;;  %v4827_v36 = vld [vmem:[%s5075_s30 + $0x20] sm:$0xff] }
 0x7a5   : > { %2158 = vrot.lane.b32.xlu0 %v2135_v43, %s4988_s13  ;;  %v2137_v34 = vadd.f32 %v4824_v26, %v2135_v43 }
 0x7a7   : > { %v4825_v9 = vmul.f32 -1.442695, %v2137_v34 }
 0x7a9   : > { %4909 = vpow2.f32 %v4825_v9  ;;  %v2176_v9 = vstv %s1944_s16 }
 0x7af   : > { %v4910_v56 = vpop.eup %4909 }
 0x7b0   : > { %v2295_v48 = vpop.f32.mrf.mxu0  ;;  %v2141_v39 = vadd.f32 1.0, %v4910_v56  ;;  %v5591_v56 = vld [vmem:[%s6110_s0] sm:$0xff] }
 0x7b1   : > { %vm2177_vm12 = vcmp.lt.s32.totalorder %v2176_v9, %v5591_v56 }
 0x7b2   : > { %v2322_v60 = vpop.f32.mrf.mxu1  ;;  %4911 = vrcp.f32 %v2141_v39  ;;  %vm2147_vm9 = vweird.f32 %v2141_v39 }
 0x7b4   : > { %v2265_v18 = vpop.f32.mrf.mxu3 }
 0x7b8   : > { %v4912_v59 = vpop.eup %4911 }
 0x7b9   : > { %v2143_v49 = vmul.f32 %v4912_v59, %v2141_v39  ;;  %vm2148_vm8 = vweird.f32 %v4912_v59 }
 0x7ba   : > { %vm2149_vm10 = vmor %vm2147_vm9, %vm2148_vm8 }
 0x7bc   : > { %v2224_v32 = vpop.f32.mrf.mxu2  ;;  %v2380_v2 = vpop.f32.mrf.mxu3 }
 0x7bd   : > { %v2225_v3 = vadd.f32 %v5580_v45, %v2224_v32 }
 0x7bf   : > { %v2266_v57 = vadd.f32 %v2265_v18, %v2225_v3  ;;  %v2144_v18 = vsub.f32 1.0, %v2143_v49 }
 0x7c1   : > { %v2296_v42 = vadd.f32 %v2295_v48, %v2266_v57  ;;  %v2145_v3 = vmul.f32 %v4912_v59, %v2144_v18 }
 0x7c3   : > { %v2323_v14 = vadd.f32 %v2322_v60, %v2296_v42  ;;  %v2146_v48 = vadd.f32 %v4912_v59, %v2145_v3  ;;  %v2153_v42 = vand.u32 2147483648, %v2141_v39  ;;  %v2151_v60 = vand.u32 2147483647, %v2141_v39 }
 0x7c4   : > { %v2355_v11 = vpop.f32.mrf.mxu2  ;;  %v2178_v39 = vsel %vm2177_vm12, 1, %v6122_v19 }
 0x7c5   : > { %v2356_v0 = vadd.f32 %v2355_v11, %v2323_v14  ;;  %v2150_v43 = vsel %vm2149_vm10, %v4912_v59, %v2146_v48  ;;  %v2154_v14 = vor.u32 1.1754944e-38, %v2153_v42  ;;  %vm2152_vm11 = vcmp.eq.f32.partialorder %v2151_v60, 8.507059e+37 }
 0x7c7   : > { %v2381_v53 = vadd.f32 %v2380_v2, %v2356_v0  ;;  %v2155_v0 = vsel %vm2152_vm11, %v2154_v14, %v2150_v43 }
 0x7c9   : > { %2404 = vrot.lane.b32.xlu1 %v2381_v53, %s4988_s13  ;;  %v2383_v32 = vadd.f32 %v4827_v36, %v2381_v53 }
 0x7cb   : > { %v4828_v57 = vmul.f32 -1.442695, %v2383_v32 }
 0x7cd   : > { %4913 = vpow2.f32 %v4828_v57 }
 0x7d3   : > { %v4914_v34 = vpop.eup %4913 }
 0x7d4   : > { %v2387_v53 = vadd.f32 1.0, %v4914_v34 }
 0x7d6   : > { %4915 = vrcp.f32 %v2387_v53  ;;  %v2399_v57 = vand.u32 2147483648, %v2387_v53  ;;  %vm2393_vm14 = vweird.f32 %v2387_v53  ;;  %v2397_v48 = vand.u32 2147483647, %v2387_v53 }
 0x7d8   : > { %v2400_v60 = vor.u32 1.1754944e-38, %v2399_v57  ;;  %vm2398_vm0 = vcmp.eq.f32.partialorder %v2397_v48, 8.507059e+37  ;;  %v2174_v57 = vmul.f32 %v2155_v0, %v5506_v8 }
 0x7dc   : > { %v4916_v59 = vpop.eup %4915 }
 0x7dd   : > { %v2389_v49 = vmul.f32 %v4916_v59, %v2387_v53  ;;  %vm2394_vm13 = vweird.f32 %v4916_v59 }
 0x7de   : > { %vm2395_vm15 = vmor %vm2393_vm14, %vm2394_vm13 }
 0x7df   : > { %v2390_v18 = vsub.f32 1.0, %v2389_v49 }
 0x7e1   : > { %v2391_v32 = vmul.f32 %v4916_v59, %v2390_v18 }
 0x7e3   : > { %v2392_v3 = vadd.f32 %v4916_v59, %v2391_v32  ;;  %v2168_v32 = vsub.f32 1.0, %v2155_v0 }
 0x7e5   : > { %v2396_v42 = vsel %vm2395_vm15, %v4916_v59, %v2392_v3 }
 0x7e6   : > { %v2401_v14 = vsel %vm2398_vm0, %v2400_v60, %v2396_v42 }
 0x817   : > { %v2159_v11 = vpop.permute.xlu0 %2158 }
 0x818   : > { %v2161_v2 = vmul.f32 %v2159_v11, %v2155_v0 }
 0x81a   : > { %2163 = vrot.lane.b32.xlu2 %v2161_v2, %s4988_s13 }
 0x822   : > { %2180 = vperm.xlu2 %4870, %v2178_v39   ;;  %v2423_v39 = vstv %s2422_s23 }
 0x823   : > { %vm2424_vm2 = vcmp.lt.s32.totalorder %v2423_v39, %v5591_v56 }
 0x824   : > { %v2425_v53 = vsel %vm2424_vm2, 1, %v6122_v19 }
 0x83b   : > { %v2405_v43 = vpop.permute.xlu1 %2404 }
 0x83c   : > { %v2407_v11 = vmul.f32 %v2405_v43, %v2401_v14 }
 0x83e   : > { %2409 = vrot.lane.b32.xlu0 %v2407_v11, %s4988_s13 }
 0x874   : > { %v2164_v2 = vpop.permute.xlu2 %2163 }
 0x875   : > { %v2166_v34 = vadd.f32 %v4824_v26, %v2164_v2 }
 0x877   : > { %4917 = vtanh.f32 %v2166_v34  ;;  %v2420_v34 = vmul.f32 %v2401_v14, %v5514_v63 }
 0x87c   : > { %v2181_v26 = vpop.permute.xlu2 %2180 }
 0x87d   : > { %v4918_v9 = vpop.eup %4917  ;;  %vm2182_vm3 = vcmp.eq.s32.totalorder %v2181_v26, 1 }
 0x87e   : > { %2170 = vrot.lane.b32.xlu1 %v4918_v9, %s4990_s21 }
 0x886   : > { %2427 = vperm.xlu1 %4869, %v2425_v53  }
 0x8b0   : > { %v2410_v59 = vpop.permute.xlu0 %2409 }
 0x8b1   : > { %v2412_v49 = vadd.f32 %v4827_v36, %v2410_v59  ;;  %v2414_v36 = vsub.f32 1.0, %v2401_v14 }
 0x8b3   : > { %4919 = vtanh.f32 %v2412_v49 }
 0x8b9   : > { %v4920_v18 = vpop.eup %4919 }
 0x8ba   : > { %2416 = vrot.lane.b32.xlu0 %v4920_v18, %s4990_s21 }
 0x8f0   : > { %v2171_v3 = vpop.permute.xlu1 %2170 }
 0x8f1   : > { %v2173_v48 = vmul.f32 %v2171_v3, %v2168_v32 }
 0x8f3   : > { %v2175_v42 = vadd.f32 %v2174_v57, %v2173_v48 }
 0x8f5   : > { %v5603_v60 = vsel %vm2182_vm3, %v2175_v42, %v5506_v8  ;;  %v5605_v43 = vsel %vm2182_vm3, %v2175_v42, 0.0 }
 0x8f6   : > { %6126 = vst [vmem:[#allocation6_spill] sm:$0xff] %v5605_v43  ;;  %2442 = vrot.lane.b32.xlu2 %v5603_v60, %s4990_s21 }
 0x8f8   : > { %v2428_v2 = vpop.permute.xlu1 %2427 }
 0x8f9   : > { %vm2429_vm4 = vcmp.eq.s32.totalorder %v2428_v2, 1 }
 0x92c   : > { %v2417_v11 = vpop.permute.xlu0 %2416 }
 0x92d   : > { %v2419_v9 = vmul.f32 %v2417_v11, %v2414_v36 }
 0x92f   : > { %v2421_v39 = vadd.f32 %v2420_v34, %v2419_v9 }
 0x931   : > { %v5611_v0 = vsel %vm2429_vm4, %v2421_v39, %v5514_v63  ;;  %v5613_v53 = vsel %vm2429_vm4, %v2421_v39, 0.0 }
 0x932   : > { %2688 = vrot.lane.b32.xlu0 %v5611_v0, %s4990_s21 }
 0x950   : > { %v2443_v8 = vpop.permute.xlu2 %2442 }
 0x951   : > { %v2444_v59 = vsel %vm460_vm1, %v2443_v8, 0 }
 0x952   : > { %v2466_v49 = vand.u32 4294901760, %v2444_v59 }
 0x954   : > { %v2467_v18 = vsub.f32 %v2444_v59, %v2466_v49  ;;  %2512 = vmatmul.f32.vlgmr.msra.gmra.mxu1 %v2466_v49 }
 0x955   : > { %2805 = vmatpush.msra.mxu1 %v5112_v12 }
 0x956   : > { %v2468_v14 = vand.u32 4294901760, %v2467_v18  ;;  %2542 = vmatmul.f32.vlgmr.msra.gmra.mxu2 %v2467_v18 }
 0x957   : > { %2807 = vmatpush.msra.mxu1 %v5140_v21  ;;  %2834 = vmatpush.msra.mxu2 %v5161_v28 }
 0x958   : > { %v2469_v63 = vsub.f32 %v2467_v18, %v2468_v14  ;;  %2569 = vmatmul.f32.vlgmr.msra.gmra.mxu3 %v2468_v14 }
 0x959   : > { %2809 = vmatpush.msra.mxu1 %v5145_v23  ;;  %2865 = vmatpush.msra.mxu3 %v5112_v12 }
 0x95a   : > { %v2470_v32 = vand.u32 4294901760, %v2469_v63  ;;  %2838 = vmatpush.msra.mxu2 %v5183_v37 }
 0x95b   : > { %2811 = vmatpush.msra.mxu1 %v5169_v31  ;;  %2867 = vmatpush.msra.mxu3 %v5140_v21 }
 0x95c   : > { %2471 = vmatmul.f32.vlgmr.msra.gmra.mxu0 %v2470_v32  ;;  %2627 = vmatmul.f32.vlgmr.msrb.gmra.mxu1 %v2466_v49 }
 0x95d   : > { %2776 = vmatpush.msra.mxu0 %v5143_v22  ;;  %2869 = vmatpush.msra.mxu3 %v5145_v23 }
 0x95e   : > { %2842 = vmatpush.msra.mxu2 %v5205_v46  ;;  %2986 = vmatpush.msrb.mxu1 %v5190_v40 }
 0x95f   : > { %2779 = vmatpush.msra.mxu0 %v5167_v30  ;;  %2871 = vmatpush.msra.mxu3 %v5169_v31 }
 0x960   : > { %2846 = vmatpush.msra.mxu2 %v5225_v55  ;;  %2992 = vmatpush.msrb.mxu1 %v5193_v41 }
 0x961   : > { %2782 = vmatpush.msra.mxu0 %v5186_v38 }
 0x962   : > { %2998 = vmatpush.msrb.mxu1 %v5209_v47 }
 0x963   : > { %2785 = vmatpush.msra.mxu0 %v5214_v50 }
 0x964   : > { %2602 = vmatmul.f32.vlgmr.msrb.gmra.mxu0 %v2466_v49  ;;  %3004 = vmatpush.msrb.mxu1 %v5222_v54 }
 0x965   : > { %2953 = vmatpush.msrb.mxu0 %v5097_v4 }
 0x967   : > { %2955 = vmatpush.msrb.mxu0 %v5099_v5 }
 0x969   : > { %2957 = vmatpush.msrb.mxu0 %v5101_v6 }
 0x96b   : > { %2959 = vmatpush.msrb.mxu0 %v5109_v10 }
 0x9a4   : > { %v2689_v3 = vpop.permute.xlu0 %2688 }
 0x9a5   : > { %v2690_v26 = vsel %vm460_vm1, %v2689_v3, 0 }
 0x9a6   : > { %v2712_v57 = vand.u32 4294901760, %v2690_v26 }
 0x9a8   : > { %v2713_v48 = vsub.f32 %v2690_v26, %v2712_v57  ;;  %2758 = vmatmul.f32.vlgmr.msrb.gmra.mxu3 %v2712_v57  ;;  %v5670_v26 = vld [vmem:[%s5070_s26 + $0x20] sm:$0xff] }
 0x9a9   : > { %3053 = vmatpush.msrb.mxu3 %v5097_v4 }
 0x9aa   : > { %v2714_v42 = vand.u32 4294901760, %v2713_v48  ;;  %2788 = vmatmul.f32.vlgmr.msra.gmra.mxu0 %v2713_v48 }
 0x9ab   : > { %3055 = vmatpush.msrb.mxu3 %v5099_v5  ;;  %3082 = vmatpush.msra.mxu0 %v5150_v24 }
 0x9ac   : > { %v2715_v36 = vsub.f32 %v2713_v48, %v2714_v42  ;;  %2815 = vmatmul.f32.vlgmr.msra.gmra.mxu1 %v2714_v42 }
 0x9ad   : > { %3057 = vmatpush.msrb.mxu3 %v5101_v6  ;;  %3113 = vmatpush.msra.mxu1 %v5097_v4 }
 0x9ae   : > { %v2716_v11 = vand.u32 4294901760, %v2715_v36  ;;  %3086 = vmatpush.msra.mxu0 %v5153_v25 }
 0x9af   : > { %3059 = vmatpush.msrb.mxu3 %v5109_v10  ;;  %3115 = vmatpush.msra.mxu1 %v5099_v5 }
 0x9b0   : > { %2717 = vmatmul.f32.vlgmr.msrb.gmra.mxu2 %v2716_v11  ;;  %2873 = vmatmul.f32.vlgmr.msra.gmra.mxu3 %v2712_v57 }
 0x9b1   : > { %3024 = vmatpush.msrb.mxu2 %v5122_v15  ;;  %3117 = vmatpush.msra.mxu1 %v5101_v6 }
 0x9b2   : > { %3090 = vmatpush.msra.mxu0 %v5157_v27  ;;  %3232 = vmatpush.msra.mxu3 %v5200_v44 }
 0x9b3   : > { %3027 = vmatpush.msrb.mxu2 %v5126_v16  ;;  %3119 = vmatpush.msra.mxu1 %v5109_v10 }
 0x9b4   : > { %3094 = vmatpush.msra.mxu0 %v5164_v29  ;;  %3238 = vmatpush.msra.mxu3 %v5216_v51 }
 0x9b5   : > { %3030 = vmatpush.msrb.mxu2 %v5130_v17 }
 0x9b6   : > { %3244 = vmatpush.msra.mxu3 %v5234_v58 }
 0x9b7   : > { %3033 = vmatpush.msrb.mxu2 %v5138_v20 }
 0x9b8   : > { %2848 = vmatmul.f32.vlgmr.msra.gmra.mxu2 %v2712_v57  ;;  %3250 = vmatpush.msra.mxu3 %v5240_v61 }
 0x9b9   : > { %3199 = vmatpush.msra.mxu2 %v5112_v12 }
 0x9bb   : > { %3201 = vmatpush.msra.mxu2 %v5140_v21 }
 0x9bd   : > { %3203 = vmatpush.msra.mxu2 %v5145_v23 }
 0x9bf   : > { %3205 = vmatpush.msra.mxu2 %v5169_v31 }
 0x9d1   : > { %v2513_v2 = vpop.f32.mrf.mxu1 }
 0x9d9   : > { %v2472_v34 = vpop.f32.mrf.mxu0  ;;  %v2543_v8 = vpop.f32.mrf.mxu2 }
 0x9da   : > { %v2473_v9 = vadd.f32 %v5573_v1, %v2472_v34  ;;  %v2628_v32 = vpop.f32.mrf.mxu1 }
 0x9db   : > { %v2570_v49 = vpop.f32.mrf.mxu3 }
 0x9dc   : > { %v2514_v39 = vadd.f32 %v2513_v2, %v2473_v9 }
 0x9de   : > { %v2544_v59 = vadd.f32 %v2543_v8, %v2514_v39 }
 0x9e0   : > { %v2571_v18 = vadd.f32 %v2570_v49, %v2544_v59 }
 0x9e1   : > { %v2603_v14 = vpop.f32.mrf.mxu0 }
 0x9e2   : > { %v2604_v63 = vadd.f32 %v2603_v14, %v2571_v18 }
 0x9e4   : > { %v2629_v3 = vadd.f32 %v2628_v32, %v2604_v63 }
 0x9e6   : > { %2652 = vrot.lane.b32.xlu1 %v2629_v3, %s4988_s13  ;;  %v2631_v57 = vadd.f32 %v5670_v26, %v2629_v3 }
 0x9e8   : > { %v4831_v48 = vmul.f32 -1.442695, %v2631_v57 }
 0x9ea   : > { %4921 = vpow2.f32 %v4831_v48 }
 0x9f0   : > { %v4922_v11 = vpop.eup %4921 }
 0x9f1   : > { %v2635_v9 = vadd.f32 1.0, %v4922_v11 }
 0x9f3   : > { %4923 = vrcp.f32 %v2635_v9  ;;  %vm2641_vm6 = vweird.f32 %v2635_v9 }
 0x9f9   : > { %v4924_v3 = vpop.eup %4923 }
 0x9fa   : > { %v2637_v57 = vmul.f32 %v4924_v3, %v2635_v9  ;;  %vm2642_vm5 = vweird.f32 %v4924_v3 }
 0x9fb   : > { %vm2643_vm7 = vmor %vm2641_vm6, %vm2642_vm5  ;;  %vm3165_vm6 = vcmp.lt.s32.totalorder %v3164_v52, %v5591_v56 }
 0x9fc   : > { %v2638_v48 = vsub.f32 1.0, %v2637_v57 }
 0x9fe   : > { %v2639_v19 = vmul.f32 %v4924_v3, %v2638_v48 }
 0xa00   : > { %v2640_v43 = vadd.f32 %v4924_v3, %v2639_v19 }
 0xa02   : > { %v2644_v11 = vsel %vm2643_vm7, %v4924_v3, %v2640_v43 }
 0xa27   : > { %v2789_v39 = vpop.f32.mrf.mxu0 }
 0xa29   : > { %v2816_v59 = vpop.f32.mrf.mxu1 }
 0xa2b   : > { %v2759_v42 = vpop.f32.mrf.mxu3 }
 0xa33   : > { %v2718_v36 = vpop.f32.mrf.mxu2  ;;  %v2874_v63 = vpop.f32.mrf.mxu3 }
 0xa34   : > { %v2719_v2 = vadd.f32 %v5580_v45, %v2718_v36  ;;  %v2645_v36 = vand.u32 2147483647, %v2635_v9 }
 0xa36   : > { %v2760_v34 = vadd.f32 %v2759_v42, %v2719_v2  ;;  %v2647_v42 = vand.u32 2147483648, %v2635_v9  ;;  %vm2646_vm8 = vcmp.eq.f32.partialorder %v2645_v36, 8.507059e+37 }
 0xa38   : > { %v2790_v8 = vadd.f32 %v2789_v39, %v2760_v34  ;;  %v2648_v2 = vor.u32 1.1754944e-38, %v2647_v42 }
 0xa3a   : > { %v2817_v49 = vadd.f32 %v2816_v59, %v2790_v8  ;;  %v2649_v39 = vsel %vm2646_vm8, %v2648_v2, %v2644_v11  ;;  %v2670_v59 = vstv %s2438_s25 }
 0xa3b   : > { %v2849_v18 = vpop.f32.mrf.mxu2  ;;  %vm2671_vm9 = vcmp.lt.s32.totalorder %v2670_v59, %v5591_v56 }
 0xa3c   : > { %v2850_v14 = vadd.f32 %v2849_v18, %v2817_v49  ;;  %v6127_v49 = vmov 0   ;;  %v4833_v18 = vld [vmem:[%s5075_s30 + $0x18] sm:$0xff] }
 0xa3d   : > { %v2672_v19 = vsel %vm2671_vm9, 1, %v6127_v49 }
 0xa3e   : > { %v2875_v32 = vadd.f32 %v2874_v63, %v2850_v14 }
 0xa40   : > { %2898 = vrot.lane.b32.xlu2 %v2875_v32, %s4988_s13  ;;  %v2877_v14 = vadd.f32 %v4833_v18, %v2875_v32 }
 0xa42   : > { %v4834_v63 = vmul.f32 -1.442695, %v2877_v14 }
 0xa44   : > { %4925 = vpow2.f32 %v4834_v63 }
 0xa4a   : > { %v4926_v9 = vpop.eup %4925 }
 0xa4b   : > { %v2881_v43 = vadd.f32 1.0, %v4926_v9 }
 0xa4d   : > { %4927 = vrcp.f32 %v2881_v43  ;;  %v2893_v11 = vand.u32 2147483648, %v2881_v43  ;;  %vm2887_vm11 = vweird.f32 %v2881_v43  ;;  %v2891_v2 = vand.u32 2147483647, %v2881_v43 }
 0xa4f   : > { %vm2892_vm13 = vcmp.eq.f32.partialorder %v2891_v2, 8.507059e+37  ;;  %v2668_v2 = vmul.f32 %v2649_v39, %v5603_v60 }
 0xa53   : > { %v4928_v3 = vpop.eup %4927 }
 0xa54   : > { %v2883_v57 = vmul.f32 %v4928_v3, %v2881_v43  ;;  %vm2888_vm10 = vweird.f32 %v4928_v3 }
 0xa55   : > { %vm2889_vm12 = vmor %vm2887_vm11, %vm2888_vm10 }
 0xa56   : > { %v2884_v48 = vsub.f32 1.0, %v2883_v57  ;;  %v2917_v57 = vstv %s2916_s28  ;;  %s3904_s28 = ssub.s32 9, %s5062_s19 }
 0xa57   : > { %vm2918_vm14 = vcmp.lt.s32.totalorder %v2917_v57, %v5591_v56 }
 0xa58   : > { %v2653_v34 = vpop.permute.xlu1 %2652  ;;  %v2885_v42 = vmul.f32 %v4928_v3, %v2884_v48  ;;  %v2919_v43 = vsel %vm2918_vm14, 1, %v6127_v49 }
 0xa59   : > { %v2655_v8 = vmul.f32 %v2653_v34, %v2649_v39 }
 0xa5a   : > { %v2886_v36 = vadd.f32 %v4928_v3, %v2885_v42 }
 0xa5b   : > { %2657 = vrot.lane.b32.xlu0 %v2655_v8, %s4988_s13  ;;  %v2894_v8 = vor.u32 1.1754944e-38, %v2893_v11 }
 0xa5c   : > { %v2890_v34 = vsel %vm2889_vm12, %v4928_v3, %v2886_v36  ;;  %v2662_v36 = vsub.f32 1.0, %v2649_v39 }
 0xa5d   : > { %v2895_v59 = vsel %vm2892_vm13, %v2894_v8, %v2890_v34 }
 0xa63   : > { %2674 = vperm.xlu0 %4868, %v2672_v19  }
 0xa9a   : > { %v2899_v32 = vpop.permute.xlu2 %2898 }
 0xa9b   : > { %v2901_v19 = vmul.f32 %v2899_v32, %v2895_v59 }
 0xa9d   : > { %2903 = vrot.lane.b32.xlu1 %v2901_v19, %s4988_s13 }
 0xacd   : > { %v2658_v14 = vpop.permute.xlu0 %2657 }
 0xace   : > { %v2660_v63 = vadd.f32 %v5670_v26, %v2658_v14 }
 0xad0   : > { %4929 = vtanh.f32 %v2660_v63 }
 0xad5   : > { %v2675_v26 = vpop.permute.xlu0 %2674 }
 0xad6   : > { %v4930_v9 = vpop.eup %4929  ;;  %vm2676_vm15 = vcmp.eq.s32.totalorder %v2675_v26, 1 }
 0xad7   : > { %2664 = vrot.lane.b32.xlu2 %v4930_v9, %s4990_s21  ;;  %v2914_v9 = vmul.f32 %v2895_v59, %v5611_v0 }
 0xadf   : > { %2921 = vperm.xlu2 %4870, %v2919_v43  }
 0xb0f   : > { %v2904_v3 = vpop.permute.xlu1 %2903 }
 0xb10   : > { %v2906_v48 = vadd.f32 %v4833_v18, %v2904_v3  ;;  %v2908_v18 = vsub.f32 1.0, %v2895_v59 }
 0xb12   : > { %4931 = vtanh.f32 %v2906_v48 }
 0xb18   : > { %v4932_v42 = vpop.eup %4931 }
 0xb19   : > { %2910 = vrot.lane.b32.xlu1 %v4932_v42, %s4990_s21 }
 0xb31   : > { %v2665_v11 = vpop.permute.xlu2 %2664 }
 0xb32   : > { %v2667_v34 = vmul.f32 %v2665_v11, %v2662_v36 }
 0xb34   : > { %v2669_v8 = vadd.f32 %v2668_v2, %v2667_v34 }
 0xb36   : > { %v5689_v32 = vsel %vm2676_vm15, %v2669_v8, %v5603_v60  ;;  %v5691_v19 = vsel %vm2676_vm15, %v2669_v8, 0.0 }
 0xb37   : > { %6128 = vst [vmem:[#allocation7_spill] sm:$0xff] %v5691_v19  ;;  %2936 = vrot.lane.b32.xlu0 %v5689_v32, %s4990_s21 }
 0xb39   : > { %v2922_v63 = vpop.permute.xlu2 %2921 }
 0xb3a   : > { %vm2923_vm0 = vcmp.eq.s32.totalorder %v2922_v63, 1 }
 0xb8b   : > { %v2911_v14 = vpop.permute.xlu1 %2910 }
 0xb8c   : > { %v2913_v57 = vmul.f32 %v2911_v14, %v2908_v18 }
 0xb8e   : > { %v2915_v43 = vadd.f32 %v2914_v9, %v2913_v57 }
 0xb90   : > { %v5697_v39 = vsel %vm2923_vm0, %v2915_v43, %v5611_v0  ;;  %v5699_v3 = vsel %vm2923_vm0, %v2915_v43, 0.0 }
 0xb91   : > { %6129 = vst [vmem:[#allocation8_spill] sm:$0xff] %v5699_v3  ;;  %3182 = vrot.lane.b32.xlu1 %v5697_v39, %s4990_s21 }
 0xba9   : > { %v2937_v60 = vpop.permute.xlu0 %2936 }
 0xbaa   : > { %v2938_v48 = vsel %vm460_vm1, %v2937_v60, 0 }
 0xbab   : > { %v2960_v42 = vand.u32 4294901760, %v2938_v48 }
 0xbad   : > { %v2961_v36 = vsub.f32 %v2938_v48, %v2960_v42  ;;  %3006 = vmatmul.f32.vlgmr.msrb.gmra.mxu1 %v2960_v42 }
 0xbae   : > { %3299 = vmatpush.msrb.mxu1 %v5112_v12 }
 0xbaf   : > { %v2962_v59 = vand.u32 4294901760, %v2961_v36  ;;  %3036 = vmatmul.f32.vlgmr.msrb.gmra.mxu2 %v2961_v36 }
 0xbb0   : > { %3301 = vmatpush.msrb.mxu1 %v5140_v21  ;;  %3328 = vmatpush.msrb.mxu2 %v5161_v28 }
 0xbb1   : > { %v2963_v0 = vsub.f32 %v2961_v36, %v2962_v59  ;;  %3063 = vmatmul.f32.vlgmr.msrb.gmra.mxu3 %v2962_v59 }
 0xbb2   : > { %3303 = vmatpush.msrb.mxu1 %v5145_v23  ;;  %3359 = vmatpush.msrb.mxu3 %v5112_v12 }
 0xbb3   : > { %v2964_v11 = vand.u32 4294901760, %v2963_v0  ;;  %3332 = vmatpush.msrb.mxu2 %v5183_v37 }
 0xbb4   : > { %3305 = vmatpush.msrb.mxu1 %v5169_v31  ;;  %3361 = vmatpush.msrb.mxu3 %v5140_v21 }
 0xbb5   : > { %2965 = vmatmul.f32.vlgmr.msrb.gmra.mxu0 %v2964_v11  ;;  %3121 = vmatmul.f32.vlgmr.msra.gmra.mxu1 %v2960_v42 }
 0xbb6   : > { %3270 = vmatpush.msrb.mxu0 %v5143_v22  ;;  %3363 = vmatpush.msrb.mxu3 %v5145_v23 }
 0xbb7   : > { %3336 = vmatpush.msrb.mxu2 %v5205_v46  ;;  %3480 = vmatpush.msra.mxu1 %v5190_v40 }
 0xbb8   : > { %3273 = vmatpush.msrb.mxu0 %v5167_v30  ;;  %3365 = vmatpush.msrb.mxu3 %v5169_v31 }
 0xbb9   : > { %3340 = vmatpush.msrb.mxu2 %v5225_v55  ;;  %3486 = vmatpush.msra.mxu1 %v5193_v41 }
 0xbba   : > { %3276 = vmatpush.msrb.mxu0 %v5186_v38 }
 0xbbb   : > { %3492 = vmatpush.msra.mxu1 %v5209_v47 }
 0xbbc   : > { %3279 = vmatpush.msrb.mxu0 %v5214_v50 }
 0xbbd   : > { %3096 = vmatmul.f32.vlgmr.msra.gmra.mxu0 %v2960_v42  ;;  %3498 = vmatpush.msra.mxu1 %v5222_v54 }
 0xbbe   : > { %3447 = vmatpush.msra.mxu0 %v5097_v4 }
 0xbc0   : > { %3449 = vmatpush.msra.mxu0 %v5099_v5 }
 0xbc2   : > { %3451 = vmatpush.msra.mxu0 %v5101_v6 }
 0xbc4   : > { %3453 = vmatpush.msra.mxu0 %v5109_v10 }
 0xc03   : > { %v3183_v26 = vpop.permute.xlu1 %3182 }
 0xc04   : > { %v3184_v2 = vsel %vm460_vm1, %v3183_v26, 0 }
 0xc05   : > { %v3206_v34 = vand.u32 4294901760, %v3184_v2 }
 0xc07   : > { %v3207_v8 = vsub.f32 %v3184_v2, %v3206_v34  ;;  %3252 = vmatmul.f32.vlgmr.msra.gmra.mxu3 %v3206_v34 }
 0xc08   : > { %3547 = vmatpush.msra.mxu3 %v5097_v4 }
 0xc09   : > { %v3208_v18 = vand.u32 4294901760, %v3207_v8  ;;  %3282 = vmatmul.f32.vlgmr.msrb.gmra.mxu0 %v3207_v8 }
 0xc0a   : > { %3549 = vmatpush.msra.mxu3 %v5099_v5  ;;  %3576 = vmatpush.msrb.mxu0 %v5150_v24 }
 0xc0b   : > { %v3209_v14 = vsub.f32 %v3207_v8, %v3208_v18  ;;  %3309 = vmatmul.f32.vlgmr.msrb.gmra.mxu1 %v3208_v18 }
 0xc0c   : > { %3551 = vmatpush.msra.mxu3 %v5101_v6  ;;  %3607 = vmatpush.msrb.mxu1 %v5097_v4 }
 0xc0d   : > { %v3210_v63 = vand.u32 4294901760, %v3209_v14  ;;  %3580 = vmatpush.msrb.mxu0 %v5153_v25 }
 0xc0e   : > { %3553 = vmatpush.msra.mxu3 %v5109_v10  ;;  %3609 = vmatpush.msrb.mxu1 %v5099_v5 }
 0xc0f   : > { %3211 = vmatmul.f32.vlgmr.msra.gmra.mxu2 %v3210_v63  ;;  %3367 = vmatmul.f32.vlgmr.msrb.gmra.mxu3 %v3206_v34 }
 0xc10   : > { %3518 = vmatpush.msra.mxu2 %v5122_v15  ;;  %3611 = vmatpush.msrb.mxu1 %v5101_v6 }
 0xc11   : > { %3584 = vmatpush.msrb.mxu0 %v5157_v27  ;;  %3726 = vmatpush.msrb.mxu3 %v5200_v44 }
 0xc12   : > { %3521 = vmatpush.msra.mxu2 %v5126_v16  ;;  %3613 = vmatpush.msrb.mxu1 %v5109_v10 }
 0xc13   : > { %3588 = vmatpush.msrb.mxu0 %v5164_v29  ;;  %3732 = vmatpush.msrb.mxu3 %v5216_v51 }
 0xc14   : > { %3524 = vmatpush.msra.mxu2 %v5130_v17 }
 0xc15   : > { %3738 = vmatpush.msrb.mxu3 %v5234_v58 }
 0xc16   : > { %3527 = vmatpush.msra.mxu2 %v5138_v20 }
 0xc17   : > { %3342 = vmatmul.f32.vlgmr.msrb.gmra.mxu2 %v3206_v34  ;;  %3744 = vmatpush.msrb.mxu3 %v5240_v61  ;;  %v4836_v34 = vld [vmem:[%s5070_s26 + $0x28] sm:$0xff] }
 0xc18   : > { %3693 = vmatpush.msrb.mxu2 %v5112_v12 }
 0xc1a   : > { %3695 = vmatpush.msrb.mxu2 %v5140_v21 }
 0xc1c   : > { %3697 = vmatpush.msrb.mxu2 %v5145_v23 }
 0xc1e   : > { %3699 = vmatpush.msrb.mxu2 %v5169_v31 }
 0xc2a   : > { %v3007_v9 = vpop.f32.mrf.mxu1 }
 0xc32   : > { %v2966_v57 = vpop.f32.mrf.mxu0  ;;  %v3037_v48 = vpop.f32.mrf.mxu2 }
 0xc33   : > { %v2967_v43 = vadd.f32 %v5573_v1, %v2966_v57  ;;  %v3122_v26 = vpop.f32.mrf.mxu1 }
 0xc34   : > { %v3064_v36 = vpop.f32.mrf.mxu3 }
 0xc35   : > { %v3008_v60 = vadd.f32 %v3007_v9, %v2967_v43 }
 0xc37   : > { %v3038_v42 = vadd.f32 %v3037_v48, %v3008_v60 }
 0xc39   : > { %v3065_v59 = vadd.f32 %v3064_v36, %v3038_v42 }
 0xc3a   : > { %v3097_v0 = vpop.f32.mrf.mxu0 }
 0xc3b   : > { %v3098_v11 = vadd.f32 %v3097_v0, %v3065_v59 }
 0xc3d   : > { %v3123_v2 = vadd.f32 %v3122_v26, %v3098_v11 }
 0xc3f   : > { %3146 = vrot.lane.b32.xlu2 %v3123_v2, %s4988_s13  ;;  %v3125_v8 = vadd.f32 %v4836_v34, %v3123_v2 }
 0xc41   : > { %v4837_v18 = vmul.f32 -1.442695, %v3125_v8 }
 0xc43   : > { %4933 = vpow2.f32 %v4837_v18 }
 0xc49   : > { %v4934_v14 = vpop.eup %4933 }
 0xc4a   : > { %v3129_v63 = vadd.f32 1.0, %v4934_v14 }
 0xc4c   : > { %4935 = vrcp.f32 %v3129_v63  ;;  %v3141_v42 = vand.u32 2147483648, %v3129_v63  ;;  %vm3135_vm3 = vweird.f32 %v3129_v63  ;;  %v3139_v59 = vand.u32 2147483647, %v3129_v63 }
 0xc4e   : > { %v3142_v2 = vor.u32 1.1754944e-38, %v3141_v42  ;;  %vm3140_vm5 = vcmp.eq.f32.partialorder %v3139_v59, 8.507059e+37 }
 0xc52   : > { %v4936_v3 = vpop.eup %4935 }
 0xc53   : > { %v3131_v1 = vmul.f32 %v4936_v3, %v3129_v63  ;;  %vm3136_vm2 = vweird.f32 %v4936_v3 }
 0xc54   : > { %vm3137_vm4 = vmor %vm3135_vm3, %vm3136_vm2 }
 0xc55   : > { %v3132_v9 = vsub.f32 1.0, %v3131_v1 }
 0xc57   : > { %v3133_v57 = vmul.f32 %v4936_v3, %v3132_v9 }
 0xc59   : > { %v3134_v43 = vadd.f32 %v4936_v3, %v3133_v57 }
 0xc5b   : > { %v3138_v11 = vsel %vm3137_vm4, %v4936_v3, %v3134_v43  ;;  %v3166_v3 = vsel %vm3165_vm6, 1, %v6127_v49  ;;  %v4839_v43 = vld [vmem:[%s5075_s30 + $0x10] sm:$0xff] }
 0xc5c   : > { %v3143_v1 = vsel %vm3140_vm5, %v3142_v2, %v3138_v11 }
 0xc86   : > { %v3283_v26 = vpop.f32.mrf.mxu0 }
 0xc88   : > { %v3310_v18 = vpop.f32.mrf.mxu1 }
 0xc8a   : > { %v3253_v60 = vpop.f32.mrf.mxu3 }
 0xc92   : > { %v3212_v48 = vpop.f32.mrf.mxu2 }
 0xc93   : > { %v3213_v36 = vadd.f32 %v5580_v45, %v3212_v48  ;;  %v3368_v45 = vpop.f32.mrf.mxu3 }
 0xc95   : > { %v3254_v0 = vadd.f32 %v3253_v60, %v3213_v36 }
 0xc97   : > { %v3284_v8 = vadd.f32 %v3283_v26, %v3254_v0 }
 0xc99   : > { %v3147_v14 = vpop.permute.xlu2 %3146  ;;  %v3311_v9 = vadd.f32 %v3310_v18, %v3284_v8 }
 0xc9a   : > { %v3149_v57 = vmul.f32 %v3147_v14, %v3143_v1  ;;  %v3343_v33 = vpop.f32.mrf.mxu2 }
 0xc9b   : > { %v3344_v19 = vadd.f32 %v3343_v33, %v3311_v9 }
 0xc9c   : > { %3151 = vrot.lane.b32.xlu1 %v3149_v57, %s4988_s13 }
 0xc9d   : > { %v3369_v63 = vadd.f32 %v3368_v45, %v3344_v19 }
 0xc9f   : > { %3392 = vrot.lane.b32.xlu0 %v3369_v63, %s4988_s13  ;;  %v3371_v60 = vadd.f32 %v4839_v43, %v3369_v63 }
 0xca1   : > { %v4840_v48 = vmul.f32 -1.442695, %v3371_v60 }
 0xca3   : > { %4937 = vpow2.f32 %v4840_v48 }
 0xca4   : > { %3168 = vperm.xlu1 %4869, %v3166_v3   ;;  %v3411_v3 = vstv %s3410_s29 }
 0xca5   : > { %vm3412_vm11 = vcmp.lt.s32.totalorder %v3411_v3, %v5591_v56 }
 0xca6   : > { %v3413_v60 = vsel %vm3412_vm11, 1, %v6127_v49 }
 0xca9   : > { %v4938_v42 = vpop.eup %4937 }
 0xcaa   : > { %v3375_v36 = vadd.f32 1.0, %v4938_v42 }
 0xcac   : > { %4939 = vrcp.f32 %v3375_v36  ;;  %v3387_v52 = vand.u32 2147483648, %v3375_v36  ;;  %vm3381_vm8 = vweird.f32 %v3375_v36  ;;  %v3385_v26 = vand.u32 2147483647, %v3375_v36 }
 0xcae   : > { %v3388_v14 = vor.u32 1.1754944e-38, %v3387_v52  ;;  %vm3386_vm10 = vcmp.eq.f32.partialorder %v3385_v26, 8.507059e+37 }
 0xcb2   : > { %v4940_v59 = vpop.eup %4939 }
 0xcb3   : > { %v3377_v33 = vmul.f32 %v4940_v59, %v3375_v36  ;;  %vm3382_vm7 = vweird.f32 %v4940_v59  ;;  %v3156_v36 = vsub.f32 1.0, %v3143_v1 }
 0xcb4   : > { %vm3383_vm9 = vmor %vm3381_vm8, %vm3382_vm7 }
 0xcb5   : > { %v3378_v0 = vsub.f32 1.0, %v3377_v33 }
 0xcb7   : > { %v3379_v11 = vmul.f32 %v4940_v59, %v3378_v0  ;;  %v3162_v0 = vmul.f32 %v3143_v1, %v5689_v32 }
 0xcb9   : > { %v3380_v19 = vadd.f32 %v4940_v59, %v3379_v11 }
 0xcbb   : > { %v3384_v18 = vsel %vm3383_vm9, %v4940_v59, %v3380_v19 }
 0xcbc   : > { %v3389_v57 = vsel %vm3386_vm10, %v3388_v14, %v3384_v18 }
 0xd0e   : > { %v3152_v2 = vpop.permute.xlu1 %3151 }
 0xd0f   : > { %v3154_v8 = vadd.f32 %v4836_v34, %v3152_v2 }
 0xd11   : > { %4941 = vtanh.f32 %v3154_v8  ;;  %v3393_v9 = vpop.permute.xlu0 %3392  ;;  %v3408_v8 = vmul.f32 %v3389_v57, %v5697_v39 }
 0xd12   : > { %v3395_v45 = vmul.f32 %v3393_v9, %v3389_v57 }
 0xd14   : > { %3397 = vrot.lane.b32.xlu2 %v3395_v45, %s4988_s13 }
 0xd16   : > { %v3169_v33 = vpop.permute.xlu1 %3168 }
 0xd17   : > { %v4942_v63 = vpop.eup %4941  ;;  %vm3170_vm12 = vcmp.eq.s32.totalorder %v3169_v33, 1 }
 0xd18   : > { %3158 = vrot.lane.b32.xlu0 %v4942_v63, %s4990_s21 }
 0xd20   : > { %3415 = vperm.xlu0 %4868, %v3413_v60  }
 0xd6e   : > { %v3398_v34 = vpop.permute.xlu2 %3397 }
 0xd6f   : > { %v3400_v48 = vadd.f32 %v4839_v43, %v3398_v34  ;;  %v3402_v43 = vsub.f32 1.0, %v3389_v57 }
 0xd71   : > { %4943 = vtanh.f32 %v3400_v48 }
 0xd77   : > { %v4944_v42 = vpop.eup %4943 }
 0xd78   : > { %3404 = vrot.lane.b32.xlu2 %v4944_v42, %s4990_s21 }
 0xd8a   : > { %v3159_v59 = vpop.permute.xlu0 %3158 }
 0xd8b   : > { %v3161_v11 = vmul.f32 %v3159_v59, %v3156_v36 }
 0xd8d   : > { %v3163_v19 = vadd.f32 %v3162_v0, %v3161_v11 }
 0xd8f   : > { %v5771_v52 = vsel %vm3170_vm12, %v3163_v19, %v5689_v32  ;;  %v5773_v56 = vsel %vm3170_vm12, %v3163_v19, 0.0 }
 0xd90   : > { %3430 = vrot.lane.b32.xlu1 %v5771_v52, %s4990_s21 }
 0xd92   : > { %v3416_v2 = vpop.permute.xlu0 %3415 }
 0xd93   : > { %vm3417_vm13 = vcmp.eq.s32.totalorder %v3416_v2, 1 }
 0xdd2   : > { %v3405_v26 = vpop.permute.xlu2 %3404 }
 0xdd3   : > { %v3407_v18 = vmul.f32 %v3405_v26, %v3402_v43 }
 0xdd5   : > { %v3409_v14 = vadd.f32 %v3408_v8, %v3407_v18  ;;  %v4842_v18 = vld [vmem:[%s5070_s26 + $0x30] sm:$0xff] }
 0xdd7   : > { %v5779_v1 = vsel %vm3417_vm13, %v3409_v14, %v5697_v39  ;;  %v5781_v9 = vsel %vm3417_vm13, %v3409_v14, 0.0 }
 0xdd8   : > { %3676 = vrot.lane.b32.xlu2 %v5779_v1, %s4990_s21 }
 0xe02   : > { %v3431_v32 = vpop.permute.xlu1 %3430 }
 0xe03   : > { %v3432_v45 = vsel %vm460_vm1, %v3431_v32, 0 }
 0xe04   : > { %v3454_v63 = vand.u32 4294901760, %v3432_v45 }
 0xe06   : > { %v3455_v3 = vsub.f32 %v3432_v45, %v3454_v63  ;;  %3500 = vmatmul.f32.vlgmr.msra.gmra.mxu1 %v3454_v63 }
 0xe07   : > { %3793 = vmatpush.msra.mxu1 %v5112_v12 }
 0xe08   : > { %v3456_v57 = vand.u32 4294901760, %v3455_v3  ;;  %3530 = vmatmul.f32.vlgmr.msra.gmra.mxu2 %v3455_v3 }
 0xe09   : > { %3795 = vmatpush.msra.mxu1 %v5140_v21  ;;  %3822 = vmatpush.msra.mxu2 %v5161_v28 }
 0xe0a   : > { %v3457_v39 = vsub.f32 %v3455_v3, %v3456_v57  ;;  %3557 = vmatmul.f32.vlgmr.msra.gmra.mxu3 %v3456_v57 }
 0xe0b   : > { %3797 = vmatpush.msra.mxu1 %v5145_v23  ;;  %3853 = vmatpush.msra.mxu3 %v5112_v12 }
 0xe0c   : > { %v3458_v60 = vand.u32 4294901760, %v3457_v39  ;;  %3826 = vmatpush.msra.mxu2 %v5183_v37 }
 0xe0d   : > { %3799 = vmatpush.msra.mxu1 %v5169_v31  ;;  %3855 = vmatpush.msra.mxu3 %v5140_v21 }
 0xe0e   : > { %3459 = vmatmul.f32.vlgmr.msra.gmra.mxu0 %v3458_v60  ;;  %3615 = vmatmul.f32.vlgmr.msrb.gmra.mxu1 %v3454_v63 }
 0xe0f   : > { %3764 = vmatpush.msra.mxu0 %v5143_v22  ;;  %3857 = vmatpush.msra.mxu3 %v5145_v23 }
 0xe10   : > { %3830 = vmatpush.msra.mxu2 %v5205_v46  ;;  %3974 = vmatpush.msrb.mxu1 %v5190_v40 }
 0xe11   : > { %3767 = vmatpush.msra.mxu0 %v5167_v30  ;;  %3859 = vmatpush.msra.mxu3 %v5169_v31 }
 0xe12   : > { %3834 = vmatpush.msra.mxu2 %v5225_v55  ;;  %3980 = vmatpush.msrb.mxu1 %v5193_v41 }
 0xe13   : > { %3770 = vmatpush.msra.mxu0 %v5186_v38 }
 0xe14   : > { %3986 = vmatpush.msrb.mxu1 %v5209_v47 }
 0xe15   : > { %3773 = vmatpush.msra.mxu0 %v5214_v50 }
 0xe16   : > { %3590 = vmatmul.f32.vlgmr.msrb.gmra.mxu0 %v3454_v63  ;;  %3992 = vmatpush.msrb.mxu1 %v5222_v54 }
 0xe17   : > { %3941 = vmatpush.msrb.mxu0 %v5097_v4 }
 0xe19   : > { %3943 = vmatpush.msrb.mxu0 %v5099_v5 }
 0xe1b   : > { %3945 = vmatpush.msrb.mxu0 %v5101_v6 }
 0xe1d   : > { %3947 = vmatpush.msrb.mxu0 %v5109_v10 }
 0xe32   : > { %v3677_v40 = vpop.permute.xlu2 %3676 }
 0xe33   : > { %v3678_v41 = vsel %vm460_vm1, %v3677_v40, 0 }
 0xe34   : > { %v3700_v34 = vand.u32 4294901760, %v3678_v41 }
 0xe36   : > { %v3701_v48 = vsub.f32 %v3678_v41, %v3700_v34  ;;  %3746 = vmatmul.f32.vlgmr.msrb.gmra.mxu3 %v3700_v34 }
 0xe37   : > { %4041 = vmatpush.msrb.mxu3 %v5097_v4 }
 0xe38   : > { %v3702_v47 = vand.u32 4294901760, %v3701_v48  ;;  %3776 = vmatmul.f32.vlgmr.msra.gmra.mxu0 %v3701_v48 }
 0xe39   : > { %4043 = vmatpush.msrb.mxu3 %v5099_v5  ;;  %4070 = vmatpush.msra.mxu0 %v5150_v24 }
 0xe3a   : > { %v3703_v54 = vsub.f32 %v3701_v48, %v3702_v47  ;;  %3803 = vmatmul.f32.vlgmr.msra.gmra.mxu1 %v3702_v47 }
 0xe3b   : > { %4045 = vmatpush.msrb.mxu3 %v5101_v6  ;;  %4101 = vmatpush.msra.mxu1 %v5097_v4 }
 0xe3c   : > { %v3704_v42 = vand.u32 4294901760, %v3703_v54  ;;  %4074 = vmatpush.msra.mxu0 %v5153_v25 }
 0xe3d   : > { %4047 = vmatpush.msrb.mxu3 %v5109_v10  ;;  %4103 = vmatpush.msra.mxu1 %v5099_v5 }
 0xe3e   : > { %3705 = vmatmul.f32.vlgmr.msrb.gmra.mxu2 %v3704_v42  ;;  %3861 = vmatmul.f32.vlgmr.msra.gmra.mxu3 %v3700_v34 }
 0xe3f   : > { %4012 = vmatpush.msrb.mxu2 %v5122_v15  ;;  %4105 = vmatpush.msra.mxu1 %v5101_v6  ;;  %v5838_v6 = vld [vmem:[%s6114_s4] ss:$0 sm:$0xff] }
 0xe40   : > { %4078 = vmatpush.msra.mxu0 %v5157_v27  ;;  %4219 = vmatpush.msra.mxu3 %v5200_v44 }
 0xe41   : > { %4015 = vmatpush.msrb.mxu2 %v5126_v16  ;;  %4107 = vmatpush.msra.mxu1 %v5109_v10 }
 0xe42   : > { %4082 = vmatpush.msra.mxu0 %v5164_v29  ;;  %4225 = vmatpush.msra.mxu3 %v5216_v51 }
 0xe43   : > { %4018 = vmatpush.msrb.mxu2 %v5130_v17 }
 0xe44   : > { %4231 = vmatpush.msra.mxu3 %v5234_v58 }
 0xe45   : > { %4021 = vmatpush.msrb.mxu2 %v5138_v20 }
 0xe46   : > { %3836 = vmatmul.f32.vlgmr.msra.gmra.mxu2 %v3700_v34  ;;  %4237 = vmatpush.msra.mxu3 %v5240_v61  ;;  %v5845_v61 = vld [vmem:[%s6116_s6] ss:$0 sm:$0xff] }
 0xe47   : > { %4186 = vmatpush.msra.mxu2 %v5112_v12 }
 0xe49   : > { %4188 = vmatpush.msra.mxu2 %v5140_v21 }
 0xe4b   : > { %4190 = vmatpush.msra.mxu2 %v5145_v23 }
 0xe4d   : > { %4192 = vmatpush.msra.mxu2 %v5169_v31 }
 0xe83   : > { %v3501_v4 = vpop.f32.mrf.mxu1 }
 0xe8b   : > { %v3460_v5 = vpop.f32.mrf.mxu0  ;;  %v3531_v16 = vpop.f32.mrf.mxu2 }
 0xe8c   : > { %v3461_v10 = vadd.f32 %v5838_v6, %v3460_v5  ;;  %v3616_v29 = vpop.f32.mrf.mxu1  ;;  %v3658_v5 = vstv %s3426_s24 }
 0xe8d   : > { %v3558_v20 = vpop.f32.mrf.mxu3 }
 0xe8e   : > { %v3502_v15 = vadd.f32 %v3501_v4, %v3461_v10  ;;  %v4845_v10 = vld [vmem:[%s5075_s30 + $0x8] sm:$0xff] }
 0xe90   : > { %v3532_v17 = vadd.f32 %v3531_v16, %v3502_v15  ;;  %v5856_v15 = vld [vmem:[%s6110_s0] sm:$0xff] }
 0xe91   : > { %vm3659_vm3 = vcmp.lt.s32.totalorder %v3658_v5, %v5856_v15 }
 0xe92   : > { %v3559_v24 = vadd.f32 %v3558_v20, %v3532_v17  ;;  %v3660_v17 = vsel %vm3659_vm3, 1, %v6127_v49 }
 0xe93   : > { %v3591_v25 = vpop.f32.mrf.mxu0 }
 0xe94   : > { %v3592_v27 = vadd.f32 %v3591_v25, %v3559_v24 }
 0xe96   : > { %v3617_v44 = vadd.f32 %v3616_v29, %v3592_v27 }
 0xe98   : > { %3640 = vrot.lane.b32.xlu0 %v3617_v44, %s4988_s13  ;;  %v3619_v14 = vadd.f32 %v4842_v18, %v3617_v44 }
 0xe9a   : > { %v4843_v32 = vmul.f32 -1.442695, %v3619_v14  ;;  %v3905_v14 = vstv %s3904_s28 }
 0xe9b   : > { %vm3906_vm8 = vcmp.lt.s32.totalorder %v3905_v14, %v5856_v15 }
 0xe9c   : > { %4945 = vpow2.f32 %v4843_v32  ;;  %v3907_v32 = vsel %vm3906_vm8, 1, %v6127_v49 }
 0xea2   : > { %v4946_v45 = vpop.eup %4945 }
 0xea3   : > { %v3623_v63 = vadd.f32 1.0, %v4946_v45 }
 0xea5   : > { %4947 = vrcp.f32 %v3623_v63  ;;  %v3635_v41 = vand.u32 2147483648, %v3623_v63  ;;  %vm3629_vm15 = vweird.f32 %v3623_v63  ;;  %v3633_v34 = vand.u32 2147483647, %v3623_v63 }
 0xea7   : > { %v3636_v47 = vor.u32 1.1754944e-38, %v3635_v41  ;;  %vm3634_vm2 = vcmp.eq.f32.partialorder %v3633_v34, 8.507059e+37 }
 0xeab   : > { %v4948_v3 = vpop.eup %4947 }
 0xeac   : > { %v3625_v57 = vmul.f32 %v4948_v3, %v3623_v63  ;;  %vm3630_vm14 = vweird.f32 %v4948_v3 }
 0xead   : > { %vm3631_vm0 = vmor %vm3629_vm15, %vm3630_vm14 }
 0xeae   : > { %v3626_v39 = vsub.f32 1.0, %v3625_v57 }
 0xeb0   : > { %v3627_v60 = vmul.f32 %v4948_v3, %v3626_v39 }
 0xeb2   : > { %v3628_v40 = vadd.f32 %v4948_v3, %v3627_v60 }
 0xeb4   : > { %v3632_v48 = vsel %vm3631_vm0, %v4948_v3, %v3628_v40 }
 0xeb5   : > { %v3777_v33 = vpop.f32.mrf.mxu0  ;;  %v3637_v42 = vsel %vm3634_vm2, %v3636_v47, %v3632_v48 }
 0xeb6   : > { %v3650_v57 = vsub.f32 1.0, %v3637_v42  ;;  %v3656_v60 = vmul.f32 %v3637_v42, %v5771_v52 }
 0xeb7   : > { %v3804_v11 = vpop.f32.mrf.mxu1 }
 0xeb9   : > { %v3747_v51 = vpop.f32.mrf.mxu3 }
 0xec1   : > { %v3706_v58 = vpop.f32.mrf.mxu2  ;;  %v3862_v2 = vpop.f32.mrf.mxu3 }
 0xec2   : > { %v3707_v36 = vadd.f32 %v5845_v61, %v3706_v58 }
 0xec4   : > { %v3748_v59 = vadd.f32 %v3747_v51, %v3707_v36 }
 0xec6   : > { %v3778_v0 = vadd.f32 %v3777_v33, %v3748_v59 }
 0xec8   : > { %v3805_v19 = vadd.f32 %v3804_v11, %v3778_v0 }
 0xec9   : > { %v3837_v43 = vpop.f32.mrf.mxu2 }
 0xeca   : > { %v3838_v26 = vadd.f32 %v3837_v43, %v3805_v19 }
 0xecc   : > { %v3863_v8 = vadd.f32 %v3862_v2, %v3838_v26 }
 0xece   : > { %3886 = vrot.lane.b32.xlu1 %v3863_v8, %s4988_s13  ;;  %v3865_v16 = vadd.f32 %v4845_v10, %v3863_v8 }
 0xed0   : > { %v4846_v20 = vmul.f32 -1.442695, %v3865_v16 }
 0xed2   : > { %4949 = vpow2.f32 %v4846_v20 }
 0xed8   : > { %v4950_v24 = vpop.eup %4949 }
 0xed9   : > { %v3869_v25 = vadd.f32 1.0, %v4950_v24 }
 0xedb   : > { %4951 = vrcp.f32 %v3869_v25  ;;  %v3881_v36 = vand.u32 2147483648, %v3869_v25  ;;  %vm3875_vm5 = vweird.f32 %v3869_v25  ;;  %v3879_v59 = vand.u32 2147483647, %v3869_v25 }
 0xedd   : > { %v3882_v0 = vor.u32 1.1754944e-38, %v3881_v36  ;;  %vm3880_vm7 = vcmp.eq.f32.partialorder %v3879_v59, 8.507059e+37 }
 0xee1   : > { %v4952_v27 = vpop.eup %4951 }
 0xee2   : > { %v3871_v29 = vmul.f32 %v4952_v27, %v3869_v25  ;;  %vm3876_vm4 = vweird.f32 %v4952_v27 }
 0xee3   : > { %vm3877_vm6 = vmor %vm3875_vm5, %vm3876_vm4 }
 0xee4   : > { %v3872_v44 = vsub.f32 1.0, %v3871_v29 }
 0xee6   : > { %v3873_v51 = vmul.f32 %v4952_v27, %v3872_v44 }
 0xee8   : > { %v3874_v58 = vadd.f32 %v4952_v27, %v3873_v51 }
 0xeea   : > { %v3878_v33 = vsel %vm3877_vm6, %v4952_v27, %v3874_v58 }
 0xeeb   : > { %v3883_v19 = vsel %vm3880_vm7, %v3882_v0, %v3878_v33 }
 0xeec   : > { %v3896_v47 = vsub.f32 1.0, %v3883_v19  ;;  %v3902_v5 = vmul.f32 %v3883_v19, %v5779_v1 }
 0xf0a   : > { %v3641_v54 = vpop.permute.xlu0 %3640 }
 0xf0b   : > { %v3643_v4 = vmul.f32 %v3641_v54, %v3637_v42 }
 0xf0d   : > { %3645 = vrot.lane.b32.xlu2 %v3643_v4, %s4988_s13 }
 0xf15   : > { %3662 = vperm.xlu2 %4870, %v3660_v17  }
 0xf40   : > { %v3887_v11 = vpop.permute.xlu1 %3886 }
 0xf41   : > { %v3889_v43 = vmul.f32 %v3887_v11, %v3883_v19  ;;  %v5903_v11 = vld [vmem:[%s5070_s26 + $0x38] sm:$0xff]  ;;  %s4397_s26 = ssub.s32 8, %s5062_s19 }
 0xf43   : > { %3891 = vrot.lane.b32.xlu0 %v3889_v43, %s4988_s13 }
 0xf67   : > { %v3646_v26 = vpop.permute.xlu2 %3645 }
 0xf68   : > { %v3648_v2 = vadd.f32 %v4842_v18, %v3646_v26 }
 0xf6a   : > { %4953 = vtanh.f32 %v3648_v2 }
 0xf6f   : > { %v3663_v18 = vpop.permute.xlu2 %3662 }
 0xf70   : > { %v4954_v8 = vpop.eup %4953  ;;  %vm3664_vm9 = vcmp.eq.s32.totalorder %v3663_v18, 1 }
 0xf71   : > { %3652 = vrot.lane.b32.xlu1 %v4954_v8, %s4990_s21 }
 0xf79   : > { %3909 = vperm.xlu1 %4869, %v3907_v32  }
 0xfb5   : > { %v3892_v45 = vpop.permute.xlu0 %3891 }
 0xfb6   : > { %v3894_v63 = vadd.f32 %v4845_v10, %v3892_v45 }
 0xfb8   : > { %4955 = vtanh.f32 %v3894_v63 }
 0xfbe   : > { %v4956_v3 = vpop.eup %4955 }
 0xfbf   : > { %3898 = vrot.lane.b32.xlu0 %v4956_v3, %s4990_s21 }
 0xfe3   : > { %v3653_v39 = vpop.permute.xlu1 %3652 }
 0xfe4   : > { %v3655_v40 = vmul.f32 %v3653_v39, %v3650_v57 }
 0xfe6   : > { %v3657_v41 = vadd.f32 %v3656_v60, %v3655_v40 }
 0xfe8   : > { %v5868_v34 = vsel %vm3664_vm9, %v3657_v41, %v5771_v52  ;;  %v5870_v48 = vsel %vm3664_vm9, %v3657_v41, 0.0 }
 0xfe9   : > { %3924 = vrot.lane.b32.xlu2 %v5868_v34, %s4990_s21 }
 0xfeb   : > { %v3910_v4 = vpop.permute.xlu1 %3909 }
 0xfec   : > { %vm3911_vm10 = vcmp.eq.s32.totalorder %v3910_v4, 1 }
0x1031   : > { %v3899_v54 = vpop.permute.xlu0 %3898 }
0x1032   : > { %v3901_v10 = vmul.f32 %v3899_v54, %v3896_v47 }
0x1034   : > { %v3903_v16 = vadd.f32 %v3902_v5, %v3901_v10 }
0x1036   : > { %v5876_v42 = vsel %vm3911_vm10, %v3903_v16, %v5779_v1  ;;  %v5878_v17 = vsel %vm3911_vm10, %v3903_v16, 0.0  ;;  %v4398_v16 = vstv %s4397_s26 }
0x1037   : > { %4169 = vrot.lane.b32.xlu0 %v5876_v42, %s4990_s21  ;;  %vm4399_vm14 = vcmp.lt.s32.totalorder %v4398_v16, %v5856_v15 }
0x1043   : > { %v3925_v52 = vpop.permute.xlu2 %3924 }
0x1044   : > { %v3926_v20 = vsel %vm460_vm1, %v3925_v52, 0 }
0x1045   : > { %v3948_v24 = vand.u32 4294901760, %v3926_v20 }
0x1047   : > { %v3949_v25 = vsub.f32 %v3926_v20, %v3948_v24  ;;  %3994 = vmatmul.f32.vlgmr.msrb.gmra.mxu1 %v3948_v24 }
0x1048   : > { %4286 = vmatpush.msrb.mxu1 %v5112_v12 }
0x1049   : > { %v3950_v27 = vand.u32 4294901760, %v3949_v25  ;;  %4024 = vmatmul.f32.vlgmr.msrb.gmra.mxu2 %v3949_v25 }
0x104a   : > { %4288 = vmatpush.msrb.mxu1 %v5140_v21  ;;  %4315 = vmatpush.msrb.mxu2 %v5161_v28 }
0x104b   : > { %v3951_v1 = vsub.f32 %v3949_v25, %v3950_v27  ;;  %4051 = vmatmul.f32.vlgmr.msrb.gmra.mxu3 %v3950_v27  ;;  %v4400_v27 = vsel %vm4399_vm14, 1, %v6127_v49 }
0x104c   : > { %4290 = vmatpush.msrb.mxu1 %v5145_v23  ;;  %4346 = vmatpush.msrb.mxu3 %v5112_v12 }
0x104d   : > { %v3952_v29 = vand.u32 4294901760, %v3951_v1  ;;  %4319 = vmatpush.msrb.mxu2 %v5183_v37 }
0x104e   : > { %4292 = vmatpush.msrb.mxu1 %v5169_v31  ;;  %4348 = vmatpush.msrb.mxu3 %v5140_v21 }
0x104f   : > { %3953 = vmatmul.f32.vlgmr.msrb.gmra.mxu0 %v3952_v29  ;;  %4109 = vmatmul.f32.vlgmr.msra.gmra.mxu1 %v3948_v24  ;;  %v4167_v29 = vld [vmem:[%s5075_s30] sm:$0xff]  ;;  %s3920_s30 = sadd.s32 7, %s5062_s19 }
0x1050   : > { %4257 = vmatpush.msrb.mxu0 %v5143_v22  ;;  %4350 = vmatpush.msrb.mxu3 %v5145_v23 }
0x1051   : > { %4323 = vmatpush.msrb.mxu2 %v5205_v46 }
0x1052   : > { %4260 = vmatpush.msrb.mxu0 %v5167_v30  ;;  %4352 = vmatpush.msrb.mxu3 %v5169_v31 }
0x1053   : > { %4327 = vmatpush.msrb.mxu2 %v5225_v55 }
0x1054   : > { %4263 = vmatpush.msrb.mxu0 %v5186_v38 }
0x1056   : > { %4266 = vmatpush.msrb.mxu0 %v5214_v50 }
0x1057   : > { %4084 = vmatmul.f32.vlgmr.msra.gmra.mxu0 %v3948_v24 }
0x10a9   : > { %v4170_v12 = vpop.permute.xlu0 %4169 }
0x10aa   : > { %v4171_v21 = vsel %vm460_vm1, %v4170_v12, 0 }
0x10ab   : > { %v4193_v28 = vand.u32 4294901760, %v4171_v21 }
0x10ad   : > { %v4194_v22 = vsub.f32 %v4171_v21, %v4193_v28  ;;  %4239 = vmatmul.f32.vlgmr.msra.gmra.mxu3 %v4193_v28 }
0x10af   : > { %v4195_v23 = vand.u32 4294901760, %v4194_v22  ;;  %4269 = vmatmul.f32.vlgmr.msrb.gmra.mxu0 %v4194_v22 }
0x10b1   : > { %v4196_v37 = vsub.f32 %v4194_v22, %v4195_v23  ;;  %4296 = vmatmul.f32.vlgmr.msrb.gmra.mxu1 %v4195_v23 }
0x10b3   : > { %v4197_v30 = vand.u32 4294901760, %v4196_v37 }
0x10b5   : > { %4198 = vmatmul.f32.vlgmr.msra.gmra.mxu2 %v4197_v30  ;;  %4354 = vmatmul.f32.vlgmr.msrb.gmra.mxu3 %v4193_v28 }
0x10bd   : > { %4329 = vmatmul.f32.vlgmr.msrb.gmra.mxu2 %v4193_v28 }
0x10c4   : > { %v3995_v31 = vpop.f32.mrf.mxu1 }
0x10cc   : > { %v3954_v38 = vpop.f32.mrf.mxu0  ;;  %v4025_v55 = vpop.f32.mrf.mxu2 }
0x10cd   : > { %v3955_v46 = vadd.f32 %v5838_v6, %v3954_v38  ;;  %v4110_v33 = vpop.f32.mrf.mxu1 }
0x10ce   : > { %v4052_v51 = vpop.f32.mrf.mxu3 }
0x10cf   : > { %v3996_v50 = vadd.f32 %v3995_v31, %v3955_v46 }
0x10d1   : > { %v4026_v44 = vadd.f32 %v4025_v55, %v3996_v50 }
0x10d3   : > { %v4053_v58 = vadd.f32 %v4052_v51, %v4026_v44 }
0x10d4   : > { %v4085_v36 = vpop.f32.mrf.mxu0 }
0x10d5   : > { %v4086_v59 = vadd.f32 %v4085_v36, %v4053_v58 }
0x10d7   : > { %v4111_v0 = vadd.f32 %v4110_v33, %v4086_v59  ;;  %v4152_v59 = vstv %s3920_s30 }
0x10d8   : > { %vm4153_vm5 = vcmp.lt.s32.totalorder %v4152_v59, %v5856_v15 }
0x10d9   : > { %4134 = vrot.lane.b32.xlu1 %v4111_v0, %s4988_s13  ;;  %v4113_v19 = vadd.f32 %v5903_v11, %v4111_v0  ;;  %v4154_v33 = vsel %vm4153_vm5, 1, %v6127_v49 }
0x10db   : > { %v4849_v43 = vmul.f32 -1.442695, %v4113_v19 }
0x10dd   : > { %4957 = vpow2.f32 %v4849_v43 }
0x10e3   : > { %v4958_v26 = vpop.eup %4957 }
0x10e4   : > { %v4117_v2 = vadd.f32 1.0, %v4958_v26 }
0x10e6   : > { %4959 = vrcp.f32 %v4117_v2  ;;  %v4129_v10 = vand.u32 2147483648, %v4117_v2  ;;  %vm4123_vm12 = vweird.f32 %v4117_v2 }
0x10e8   : > { %v4130_v20 = vor.u32 1.1754944e-38, %v4129_v10 }
0x10ec   : > { %v4960_v6 = vpop.eup %4959 }
0x10ed   : > { %v4119_v8 = vmul.f32 %v4960_v6, %v4117_v2  ;;  %vm4124_vm11 = vweird.f32 %v4960_v6 }
0x10ee   : > { %vm4125_vm13 = vmor %vm4123_vm12, %vm4124_vm11 }
0x10ef   : > { %v4120_v3 = vsub.f32 1.0, %v4119_v8 }
0x10f1   : > { %v4121_v40 = vmul.f32 %v4960_v6, %v4120_v3 }
0x10f3   : > { %v4122_v5 = vadd.f32 %v4960_v6, %v4121_v40 }
0x10f5   : > { %v4126_v52 = vsel %vm4125_vm13, %v4960_v6, %v4122_v5 }
0x112c   : > { %v4270_v57 = vpop.f32.mrf.mxu0 }
0x112e   : > { %v4297_v18 = vpop.f32.mrf.mxu1 }
0x1130   : > { %v4240_v14 = vpop.f32.mrf.mxu3 }
0x1138   : > { %v4199_v32 = vpop.f32.mrf.mxu2  ;;  %v4355_v54 = vpop.f32.mrf.mxu3 }
0x1139   : > { %v4200_v45 = vadd.f32 %v5845_v61, %v4199_v32  ;;  %v4127_v61 = vand.u32 2147483647, %v4117_v2  ;;  %v6131_v2 = vld [vmem:[#allocation4_spill] sm:$0xff] }
0x113b   : > { %v4241_v63 = vadd.f32 %v4240_v14, %v4200_v45  ;;  %vm4128_vm15 = vcmp.eq.f32.partialorder %v4127_v61, 8.507059e+37  ;;  %v6132_v45 = vld [vmem:[#allocation5_spill] sm:$0xff] }
0x113c   : > { %v4131_v25 = vsel %vm4128_vm15, %v4130_v20, %v4126_v52 }
0x113d   : > { %v4271_v39 = vadd.f32 %v4270_v57, %v4241_v63 }
0x113f   : > { %v4298_v60 = vadd.f32 %v4297_v18, %v4271_v39  ;;  %v6134_v18 = vld [vmem:[#allocation8_spill] sm:$0xff] }
0x1140   : > { %v4330_v41 = vpop.f32.mrf.mxu2 }
0x1141   : > { %v4331_v47 = vadd.f32 %v4330_v41, %v4298_v60 }
0x1143   : > { %v4356_v4 = vadd.f32 %v4355_v54, %v4331_v47 }
0x1145   : > { %4379 = vrot.lane.b32.xlu2 %v4356_v4, %s4988_s13  ;;  %v4358_v12 = vadd.f32 %v4356_v4, %v4167_v29 }
0x1147   : > { %v4851_v21 = vmul.f32 -1.442695, %v4358_v12 }
0x1149   : > { %4961 = vpow2.f32 %v4851_v21 }
0x114b   : > { %v4135_v24 = vpop.permute.xlu1 %4134 }
0x114c   : > { %v4137_v1 = vmul.f32 %v4135_v24, %v4131_v25 }
0x114d   : > { %4402 = vperm.xlu2 %4870, %v4400_v27  }
0x114e   : > { %4139 = vrot.lane.b32.xlu0 %v4137_v1, %s4988_s13 }
0x114f   : > { %v4962_v28 = vpop.eup %4961 }
0x1150   : > { %v4362_v22 = vadd.f32 1.0, %v4962_v28 }
0x1152   : > { %4963 = vrcp.f32 %v4362_v22  ;;  %v4374_v46 = vand.u32 2147483648, %v4362_v22  ;;  %vm4368_vm2 = vweird.f32 %v4362_v22  ;;  %v4372_v50 = vand.u32 2147483647, %v4362_v22 }
0x1154   : > { %v4375_v44 = vor.u32 1.1754944e-38, %v4374_v46  ;;  %vm4373_vm4 = vcmp.eq.f32.partialorder %v4372_v50, 8.507059e+37 }
0x1158   : > { %v4964_v23 = vpop.eup %4963 }
0x1159   : > { %v4364_v37 = vmul.f32 %v4964_v23, %v4362_v22  ;;  %vm4369_vm0 = vweird.f32 %v4964_v23 }
0x115a   : > { %vm4370_vm3 = vmor %vm4368_vm2, %vm4369_vm0 }
0x115b   : > { %v4365_v30 = vsub.f32 1.0, %v4364_v37 }
0x115d   : > { %v4366_v31 = vmul.f32 %v4964_v23, %v4365_v30 }
0x115f   : > { %v4367_v38 = vadd.f32 %v4964_v23, %v4366_v31 }
0x1161   : > { %v4371_v55 = vsel %vm4370_vm3, %v4964_v23, %v4367_v38 }
0x1162   : > { %v5914_v58 = vsel %vm4373_vm4, %v4375_v44, %v4371_v55 }
0x1163   : > { %v4389_v47 = vsub.f32 1.0, %v5914_v58  ;;  %v4395_v4 = vmul.f32 %v5914_v58, %v5876_v42 }
0x119f   : > { %v4380_v51 = vpop.permute.xlu2 %4379 }
0x11a0   : > { %v4382_v36 = vmul.f32 %v4380_v51, %v5914_v58 }
0x11a2   : > { %4384 = vrot.lane.b32.xlu1 %v4382_v36, %s4988_s13 }
0x11a7   : > { %v4403_v49 = vpop.permute.xlu2 %4402 }
0x11a8   : > { %vm4404_vm7 = vcmp.eq.s32.totalorder %v4403_v49, 1 }
0x11aa   : > { %4156 = vperm.xlu1 %4869, %v4154_v33  }
0x11b2   : > { %951 = vrot.lane.b32.xlu1 %v5342_v7, %s4990_s21  ;;  %v6130_v7 = vld [vmem:[#allocation7_spill] sm:$0xff] }
0x11ba   : > { %1692 = vrot.lane.b32.xlu1 %v5508_v13, %s4990_s21 }
0x11c0   : > { %v4140_v0 = vpop.permute.xlu0 %4139 }
0x11c1   : > { %v4142_v19 = vadd.f32 %v5903_v11, %v4140_v0 }
0x11c2   : > { %2433 = vrot.lane.b32.xlu1 %v5613_v53, %s4990_s21 }
0x11c3   : > { %4965 = vtanh.f32 %v4142_v19 }
0x11c9   : > { %v4966_v43 = vpop.eup %4965 }
0x11ca   : > { %4146 = vrot.lane.b32.xlu2 %v4966_v43, %s4990_s21  ;;  %3174 = vrot.lane.b32.xlu1 %v5773_v56, %s4990_s21 }
0x11d2   : > { %1198 = vrot.lane.b32.xlu2 %v5422_v62, %s4990_s21  ;;  %3915 = vrot.lane.b32.xlu1 %v5878_v17, %s4990_s21  ;;  %v4144_v62 = vsub.f32 1.0, %v4131_v25 }
0x11da   : > { %1939 = vrot.lane.b32.xlu2 %v5516_v35, %s4990_s21  ;;  %v4150_v35 = vmul.f32 %v4131_v25, %v5868_v34 }
0x11e2   : > { %2680 = vrot.lane.b32.xlu2 %v6130_v7, %s4990_s21 }
0x11ea   : > { %3421 = vrot.lane.b32.xlu2 %v5781_v9, %s4990_s21 }
0x1214   : > { %v4385_v13 = vpop.permute.xlu1 %4384 }
0x1215   : > { %v4387_v53 = vadd.f32 %v4385_v13, %v4167_v29 }
0x1217   : > { %4967 = vtanh.f32 %v4387_v53 }
0x121c   : > { %v4157_v56 = vpop.permute.xlu1 %4156 }
0x121d   : > { %v4968_v15 = vpop.eup %4967  ;;  %vm4158_vm6 = vcmp.eq.s32.totalorder %v4157_v56, 1 }
0x121e   : > { %4391 = vrot.lane.b32.xlu0 %v4968_v15, %s4990_s21 }
0x1224   : > { %v4147_v17 = vpop.permute.xlu2 %4146  ;;  %v952_v11 = vpop.permute.xlu1 %951 }
0x1225   : > { %v4149_v26 = vmul.f32 %v4147_v17, %v4144_v62  ;;  %4811 = vst.msk [vmem:[%s5085_s20 + $0x38] sm:$0xff] %vm460_vm1, %v952_v11 }
0x1226   : > { %701 = vrot.lane.b32.xlu0 %v6131_v2, %s4990_s21 }
0x1227   : > { %v4151_v9 = vadd.f32 %v4150_v35, %v4149_v26 }
0x1229   : > { %v4160_v6 = vsel %vm4158_vm6, %v4151_v9, 0.0  ;;  %v4159_v8 = vsel %vm4158_vm6, %v4151_v9, %v5868_v34  ;;  %v6133_v34 = vld [vmem:[#allocation6_spill] sm:$0xff] }
0x122a   : > { %4162 = vrot.lane.b32.xlu2 %v4160_v6, %s4990_s21  ;;  %4413 = vrot.lane.b32.xlu1 %v4159_v8, %s4990_s21 }
0x122c   : > { %v1199_v14 = vpop.permute.xlu2 %1198  ;;  %v1693_v32 = vpop.permute.xlu1 %1692 }
0x122d   : > { %4814 = vst.msk [vmem:[%s5080_s14 + $0x8] sm:$0xff] %vm460_vm1, %v1199_v14 }
0x122e   : > { %4820 = vst.msk [vmem:[%s5080_s14 + $0x10] sm:$0xff] %vm460_vm1, %v1693_v32  ;;  %1445 = vrot.lane.b32.xlu0 %v6132_v45, %s4990_s21 }
0x1234   : > { %v1940_v63 = vpop.permute.xlu2 %1939  ;;  %v2434_v3 = vpop.permute.xlu1 %2433 }
0x1235   : > { %4823 = vst.msk [vmem:[%s5085_s20 + $0x28] sm:$0xff] %vm460_vm1, %v1940_v63 }
0x1236   : > { %4829 = vst.msk [vmem:[%s5085_s20 + $0x20] sm:$0xff] %vm460_vm1, %v2434_v3  ;;  %2186 = vrot.lane.b32.xlu0 %v6133_v34, %s4990_s21 }
0x123c   : > { %v2681_v57 = vpop.permute.xlu2 %2680  ;;  %v3175_v39 = vpop.permute.xlu1 %3174 }
0x123d   : > { %4832 = vst.msk [vmem:[%s5080_s14 + $0x20] sm:$0xff] %vm460_vm1, %v2681_v57 }
0x123e   : > { %4838 = vst.msk [vmem:[%s5080_s14 + $0x28] sm:$0xff] %vm460_vm1, %v3175_v39  ;;  %2927 = vrot.lane.b32.xlu0 %v6134_v18, %s4990_s21 }
0x1244   : > { %v3422_v60 = vpop.permute.xlu2 %3421  ;;  %v3916_v40 = vpop.permute.xlu1 %3915 }
0x1245   : > { %4841 = vst.msk [vmem:[%s5085_s20 + $0x10] sm:$0xff] %vm460_vm1, %v3422_v60 }
0x1246   : > { %4847 = vst.msk [vmem:[%s5085_s20 + $0x8] sm:$0xff] %vm460_vm1, %v3916_v40  ;;  %3668 = vrot.lane.b32.xlu0 %v5870_v48, %s4990_s21 }
0x1284   : > { %v4163_v41 = vpop.permute.xlu2 %4162 }
0x1285   : > { %4850 = vst.msk [vmem:[%s5080_s14 + $0x38] sm:$0xff] %vm460_vm1, %v4163_v41 }
0x1290   : > { %v4392_v54 = vpop.permute.xlu0 %4391 }
0x1291   : > { %v4394_v5 = vmul.f32 %v4392_v54, %v4389_v47 }
0x1293   : > { %v4396_v10 = vadd.f32 %v4395_v4, %v4394_v5 }
0x1295   : > { %v4406_v16 = vsel %vm4404_vm7, %v4396_v10, 0.0  ;;  %v4405_v61 = vsel %vm4404_vm7, %v4396_v10, %v5876_v42 }
0x1296   : > { %4408 = vrot.lane.b32.xlu0 %v4406_v16, %s4990_s21  ;;  %4418 = vrot.lane.b32.xlu2 %v4405_v61, %s4990_s21 }
0x1298   : > { %v702_v48 = vpop.permute.xlu0 %701 }
0x1299   : > { %704 = vst.msk [vmem:[%s5080_s14] sm:$0xff] %vm460_vm1, %v702_v48 }
0x129c   : > { %v4414_v52 = vpop.permute.xlu1 %4413 }
0x129d   : > { %4416 = vst.msk [vmem:[#allocation2] sm:$0xff] %vm460_vm1, %v4414_v52 }
0x12a0   : > { %v1446_v20 = vpop.permute.xlu0 %1445 }
0x12a1   : > { %4817 = vst.msk [vmem:[%s5085_s20 + $0x30] sm:$0xff] %vm460_vm1, %v1446_v20 }
0x12a8   : > { %v2187_v24 = vpop.permute.xlu0 %2186 }
0x12a9   : > { %4826 = vst.msk [vmem:[%s5080_s14 + $0x18] sm:$0xff] %vm460_vm1, %v2187_v24 }
0x12b0   : > { %v2928_v25 = vpop.permute.xlu0 %2927 }
0x12b1   : > { %4835 = vst.msk [vmem:[%s5085_s20 + $0x18] sm:$0xff] %vm460_vm1, %v2928_v25 }
0x12b8   : > { %v3669_v42 = vpop.permute.xlu0 %3668 }
0x12b9   : > { %4844 = vst.msk [vmem:[%s5080_s14 + $0x30] sm:$0xff] %vm460_vm1, %v3669_v42 }
0x12f0   : > { %v4419_v27 = vpop.permute.xlu2 %4418 }
0x12f1   : > { %4421 = vst.msk [vmem:[#allocation3] sm:$0xff] %vm460_vm1, %v4419_v27 }
0x1305   : > { %4425 = sbr.rel (%p4852_p6) target bundleno = 5052 (0x13bc), region = 64 }
0x1308   : > { %v4409_v1 = vpop.permute.xlu0 %4408 }
0x1309   : > { %4411 = vst.msk [vmem:[%s5085_s20] sm:$0xff] %vm460_vm1, %v4409_v1 }
0x130a   : > { %v4434_v29 = vld [vmem:[%s6117_s7 + $0x38] sm:$0xff]  ;;  %v4433_v12 = vld [vmem:[%s6117_s7 + $0x30] sm:$0xff]  ;;  %v4432_v21 = vld [vmem:[%s6117_s7 + $0x28] sm:$0xff]  ;;  %v4426_v51 = vsel %vm460_vm1, %v4414_v52, %v4405_v61  ;;  %vm4439_vm8 = vcmask 523264  }
0x130b   : > { %v6005_v28 = vand.u32 4294901760, %v4434_v29  ;;  %v6007_v22 = vand.u32 4294901760, %v4433_v12  ;;  %v6009_v23 = vand.u32 4294901760, %v4432_v21  ;;  %v4431_v37 = vld [vmem:[%s6117_s7 + $0x20] sm:$0xff]  ;;  %v4430_v30 = vld [vmem:[%s6117_s7 + $0x18] sm:$0xff]  ;;  %v4429_v31 = vld [vmem:[%s6117_s7 + $0x10] sm:$0xff] }
0x130c   : > { %v6020_v38 = vand.u32 4294901760, %v4431_v37  ;;  %v6022_v46 = vand.u32 4294901760, %v4430_v30  ;;  %v6024_v50 = vand.u32 4294901760, %v4429_v31  ;;  %v4428_v55 = vld [vmem:[%s6117_s7 + $0x8] sm:$0xff]  ;;  %v4427_v44 = vld [vmem:[%s6117_s7] sm:$0xff]  ;;  %v4441_v9 = vsel %vm4439_vm8, %v4426_v51, 0 }
0x130d   : > { %4452 = vmatpush.msra.mxu0 %v6005_v28  ;;  %v4485_v58 = vsub.f32 %v4434_v29, %v6005_v28  ;;  %v6036_v36 = vsub.f32 %v4433_v12, %v6007_v22  ;;  %v6039_v59 = vsub.f32 %v4432_v21, %v6009_v23  ;;  %4584 = vmatpush.msra.mxu3 %v6005_v28  ;;  %v6042_v33 = vand.u32 4294901760, %v4428_v55  ;;  %v4975_v61 = vld [vmem:[%s6118_s8] ss:$0 sm:$0xff] }
0x130e   : > { %v6045_v0 = vsub.f32 %v4431_v37, %v6020_v38  ;;  %v6048_v19 = vsub.f32 %v4430_v30, %v6022_v46  ;;  %v6051_v43 = vsub.f32 %v4429_v31, %v6024_v50  ;;  %v6056_v49 = vand.u32 4294901760, %v4427_v44 }
0x130f   : > { %4454 = vmatpush.msra.mxu0 %v6007_v22  ;;  %v4486_v7 = vand.u32 4294901760, %v4485_v58  ;;  %v4492_v13 = vand.u32 4294901760, %v6036_v36  ;;  %4547 = vmatpush.msra.mxu2 %v4485_v58  ;;  %v4498_v53 = vand.u32 4294901760, %v6039_v59  ;;  %v6061_v15 = vsub.f32 %v4428_v55, %v6042_v33 }
0x1310   : > { %v4504_v56 = vand.u32 4294901760, %v6045_v0  ;;  %4586 = vmatpush.msra.mxu3 %v6007_v22  ;;  %v4510_v35 = vand.u32 4294901760, %v6048_v19  ;;  %v4516_v26 = vand.u32 4294901760, %v6051_v43  ;;  %v4527_v14 = vsub.f32 %v4427_v44, %v6056_v49 }
0x1311   : > { %v4487_v62 = vsub.f32 %v4485_v58, %v4486_v7  ;;  %4456 = vmatpush.msra.mxu0 %v6009_v23  ;;  %v4493_v17 = vsub.f32 %v6036_v36, %v4492_v13  ;;  %v4499_v11 = vsub.f32 %v6039_v59, %v4498_v53  ;;  %4550 = vmatpush.msra.mxu2 %v6036_v36  ;;  %v4522_v63 = vand.u32 4294901760, %v6061_v15 }
0x1312   : > { %4588 = vmatpush.msra.mxu3 %v6009_v23  ;;  %v4505_v8 = vsub.f32 %v6045_v0, %v4504_v56  ;;  %v4511_v45 = vsub.f32 %v6048_v19, %v4510_v35  ;;  %v4467_v3 = vand.u32 4294901760, %v4441_v9  ;;  %v4517_v57 = vsub.f32 %v6051_v43, %v4516_v26 }
0x1313   : > { %v4488_v2 = vand.u32 4294901760, %v4487_v62  ;;  %v4494_v6 = vand.u32 4294901760, %v4493_v17  ;;  %4458 = vmatpush.msra.mxu0 %v6020_v38  ;;  %4553 = vmatpush.msra.mxu2 %v6039_v59  ;;  %v4500_v32 = vand.u32 4294901760, %v4499_v11  ;;  %v4528_v39 = vand.u32 4294901760, %v4527_v14 }
0x1314   : > { %4590 = vmatpush.msra.mxu3 %v6020_v38  ;;  %v4506_v34 = vand.u32 4294901760, %v4505_v8  ;;  %v4468_v18 = vsub.f32 %v4441_v9, %v4467_v3  ;;  %v4512_v60 = vand.u32 4294901760, %v4511_v45  ;;  %v4523_v40 = vsub.f32 %v6061_v15, %v4522_v63 }
0x1315   : > { %4489 = vmatpush.msra.mxu1 %v4488_v2  ;;  %4460 = vmatpush.msra.mxu0 %v6022_v46  ;;  %v4518_v47 = vand.u32 4294901760, %v4517_v57  ;;  %v4529_v54 = vsub.f32 %v4527_v14, %v4528_v39 }
0x1316   : > { %4556 = vmatpush.msra.mxu2 %v6045_v0  ;;  %4592 = vmatpush.msra.mxu3 %v6022_v46  ;;  %v4469_v41 = vand.u32 4294901760, %v4468_v18  ;;  %v4524_v5 = vand.u32 4294901760, %v4523_v40 }
0x1317   : > { %4495 = vmatpush.msra.mxu1 %v4494_v6  ;;  %4462 = vmatpush.msra.mxu0 %v6024_v50  ;;  %v4530_v16 = vand.u32 4294901760, %v4529_v54 }
0x1318   : > { %4559 = vmatpush.msra.mxu2 %v6048_v19  ;;  %4594 = vmatpush.msra.mxu3 %v6024_v50  ;;  %v4470_v4 = vsub.f32 %v4468_v18, %v4469_v41 }
0x1319   : > { %4501 = vmatpush.msra.mxu1 %v4500_v32  ;;  %4464 = vmatpush.msra.mxu0 %v6042_v33 }
0x131a   : > { %4562 = vmatpush.msra.mxu2 %v6051_v43  ;;  %4596 = vmatpush.msra.mxu3 %v6042_v33  ;;  %v4471_v10 = vand.u32 4294901760, %v4470_v4 }
0x131b   : > { %4507 = vmatpush.msra.mxu1 %v4506_v34  ;;  %4466 = vmatpush.msra.mxu0 %v6056_v49 }
0x131c   : > { %4565 = vmatpush.msra.mxu2 %v6061_v15  ;;  %4598 = vmatpush.msra.mxu3 %v6056_v49 }
0x131d   : > { %4617 = vmatpush.msrb.mxu0 %v4486_v7  ;;  %4513 = vmatpush.msra.mxu1 %v4512_v60 }
0x131e   : > { %4568 = vmatpush.msra.mxu2 %v4527_v14  ;;  %4602 = vmatmul.f32.vlgmr.msra.gmra.mxu3 %v4469_v41 }
0x131f   : > { %4621 = vmatpush.msrb.mxu0 %v4492_v13  ;;  %4519 = vmatpush.msra.mxu1 %v4518_v47 }
0x1320   : > { %4571 = vmatmul.f32.vlgmr.msra.gmra.mxu2 %v4468_v18  ;;  %4472 = vmatmul.f32.vlgmr.msra.gmra.mxu0 %v4471_v10 }
0x1321   : > { %4625 = vmatpush.msrb.mxu0 %v4498_v53  ;;  %4525 = vmatpush.msra.mxu1 %v4524_v5 }
0x1323   : > { %4629 = vmatpush.msrb.mxu0 %v4504_v56  ;;  %4531 = vmatpush.msra.mxu1 %v4530_v16 }
0x1324   : > { %4533 = vmatmul.f32.vlgmr.msra.gmra.mxu1 %v4467_v3 }
0x1325   : > { %4660 = vmatpush.msrb.mxu1 %v6005_v28  ;;  %4633 = vmatpush.msrb.mxu0 %v4510_v35 }
0x1327   : > { %4662 = vmatpush.msrb.mxu1 %v6007_v22  ;;  %4637 = vmatpush.msrb.mxu0 %v4516_v26 }
0x1329   : > { %4664 = vmatpush.msrb.mxu1 %v6009_v23  ;;  %4641 = vmatpush.msrb.mxu0 %v4522_v63 }
0x132b   : > { %4666 = vmatpush.msrb.mxu1 %v6020_v38  ;;  %4645 = vmatpush.msrb.mxu0 %v4528_v39 }
0x132c   : > { %4647 = vmatmul.f32.vlgmr.msrb.gmra.mxu0 %v4467_v3 }
0x132d   : > { %4668 = vmatpush.msrb.mxu1 %v6022_v46 }
0x132f   : > { %4670 = vmatpush.msrb.mxu1 %v6024_v50 }
0x1331   : > { %4672 = vmatpush.msrb.mxu1 %v6042_v33 }
0x1333   : > { %4674 = vmatpush.msrb.mxu1 %v6056_v49 }
0x1334   : > { %4676 = vmatmul.f32.vlgmr.msrb.gmra.mxu1 %v4467_v3 }
0x139d   : > { %v4473_v48 = vpop.f32.mrf.mxu0 }
0x139e   : > { %v4474_v52 = vadd.f32 %v4975_v61, %v4473_v48 }
0x13a1   : > { %v4534_v20 = vpop.f32.mrf.mxu1  ;;  %v4603_v27 = vpop.f32.mrf.mxu3 }
0x13a2   : > { %v4535_v25 = vadd.f32 %v4534_v20, %v4474_v52 }
0x13a3   : > { %v4572_v24 = vpop.f32.mrf.mxu2 }
0x13a4   : > { %v4573_v42 = vadd.f32 %v4572_v24, %v4535_v25 }
0x13a6   : > { %v4604_v1 = vadd.f32 %v4603_v27, %v4573_v42 }
0x13a9   : > { %v4648_v29 = vpop.f32.mrf.mxu0 }
0x13aa   : > { %v4649_v12 = vadd.f32 %v4648_v29, %v4604_v1 }
0x13b1   : > { %v4677_v21 = vpop.f32.mrf.mxu1 }
0x13b2   : > { %v4678_v28 = vadd.f32 %v4677_v21, %v4649_v12 }
0x13b4   : > { %4976 = vtanh.f32 %v4678_v28 }
0x13ba   : > { %v4977_v22 = vpop.eup %4976 }
0x13bb   : > { %4681 = vst.msk [vmem:[%s6121_s11] sm:$0xff] %vm460_vm1, %v4977_v22 }
0x13bc PF: > { %s22_s17 = sadd.s32 1, %s4984_s17  }
0x13bd   : > { %p19_p7 = scmp.ge.s32.totalorder %s22_s17, 4  }
0x13bf   :  { %21 = sbr.rel (!%p19_p7) target bundleno = 1 (0x1), region = 145 }

</bundles_post_ra>
